<compile_context>
chip_gen: v6e
topology: v6e:2x2x1
jax: 0.10.0
libtpu: 0.0.40
codegen_flags: <defaults>
</compile_context>

<pallas_src>
import functools

import jax
import jax.numpy as jnp
from jax.experimental import pallas as pl
from jax.experimental.pallas import tpu as pltpu


def _round_up(v, m):
    return (v + m - 1) // m * m


def _physical_vmem_bytes(fallback=64 << 20):
    """Per-core VMEM capacity; conservative 64 MiB fallback (v7x) if the query fails."""
    get_info = getattr(pltpu, "get_tpu_info", None)
    if get_info is not None:
        try:
            info = get_info()
            for attr in ("vmem_capacity_bytes", "vmem_size_bytes", "vmem_bytes"):
                v = getattr(info, attr, None)
                if v:
                    return int(v)
        except Exception:
            pass
    return fallback


def _pooled_cache_dtype(tile_n):
    # bf16 halves the only batch-scaling VMEM scratch (the MXU consumes bf16 anyway);
    # fall back to f32 when the batch tile is not a whole number of packed 16-row tiles.
    return jnp.bfloat16 if tile_n % 16 == 0 else jnp.float32


def _footprint_bytes(*, TN, NT, C, HW, CPP, NCLS_PAD, x_itemsize):
    """Estimated VMEM footprint (with (sublane,128) padding) of one kernel invocation."""
    x_sub = max(8, 8 * 4 // x_itemsize)                       # f32 -> 8 rows, bf16 -> 16
    x_blk = TN * _round_up(C, x_sub) * _round_up(HW, 128) * x_itemsize
    cache_isz = jnp.dtype(_pooled_cache_dtype(TN)).itemsize
    cache_sub = max(8, 8 * 4 // cache_isz)
    pooled = NT * _round_up(TN, cache_sub) * _round_up(CPP, 128) * cache_isz
    out_blk = _round_up(TN, 8) * _round_up(NCLS_PAD, 128) * 4
    w_bytes = _round_up(CPP, 16) * _round_up(NCLS_PAD, 128) * 2
    b_bytes = 8 * _round_up(NCLS_PAD, 128) * 4
    stats = 4 * 8 * _round_up(CPP, 128) * 4
    return 2 * x_blk + pooled + 2 * out_blk + w_bytes + b_bytes + stats


def _pick_batch_tile(N, *, C, HW, CPP, NCLS_PAD, x_itemsize, budget, cap=256):
    """Largest batch tile dividing N that fits the VMEM budget, preferring multiples of
    128 so the phase-1 MXU matmul M dimension stays full (v5e MXU=128, v6e/v7x=256)."""
    cands = [t for t in range(8, min(N, cap) + 1, 8) if N % t == 0]
    if N <= cap:
        cands.append(N)
    cands = sorted(set(cands))
    if not cands:
        return N

    def fits(t):
        return _footprint_bytes(TN=t, NT=N // t, C=C, HW=HW, CPP=CPP,
                                NCLS_PAD=NCLS_PAD, x_itemsize=x_itemsize) <= budget

    fitting = [t for t in cands if fits(t)]
    if not fitting:
        return cands[0]
    m128 = [t for t in fitting if t % 128 == 0]
    return max(m128) if m128 else max(fitting)


def prepare_linear_params(weight, bias, *, num_channels, pool_size, lane_pad=128):
    """One-time (model-load) re-layout of the nn.Linear params for the kernel.

    weight: (num_classes, C*P*P) in PyTorch flatten order (c, ph, pw).
    Returns w_k: (C*P*P, num_classes_padded) bf16 with rows permuted to the kernel's
    p-major feature order (p*C + c), and b_k: (1, num_classes_padded) f32.
    """
    C, P = num_channels, pool_size
    PP = P * P
    ncls, kf = weight.shape
    assert kf == C * PP, "weight in_features != C * pool_size**2"
    ncls_pad = max(lane_pad, _round_up(ncls, lane_pad))
    # row index c*PP + p  ->  row index p*C + c (one-time permutation at model load)
    w_t = weight.T.reshape(C, PP, ncls).transpose(1, 0, 2).reshape(C * PP, ncls)
    w_k = jnp.zeros((C * PP, ncls_pad), jnp.bfloat16).at[:, :ncls].set(w_t.astype(jnp.bfloat16))
    b_k = jnp.zeros((1, ncls_pad), jnp.float32).at[0, :ncls].set(bias.astype(jnp.float32))
    return w_k, b_k


def _make_kernel(*, N, TN, C, W, Hb, Wb, P, pool_type, pooled_dtype, eps=1e-5):
    if pool_type not in ("max", "avg"):
        raise ValueError("pool_type must be 'max' or 'avg'")
    is_max = pool_type == "max"
    PP = P * P
    CPP = C * PP
    inv_count = 1.0 / float(N * PP)      # BN: biased variance over (batch, P, P)
    inv_win = 1.0 / float(Hb * Wb)       # avg-pool window normalizer

    def kernel(x_ref, w_ref, b_ref, o_ref, pooled_sc, sum_sc, ssq_sc, bn_sc):
        phase = pl.program_id(0)
        n = pl.program_id(1)

        # ---- init stats accumulators at the very first grid step ----
        @pl.when((phase == 0) & (n == 0))
        def _init():
            sum_sc[...] = jnp.zeros_like(sum_sc)
            ssq_sc[...] = jnp.zeros_like(ssq_sc)

        # ---- phase 0: pool this batch tile + accumulate sum / sumsq ----
        @pl.when(phase == 0)
        def _pool_and_stats():
            # x block is (TN, C, H*W): H*W on lanes. Upcast per-tile (native-dtype DMA
            # from HBM; v5e VPU has no bf16 so we go f32 immediately after load).
            xt = x_ref[...].astype(jnp.float32)
            cells = []
            for ph_i in range(P):                       # static loops (PP is tiny)
                row_acc = None
                for hh in range(Hb):                    # combine Hb full-width row slices (VPU)
                    s0 = (ph_i * Hb + hh) * W
                    sl = xt[:, :, s0:s0 + W]            # (TN, C, W) static lane slice
                    if row_acc is None:
                        row_acc = sl
                    elif is_max:
                        row_acc = jnp.maximum(row_acc, sl)
                    else:
                        row_acc = row_acc + sl
                for pw_i in range(P):                   # final Wb-wide lane reduce per cell
                    win = row_acc[:, :, pw_i * Wb:(pw_i + 1) * Wb]
                    if is_max:
                        cells.append(jnp.max(win, axis=-1))             # (TN, C)
                    else:
                        cells.append(jnp.sum(win, axis=-1) * inv_win)
            # p-major feature order (p*C + c): flatten is a plain lane concatenation.
            pooled = jnp.concatenate(cells, axis=-1) if PP > 1 else cells[0]   # (TN, CPP) f32
            pooled_sc[n] = pooled.astype(pooled_dtype)
            sum_sc[...] += jnp.sum(pooled, axis=0, keepdims=True)
            ssq_sc[...] += jnp.sum(pooled * pooled, axis=0, keepdims=True)

        # ---- phase 1, first step: finalize BN batch statistics once ----
        @pl.when((phase == 1) & (n == 0))
        def _finalize_stats():
            # Collapse p-major per-feature sums to per-channel via PP static lane slices.
            s_c = sum_sc[0:1, 0:C]
            ss_c = ssq_sc[0:1, 0:C]
            for p_i in range(1, PP):
                s_c = s_c + sum_sc[0:1, p_i * C:(p_i + 1) * C]
                ss_c = ss_c + ssq_sc[0:1, p_i * C:(p_i + 1) * C]
            mean_c = s_c * inv_count
            # TODO(synk): one-pass E[x^2]-mean^2 (clamped at 0) can lose precision when
            #             |mean| >> std (e.g. post-ReLU maps); a shifted/two-pass variance
            #             would be more robust.
            var_c = jnp.maximum(ss_c * inv_count - mean_c * mean_c, 0.0)
            inv_c = jax.lax.rsqrt(var_c + eps)
            bn_sc[0:1, :] = jnp.tile(mean_c, (1, PP))    # feature p*C + c -> channel c
            bn_sc[1:2, :] = jnp.tile(inv_c, (1, PP))

        # ---- phase 1: normalize this tile + single K=C*P*P matmul + bias ----
        @pl.when(phase == 1)
        def _bn_linear():
            pooled = pooled_sc[n].astype(jnp.float32)             # (TN, CPP)
            normed = (pooled - bn_sc[0:1, :]) * bn_sc[1:2, :]     # f32 elementwise
            acc = jnp.dot(normed.astype(jnp.bfloat16), w_ref[...],
                          preferred_element_type=jnp.float32)     # (TN, NCLS_PAD), bf16 MXU
            o_ref[...] = acc + b_ref[...]

    return kernel


@functools.partial(jax.jit,
                   static_argnames=("pool_size", "pool_type", "num_classes", "tile_n"))
def classifier_forward(x_nchw, w_k, b_k, *, pool_size, pool_type="max",
                       num_classes, tile_n=None):
    """x_nchw: (N, C, H, W) in its native float dtype; w_k/b_k from prepare_linear_params."""
    N, C, H, W = x_nchw.shape
    P = pool_size
    if H % P != 0 or W % P != 0:
        # TODO(synk): general adaptive pooling (non-divisible spatial dims) unsupported.
        raise ValueError("H and W must be divisible by pool_size")
    Hb, Wb = H // P, W // P
    HW = H * W
    PP = P * P
    CPP = C * PP
    KF, NCLS_PAD = w_k.shape
    assert KF == CPP, "weight layout does not match C * pool_size**2"
    assert num_classes <= NCLS_PAD

    # Metadata-only reshape of contiguous NCHW (no extra HBM pass, no dtype cast).
    x3 = x_nchw.reshape(N, C, HW)

    x_itemsize = jnp.dtype(x_nchw.dtype).itemsize
    phys_vmem = _physical_vmem_bytes()
    if tile_n is None:
        TN = _pick_batch_tile(N, C=C, HW=HW, CPP=CPP, NCLS_PAD=NCLS_PAD,
                              x_itemsize=x_itemsize, budget=int(phys_vmem * 0.75))
    else:
        TN = tile_n
    if N % TN != 0 or (TN != N and TN % 8 != 0):
        raise ValueError("batch tile must divide N and be a multiple of 8 (or == N)")
    NT = N // TN
    pooled_dtype = _pooled_cache_dtype(TN)

    footprint = _footprint_bytes(TN=TN, NT=NT, C=C, HW=HW, CPP=CPP,
                                 NCLS_PAD=NCLS_PAD, x_itemsize=x_itemsize)
    vmem_limit = int(min(max(int(footprint * 1.25) + (2 << 20), 16 << 20), phys_vmem))

    kernel = _make_kernel(N=N, TN=TN, C=C, W=W, Hb=Hb, Wb=Wb, P=P,
                          pool_type=pool_type, pooled_dtype=pooled_dtype)

    out_padded = pl.pallas_call(
        kernel,
        out_shape=jax.ShapeDtypeStruct((N, NCLS_PAD), jnp.float32),
        grid_spec=pltpu.PrefetchScalarGridSpec(
            num_scalar_prefetch=0,
            grid=(2, NT),                                  # (phase, batch tile)
            in_specs=[
                # phase 0 streams batch tiles; phase 1 pins the block index to the LAST
                # tile so the phase transition issues no redundant activation DMA.
                pl.BlockSpec((TN, C, HW),
                             lambda ph, n: (n * (1 - ph) + (NT - 1) * ph, 0, 0)),
                pl.BlockSpec((CPP, NCLS_PAD), lambda ph, n: (0, 0)),
                pl.BlockSpec((1, NCLS_PAD), lambda ph, n: (0, 0)),
            ],
            # block index is 0 throughout phase 0, n during phase 1 -> each output block
            # is written exactly once (phase 1) and flushed right after.
            out_specs=pl.BlockSpec((TN, NCLS_PAD), lambda ph, n: (ph * n, 0)),
            scratch_shapes=[
                # TODO(synk): for very large N*CPP this whole-batch pooled cache should
                #             spill to an HBM scratch (pl.ANY + manual DMA); not needed at
                #             classifier-head sizes.
                pltpu.VMEM((NT, TN, CPP), pooled_dtype),   # pooled activation cache
                pltpu.VMEM((1, CPP), jnp.float32),         # running sum   (p-major features)
                pltpu.VMEM((1, CPP), jnp.float32),         # running sum of squares
                pltpu.VMEM((2, CPP), jnp.float32),         # finalized mean / inv-std
            ],
        ),
        compiler_params=pltpu.CompilerParams(
            # TODO(synk): batch-stat reduction is cross-tile, so both axes stay
            #             'arbitrary'; a v7x megacore variant needs per-core partial
            #             sum/ssq + a cross-core reduction (not implemented).
            dimension_semantics=("arbitrary", "arbitrary"),
            vmem_limit_bytes=vmem_limit,
        ),
    )(x3, w_k, b_k)

    return out_padded[:, :num_classes]


def _reference(x, weight, bias, pool_size, pool_type="max", eps=1e-5):
    """Pure-JAX mirror of the PyTorch module (training-mode BN); matmul operands cast to
    bf16 to match the kernel's MXU inputs."""
    N, C, H, W = x.shape
    P = pool_size
    Hb, Wb = H // P, W // P
    xr = x.astype(jnp.float32).reshape(N, C, P, Hb, P, Wb)
    pooled = xr.max(axis=(3, 5)) if pool_type == "max" else xr.mean(axis=(3, 5))
    mean = pooled.mean(axis=(0, 2, 3), keepdims=True)
    var = ((pooled - mean) ** 2).mean(axis=(0, 2, 3), keepdims=True)
    normed = (pooled - mean) / jnp.sqrt(var + eps)
    flat = normed.reshape(N, -1)                              # flatten order = (c, ph, pw)
    out = jnp.dot(flat.astype(jnp.bfloat16), weight.T.astype(jnp.bfloat16),
                  preferred_element_type=jnp.float32)
    return out + bias


if __name__ == "__main__":
    # opt = {'num_couche': 3 (-> 64 channels), 'num_classes': 10, 'pool_size': 2, 'pool_type': 'max'}
    num_classes = 10
    pool_size = 2
    pool_type = "max"
    nChannels = 64
    nChannelsAll = nChannels * pool_size * pool_size

    N, H, W = 16, 8, 8
    key = jax.random.PRNGKey(0)
    kx, kw = jax.random.split(key)

    x = jax.random.normal(kx, (N, nChannels, H, W), dtype=jnp.float32)
    # nn.Linear init per initialize_weights(): weight ~ N(0, sqrt(2/out_features)), bias = 0
    weight = jax.random.normal(kw, (num_classes, nChannelsAll), dtype=jnp.float32) * jnp.sqrt(
        2.0 / num_classes
    )
    bias = jnp.zeros((num_classes,), dtype=jnp.float32)

    # Hoisted one-time weight/bias re-layout (model load time, not per forward call).
    w_k, b_k = prepare_linear_params(weight, bias, num_channels=nChannels, pool_size=pool_size)

    # Call 1: tile_n=8 -> two batch tiles (f32 pooled cache), exercising the multi-tile
    #         two-phase BN path.
    out_tiled = classifier_forward(x, w_k, b_k, pool_size=pool_size, pool_type=pool_type,
                                   num_classes=num_classes, tile_n=8)
    # Call 2: VMEM-budgeted auto tile (TN=16 here -> bf16 pooled cache path).
    out_auto = classifier_forward(x, w_k, b_k, pool_size=pool_size, pool_type=pool_type,
                                  num_classes=num_classes)
    jax.block_until_ready((out_tiled, out_auto))

    ref = _reference(x, weight, bias, pool_size, pool_type)
    assert out_tiled.shape == (N, num_classes)
    assert out_auto.shape == (N, num_classes)
    err_tiled = float(jnp.max(jnp.abs(out_tiled - ref)))
    err_auto = float(jnp.max(jnp.abs(out_auto - ref)))
    # f32 pooled cache: only the shared bf16-MXU rounding differs from the reference.
    assert jnp.allclose(out_tiled, ref, rtol=1e-2, atol=2e-2), f"max abs err = {err_tiled}"
    # bf16 pooled cache: tolerance sized for ~2^-8 feature quantization propagated through
    # the K=C*P*P=256 matmul (outputs have magnitude ~O(10)).
    assert jnp.allclose(out_auto, ref, rtol=2e-2, atol=2.5e-1), f"max abs err = {err_auto}"
    print("KERNEL_OK")
</pallas_src>

<mosaic_0001>
module attributes {stable_mosaic.version = 11 : i64} {
  func.func @kernel(%arg0: i32, %arg1: i32, %arg2: memref<8x64x64xf32, #tpu.memory_space<vmem>>, %arg3: memref<256x128xbf16, #tpu.memory_space<vmem>>, %arg4: memref<1x128xf32, #tpu.memory_space<vmem>>, %arg5: memref<8x128xf32, #tpu.memory_space<vmem>>, %arg6: memref<2x8x256xf32, #tpu.memory_space<vmem>>, %arg7: memref<1x256xf32, #tpu.memory_space<vmem>>, %arg8: memref<1x256xf32, #tpu.memory_space<vmem>>, %arg9: memref<2x256xf32, #tpu.memory_space<vmem>>) attributes {dimension_semantics = [#tpu.dimension_semantics<arbitrary>, #tpu.dimension_semantics<arbitrary>], iteration_bounds = array<i64: 2, 2>, scalar_prefetch = 0 : i64, scratch_operands = 4 : i64, tpu.core_type = #tpu.core_type<tc>, window_params = [{transform_indices = @transform_0, window_bounds = array<i64: 8, 64, 64>}, {pipeline_mode = #tpu.pipeline_mode<synchronous>, transform_indices = @transform_1, window_bounds = array<i64: 256, 128>}, {pipeline_mode = #tpu.pipeline_mode<synchronous>, transform_indices = @transform_2, window_bounds = array<i64: 1, 128>}, {transform_indices = @transform_3, window_bounds = array<i64: 8, 128>}]} {
    %c0_i32 = arith.constant 0 : i32
    %0 = arith.cmpi eq, %arg0, %c0_i32 : i32
    %c0_i32_0 = arith.constant 0 : i32
    %1 = arith.cmpi eq, %arg1, %c0_i32_0 : i32
    %2 = arith.andi %0, %1 : i1
    %3 = arith.extui %2 : i1 to i32
    %c0_i32_1 = arith.constant 0 : i32
    %4 = arith.cmpi ne, %3, %c0_i32_1 : i32
    scf.if %4 {
      %cst = arith.constant 0.000000e+00 : f32
      %16 = vector.broadcast %cst : f32 to vector<1x256xf32>
      %c0 = arith.constant 0 : index
      %c0_8 = arith.constant 0 : index
      %17 = vector.load %arg7[%c0, %c0_8] : memref<1x256xf32, #tpu.memory_space<vmem>>, vector<1x256xf32>
      tpu.vector_store %arg7[%c0, %c0_8], %16 {strides = array<i32>} : memref<1x256xf32, #tpu.memory_space<vmem>>, vector<1x256xf32>,
      %cst_9 = arith.constant 0.000000e+00 : f32
      %18 = vector.broadcast %cst_9 : f32 to vector<1x256xf32>
      %c0_10 = arith.constant 0 : index
      %c0_11 = arith.constant 0 : index
      %19 = vector.load %arg8[%c0_10, %c0_11] : memref<1x256xf32, #tpu.memory_space<vmem>>, vector<1x256xf32>
      tpu.vector_store %arg8[%c0_10, %c0_11], %18 {strides = array<i32>} : memref<1x256xf32, #tpu.memory_space<vmem>>, vector<1x256xf32>,
    } else {
    }
    %c0_i32_2 = arith.constant 0 : i32
    %5 = arith.cmpi eq, %arg0, %c0_i32_2 : i32
    %6 = arith.extui %5 : i1 to i32
    %c0_i32_3 = arith.constant 0 : i32
    %7 = arith.cmpi ne, %6, %c0_i32_3 : i32
    scf.if %7 {
      %c0 = arith.constant 0 : index
      %c0_8 = arith.constant 0 : index
      %c0_9 = arith.constant 0 : index
      %16 = vector.load %arg2[%c0, %c0_8, %c0_9] : memref<8x64x64xf32, #tpu.memory_space<vmem>>, vector<8x64x64xf32>
      %17 = vector.extract_strided_slice %16 {offsets = [0, 0, 0], sizes = [8, 64, 8], strides = [1, 1, 1]} : vector<8x64x64xf32> to vector<8x64x8xf32>
      %18 = vector.extract_strided_slice %16 {offsets = [0, 0, 8], sizes = [8, 64, 8], strides = [1, 1, 1]} : vector<8x64x64xf32> to vector<8x64x8xf32>
      %19 = arith.maximumf %17, %18 : vector<8x64x8xf32>
      %20 = vector.extract_strided_slice %16 {offsets = [0, 0, 16], sizes = [8, 64, 8], strides = [1, 1, 1]} : vector<8x64x64xf32> to vector<8x64x8xf32>
      %21 = arith.maximumf %19, %20 : vector<8x64x8xf32>
      %22 = vector.extract_strided_slice %16 {offsets = [0, 0, 24], sizes = [8, 64, 8], strides = [1, 1, 1]} : vector<8x64x64xf32> to vector<8x64x8xf32>
      %23 = arith.maximumf %21, %22 : vector<8x64x8xf32>
      %24 = vector.extract_strided_slice %23 {offsets = [0, 0, 0], sizes = [8, 64, 4], strides = [1, 1, 1]} : vector<8x64x8xf32> to vector<8x64x4xf32>
      %cst = arith.constant dense<0xFF800000> : vector<8x64xf32>
      %25 = vector.multi_reduction <maximumf>, %24, %cst [2] : vector<8x64x4xf32> to vector<8x64xf32>
      %26 = vector.extract_strided_slice %23 {offsets = [0, 0, 4], sizes = [8, 64, 4], strides = [1, 1, 1]} : vector<8x64x8xf32> to vector<8x64x4xf32>
      %cst_10 = arith.constant dense<0xFF800000> : vector<8x64xf32>
      %27 = vector.multi_reduction <maximumf>, %26, %cst_10 [2] : vector<8x64x4xf32> to vector<8x64xf32>
      %28 = vector.extract_strided_slice %16 {offsets = [0, 0, 32], sizes = [8, 64, 8], strides = [1, 1, 1]} : vector<8x64x64xf32> to vector<8x64x8xf32>
      %29 = vector.extract_strided_slice %16 {offsets = [0, 0, 40], sizes = [8, 64, 8], strides = [1, 1, 1]} : vector<8x64x64xf32> to vector<8x64x8xf32>
      %30 = arith.maximumf %28, %29 : vector<8x64x8xf32>
      %31 = vector.extract_strided_slice %16 {offsets = [0, 0, 48], sizes = [8, 64, 8], strides = [1, 1, 1]} : vector<8x64x64xf32> to vector<8x64x8xf32>
      %32 = arith.maximumf %30, %31 : vector<8x64x8xf32>
      %33 = vector.extract_strided_slice %16 {offsets = [0, 0, 56], sizes = [8, 64, 8], strides = [1, 1, 1]} : vector<8x64x64xf32> to vector<8x64x8xf32>
      %34 = arith.maximumf %32, %33 : vector<8x64x8xf32>
      %35 = vector.extract_strided_slice %34 {offsets = [0, 0, 0], sizes = [8, 64, 4], strides = [1, 1, 1]} : vector<8x64x8xf32> to vector<8x64x4xf32>
      %cst_11 = arith.constant dense<0xFF800000> : vector<8x64xf32>
      %36 = vector.multi_reduction <maximumf>, %35, %cst_11 [2] : vector<8x64x4xf32> to vector<8x64xf32>
      %37 = vector.extract_strided_slice %34 {offsets = [0, 0, 4], sizes = [8, 64, 4], strides = [1, 1, 1]} : vector<8x64x8xf32> to vector<8x64x4xf32>
      %cst_12 = arith.constant dense<0xFF800000> : vector<8x64xf32>
      %38 = vector.multi_reduction <maximumf>, %37, %cst_12 [2] : vector<8x64x4xf32> to vector<8x64xf32>
      %39 = tpu.concatenate %25, %27, %36, %38 in 1 : vector<8x64xf32>, vector<8x64xf32>, vector<8x64xf32>, vector<8x64xf32> -> vector<8x256xf32>
      %40 = arith.index_cast %arg1 : i32 to index
      %c0_13 = arith.constant 0 : index
      %c0_14 = arith.constant 0 : index
      %41 = vector.load %arg6[%40, %c0_13, %c0_14] : memref<2x8x256xf32, #tpu.memory_space<vmem>>, vector<1x8x256xf32>
      %42 = vector.shape_cast %41 : vector<1x8x256xf32> to vector<8x256xf32>
      %43 = vector.shape_cast %39 : vector<8x256xf32> to vector<1x8x256xf32>
      tpu.vector_store %arg6[%40, %c0_13, %c0_14], %43 {strides = array<i32>} : memref<2x8x256xf32, #tpu.memory_space<vmem>>, vector<1x8x256xf32>,
      %c0_15 = arith.constant 0 : index
      %c0_16 = arith.constant 0 : index
      %44 = vector.load %arg7[%c0_15, %c0_16] : memref<1x256xf32, #tpu.memory_space<vmem>>, vector<1x256xf32>
      %cst_17 = arith.constant dense<0.000000e+00> : vector<256xf32>
      %45 = vector.multi_reduction <add>, %39, %cst_17 [0] : vector<8x256xf32> to vector<256xf32>
      %46 = vector.shape_cast %45 : vector<256xf32> to vector<1x256xf32>
      %47 = arith.addf %44, %46 : vector<1x256xf32>
      %c0_18 = arith.constant 0 : index
      %c0_19 = arith.constant 0 : index
      %48 = vector.load %arg7[%c0_18, %c0_19] : memref<1x256xf32, #tpu.memory_space<vmem>>, vector<1x256xf32>
      tpu.vector_store %arg7[%c0_18, %c0_19], %47 {strides = array<i32>} : memref<1x256xf32, #tpu.memory_space<vmem>>, vector<1x256xf32>,
      %c0_20 = arith.constant 0 : index
      %c0_21 = arith.constant 0 : index
      %49 = vector.load %arg8[%c0_20, %c0_21] : memref<1x256xf32, #tpu.memory_space<vmem>>, vector<1x256xf32>
      %50 = arith.mulf %39, %39 : vector<8x256xf32>
      %cst_22 = arith.constant dense<0.000000e+00> : vector<256xf32>
      %51 = vector.multi_reduction <add>, %50, %cst_22 [0] : vector<8x256xf32> to vector<256xf32>
      %52 = vector.shape_cast %51 : vector<256xf32> to vector<1x256xf32>
      %53 = arith.addf %49, %52 : vector<1x256xf32>
      %c0_23 = arith.constant 0 : index
      %c0_24 = arith.constant 0 : index
      %54 = vector.load %arg8[%c0_23, %c0_24] : memref<1x256xf32, #tpu.memory_space<vmem>>, vector<1x256xf32>
      tpu.vector_store %arg8[%c0_23, %c0_24], %53 {strides = array<i32>} : memref<1x256xf32, #tpu.memory_space<vmem>>, vector<1x256xf32>,
    } else {
    }
    %c1_i32 = arith.constant 1 : i32
    %8 = arith.cmpi eq, %arg0, %c1_i32 : i32
    %c0_i32_4 = arith.constant 0 : i32
    %9 = arith.cmpi eq, %arg1, %c0_i32_4 : i32
    %10 = arith.andi %8, %9 : i1
    %11 = arith.extui %10 : i1 to i32
    %c0_i32_5 = arith.constant 0 : i32
    %12 = arith.cmpi ne, %11, %c0_i32_5 : i32
    scf.if %12 {
      %c0 = arith.constant 0 : index
      %c0_8 = arith.constant 0 : index
      %16 = vector.load %arg7[%c0, %c0_8] : memref<1x256xf32, #tpu.memory_space<vmem>>, vector<1x64xf32>
      %c0_9 = arith.constant 0 : index
      %c0_10 = arith.constant 0 : index
      %17 = vector.load %arg8[%c0_9, %c0_10] : memref<1x256xf32, #tpu.memory_space<vmem>>, vector<1x64xf32>
      %c0_11 = arith.constant 0 : index
      %c64 = arith.constant 64 : index
      %18 = vector.load %arg7[%c0_11, %c64] : memref<1x256xf32, #tpu.memory_space<vmem>>, vector<1x64xf32>
      %19 = arith.addf %16, %18 : vector<1x64xf32>
      %c0_12 = arith.constant 0 : index
      %c64_13 = arith.constant 64 : index
      %20 = vector.load %arg8[%c0_12, %c64_13] : memref<1x256xf32, #tpu.memory_space<vmem>>, vector<1x64xf32>
      %21 = arith.addf %17, %20 : vector<1x64xf32>
      %c0_14 = arith.constant 0 : index
      %c128 = arith.constant 128 : index
      %22 = vector.load %arg7[%c0_14, %c128] : memref<1x256xf32, #tpu.memory_space<vmem>>, vector<1x64xf32>
      %23 = arith.addf %19, %22 : vector<1x64xf32>
      %c0_15 = arith.constant 0 : index
      %c128_16 = arith.constant 128 : index
      %24 = vector.load %arg8[%c0_15, %c128_16] : memref<1x256xf32, #tpu.memory_space<vmem>>, vector<1x64xf32>
      %25 = arith.addf %21, %24 : vector<1x64xf32>
      %c0_17 = arith.constant 0 : index
      %c192 = arith.constant 192 : index
      %26 = vector.load %arg7[%c0_17, %c192] : memref<1x256xf32, #tpu.memory_space<vmem>>, vector<1x64xf32>
      %27 = arith.addf %23, %26 : vector<1x64xf32>
      %c0_18 = arith.constant 0 : index
      %c192_19 = arith.constant 192 : index
      %28 = vector.load %arg8[%c0_18, %c192_19] : memref<1x256xf32, #tpu.memory_space<vmem>>, vector<1x64xf32>
      %29 = arith.addf %25, %28 : vector<1x64xf32>
      %cst = arith.constant 1.562500e-02 : f32
      %30 = vector.broadcast %cst : f32 to vector<1x64xf32>
      %31 = arith.mulf %27, %30 : vector<1x64xf32>
      %cst_20 = arith.constant 1.562500e-02 : f32
      %32 = vector.broadcast %cst_20 : f32 to vector<1x64xf32>
      %33 = arith.mulf %29, %32 : vector<1x64xf32>
      %34 = arith.mulf %31, %31 : vector<1x64xf32>
      %35 = arith.subf %33, %34 : vector<1x64xf32>
      %cst_21 = arith.constant 0.000000e+00 : f32
      %36 = vector.broadcast %cst_21 : f32 to vector<1x64xf32>
      %37 = arith.maximumf %35, %36 : vector<1x64xf32>
      %cst_22 = arith.constant 9.99999974E-6 : f32
      %38 = vector.broadcast %cst_22 : f32 to vector<1x64xf32>
      %39 = arith.addf %37, %38 : vector<1x64xf32>
      %40 = math.rsqrt %39 : vector<1x64xf32>
      %41 = tpu.concatenate %31, %31, %31, %31 in 1 : vector<1x64xf32>, vector<1x64xf32>, vector<1x64xf32>, vector<1x64xf32> -> vector<1x256xf32>
      %c0_23 = arith.constant 0 : index
      %c0_24 = arith.constant 0 : index
      %42 = vector.load %arg9[%c0_23, %c0_24] : memref<2x256xf32, #tpu.memory_space<vmem>>, vector<1x256xf32>
      tpu.vector_store %arg9[%c0_23, %c0_24], %41 {strides = array<i32>} : memref<2x256xf32, #tpu.memory_space<vmem>>, vector<1x256xf32>,
      %43 = tpu.concatenate %40, %40, %40, %40 in 1 : vector<1x64xf32>, vector<1x64xf32>, vector<1x64xf32>, vector<1x64xf32> -> vector<1x256xf32>
      %c1 = arith.constant 1 : index
      %c0_25 = arith.constant 0 : index
      %44 = vector.load %arg9[%c1, %c0_25] : memref<2x256xf32, #tpu.memory_space<vmem>>, vector<1x256xf32>
      tpu.vector_store %arg9[%c1, %c0_25], %43 {strides = array<i32>} : memref<2x256xf32, #tpu.memory_space<vmem>>, vector<1x256xf32>,
    } else {
    }
    %c1_i32_6 = arith.constant 1 : i32
    %13 = arith.cmpi eq, %arg0, %c1_i32_6 : i32
    %14 = arith.extui %13 : i1 to i32
    %c0_i32_7 = arith.constant 0 : i32
    %15 = arith.cmpi ne, %14, %c0_i32_7 : i32
    scf.if %15 {
      %16 = arith.index_cast %arg1 : i32 to index
      %c0 = arith.constant 0 : index
      %c0_8 = arith.constant 0 : index
      %17 = vector.load %arg6[%16, %c0, %c0_8] : memref<2x8x256xf32, #tpu.memory_space<vmem>>, vector<1x8x256xf32>
      %18 = vector.shape_cast %17 : vector<1x8x256xf32> to vector<8x256xf32>
      %c0_9 = arith.constant 0 : index
      %c0_10 = arith.constant 0 : index
      %19 = vector.load %arg9[%c0_9, %c0_10] : memref<2x256xf32, #tpu.memory_space<vmem>>, vector<1x256xf32>
      %20 = vector.broadcast %19 : vector<1x256xf32> to vector<8x256xf32>
      %21 = arith.subf %18, %20 : vector<8x256xf32>
      %c1 = arith.constant 1 : index
      %c0_11 = arith.constant 0 : index
      %22 = vector.load %arg9[%c1, %c0_11] : memref<2x256xf32, #tpu.memory_space<vmem>>, vector<1x256xf32>
      %23 = vector.broadcast %22 : vector<1x256xf32> to vector<8x256xf32>
      %24 = arith.mulf %21, %23 : vector<8x256xf32>
      %25 = arith.truncf %24 : vector<8x256xf32> to vector<8x256xbf16>
      %c0_12 = arith.constant 0 : index
      %c0_13 = arith.constant 0 : index
      %26 = vector.load %arg3[%c0_12, %c0_13] : memref<256x128xbf16, #tpu.memory_space<vmem>>, vector<256x128xbf16>
      %cst = arith.constant dense<0.000000e+00> : vector<8x128xf32>
      %27 = tpu.matmul %25, %26, %cst {dimension_numbers = #tpu.dot_dimension_numbers<[1], [0], [0], [1], [0, 0, 1, 1], [], []>} : vector<8x256xbf16>, vector<256x128xbf16>, vector<8x128xf32> -> vector<8x128xf32>
      %c0_14 = arith.constant 0 : index
      %c0_15 = arith.constant 0 : index
      %28 = vector.load %arg4[%c0_14, %c0_15] : memref<1x128xf32, #tpu.memory_space<vmem>>, vector<1x128xf32>
      %29 = vector.broadcast %28 : vector<1x128xf32> to vector<8x128xf32>
      %30 = arith.addf %27, %29 : vector<8x128xf32>
      %c0_16 = arith.constant 0 : index
      %c0_17 = arith.constant 0 : index
      %31 = vector.load %arg5[%c0_16, %c0_17] : memref<8x128xf32, #tpu.memory_space<vmem>>, vector<8x128xf32>
      tpu.vector_store %arg5[%c0_16, %c0_17], %30 {strides = array<i32>} : memref<8x128xf32, #tpu.memory_space<vmem>>, vector<8x128xf32>,
    } else {
    }
    return
  }
  func.func @transform_0(%arg0: i32, %arg1: i32) -> (i32, i32, i32) {
    %c1_i32 = arith.constant 1 : i32
    %0 = arith.subi %c1_i32, %arg0 : i32
    %1 = arith.muli %arg1, %0 : i32
    %c1_i32_0 = arith.constant 1 : i32
    %2 = arith.muli %c1_i32_0, %arg0 : i32
    %3 = arith.addi %1, %2 : i32
    %c0_i32 = arith.constant 0 : i32
    %c0_i32_1 = arith.constant 0 : i32
    %c0_i32_2 = arith.constant 0 : i32
    return %3, %c0_i32, %c0_i32_1 : i32, i32, i32
  }
  func.func @transform_1(%arg0: i32, %arg1: i32) -> (i32, i32) {
    %c0_i32 = arith.constant 0 : i32
    %c0_i32_0 = arith.constant 0 : i32
    %c0_i32_1 = arith.constant 0 : i32
    return %c0_i32, %c0_i32_0 : i32, i32
  }
  func.func @transform_2(%arg0: i32, %arg1: i32) -> (i32, i32) {
    %c0_i32 = arith.constant 0 : i32
    %c0_i32_0 = arith.constant 0 : i32
    %c0_i32_1 = arith.constant 0 : i32
    return %c0_i32, %c0_i32_0 : i32, i32
  }
  func.func @transform_3(%arg0: i32, %arg1: i32) -> (i32, i32) {
    %0 = arith.muli %arg0, %arg1 : i32
    %c0_i32 = arith.constant 0 : i32
    %c0_i32_0 = arith.constant 0 : i32
    return %0, %c0_i32 : i32, i32
  }
}

</mosaic_0001>

<bundles_post_ra>
// kernel: classifier_forward.1
= control target key start
LH: loop header
LB: loop body
LE: loop exit
PB: predicated region body
PF: predicated region fallthrough
CT: control target
= control target key end

     0   :  { %8 = vsyncpa [#allocation7], 0  ;;  %s6933_s0 = inlined_call_operand.vmem [shape: f32[16,64,64], index: 0, kind: input, shape index: {}]   ;;  %s6934_s1 = inlined_call_operand.vmem [shape: bf16[256,128], index: 1, kind: input, shape index: {}]   ;;  %s6935_s2 = inlined_call_operand.vmem [shape: f32[1,128], index: 2, kind: input, shape index: {}]   ;;  %s6936_s3 = inlined_call_operand.hbm [shape: f32[16,128], index: 3, kind: output, shape index: {}]  }
   0x1   :  { %10 = vsyncpa [#allocation7 + $0x1], 0  ;;  %s4262_s12 = smov 0   ;;  %s4264_s13 = smov 0  }
   0x2   :  { %s4266_s14 = smov 0   ;;  %s4268_s15 = smov 0  }
   0x3   :  { %s4270_s16 = smov 0   ;;  %s4272_s17 = smov 0  }
   0x4   :  { %s4274_s18 = smov 0   ;;  %s4276_s19 = smov 0  }
   0x5 LB: > { %s3950_s20 = sadd.s32 4294967295, %s4232_s19   ;;  %s3951_s21 = sadd.s32 4294967294, %s4232_s19   ;;  %s4232_s19 = sphi %s4276_s19, %s16_s19   ;;  %s4228_s18 = sphi %s4274_s18, %s7562_s18   ;;  %s4224_s17 = sphi %s4272_s17, %s7561_s17   ;;  %s4220_s16 = sphi %s4270_s16, %s7560_s16   ;;  %s4216_s15 = sphi %s4268_s15, %s7559_s15   ;;  %s4212_s14 = sphi %s4266_s14, %s7558_s14   ;;  %s4208_s13 = sphi %s4264_s13, %s7557_s13   ;;  %s4204_s12 = sphi %s4262_s12, %s7556_s12  }
   0x6   : > { %s25_s22 = sadd.s32 1, %s4224_s17  ;;  %s28_s23 = sadd.s32 1, %s4228_s18 }
   0x7   : > { %p26_p0 = scmp.ge.s32.totalorder %s25_s22, 2  ;;  %s106_s24 = smul.u32 %s4224_s17, %s4228_s18 }
   0x8   : > { %p121_p1 = scmp.ne.s32.totalorder %s4212_s14, %s4208_s13  ;;  %p122_p2 = scmp.eq.s32.totalorder %s3950_s20, 3 }
   0x9   : > { %s7564_s22 = smov (%p26_p0, %s25_s22), 0  ;;  %s7566_s23 = smov (!%p26_p0, %s28_s23), %s4228_s18 }
   0xa   : > { %p127_p3 = scmp.ne.s32.totalorder %s4208_s13, %s4204_s12  ;;  %p30_p4 = scmp.ge.s32.totalorder %s7566_s23, 2 }
   0xb   : > { %p128_p5 = scmp.eq.s32.totalorder %s3951_s21, 3  ;;  %p4315_p6 = por %p122_p2, %p121_p1 }
   0xc   : > { %p3954_p7 = scmp.ge.s32.totalorder %s4232_s19, 1  ;;  %s7568_s23 = smov (%p30_p4, %s7566_s23), 0 }
   0xd   : > { %p4322_p8 = por %p128_p5, %p127_p3  ;;  %p168_p9 = scmp.lt.s32.totalorder %s4232_s19, 5 }
   0xe   : > { %s107_s27 = smul.u32 %s7568_s23, %s7564_s22  ;;  %s111_s29 = sadd.s32 1, %s4212_s14 }
   0xf   : > { %p169_p10 = pnand %p3954_p7, %p168_p9 }
  0x10   : > { %s108_s28 = ssub.s32 %s106_s24, %s107_s27  ;;  %s193_s4 = sand.u32 (!%p169_p10), 1, %s4208_s13  }
  0x11   : > { %p109_p11 = scmp.eq.s32.totalorder %s108_s28, 0  ;;  %172 = sbr.rel (%p169_p10) target bundleno = 1677 (0x68d), region = 32 }
  0x12   : > { %s196_s5 = ssub.s32 (!%p169_p10), 1, %s4220_s16  ;;  %s4337_s6 = sshll.u32 (!%p169_p10), %s193_s4, 3 }
  0x13   : > { %s4331_s30 = scalar_select %p109_p11, %s4212_s14, %s111_s29  }
  0x14   : > { %s197_s7 = smul.u32 (!%p169_p10), %s4216_s15, %s196_s5  ;;  %p211_p12 = scmp.eq.s32.totalorder (!%p169_p10), %s4220_s16, 0 }
  0x15   : > { %p212_p13 = scmp.eq.s32.totalorder (!%p169_p10), %s4216_s15, 0  ;;  %s195_s24 = scalar_lea.vmem (!%p169_p10), [#allocation6], %s4337_s6 }
  0x16   : > { %s198_s8 = sadd.s32 %s4220_s16, %s197_s7 }
  0x17   : > { %s3956_s9 = sshll.u32 %s198_s8, 3  ;;  %p213_p1 = pnand %p212_p13, %p211_p12 }
  0x18   : > { %p200_p0 = scmp.lt.s32.totalorder %s3956_s9, 15 }
  0x19   : > { %216 = sbr.rel (%p213_p1) target bundleno = 34 (0x22), region = 36 }
  0x1a   : > { %s7570_s9 = smov (!%p200_p0, %s3956_s9), 15 }
  0x1b   : > { %s3986_s10 = sshll.u32 %s7570_s9, 6 }
  0x1c   : > { %s4348_s21 = scalar_lea.vmem %s6933_s0, %s3986_s10 }
  0x1e   : > { %v217_v0 = vlaneseq  ;;  %v4234_v1 = vmov 0.0  }
  0x20   : > { %vm219_vm0 = vcmp.lt.s32.totalorder %v217_v0, 256 }
  0x21   : > { %221 = vst.msk [vmem:[#allocation3] sm:$0x3] %vm219_vm0, %v4234_v1  ;;  %222 = vst.msk [vmem:[#allocation4] sm:$0x3] %vm219_vm0, %v4234_v1 }
  0x22 PF: > { %p3959_p2 = scmp.ne.s32.totalorder %s4220_s16, 0 }
  0x24   : > { %225 = sbr.rel (%p3959_p2) target bundleno = 1131 (0x46b), region = 40 }
  0x29   : > { %v4353_v2 = vld [vmem:[%s4348_s21 + $0x10] sm:$0xff]  ;;  %v4356_v3 = vld [vmem:[%s4348_s21] sm:$0xff]  ;;  %s4235_s27 = smov 120   ;;  %v4363_v4 = vld [vmem:[%s4348_s21 + $0x18] sm:$0xff]  ;;  %s4236_s28 = smov 112   ;;  %vm1122_vm1 = vcmask 31744  }
  0x2a   : > { %7065 = vst [vmem:[#allocation9_spill] sm:$0xff] %v4356_v3  ;;  %358 = vrot.lane.b32.xlu1 %v4353_v2, %s4235_s27  ;;  %354 = vrot.lane.b32.xlu0 %v4356_v3, %s4235_s27  ;;  %v4366_v5 = vld [vmem:[%s4348_s21 + $0x8] sm:$0xff]  ;;  %v4376_v7 = vld [vmem:[%s4348_s21 + $0x20] sm:$0xff]  ;;  %s4237_s29 = smov 104   ;;  %vm1315_vm2 = vcmask 64544   ;;  %vm1969_vm3 = vcmask 130112  }
  0x2b   : > { %7066 = vst [vmem:[#allocation10_spill] sm:$0xff] %v4366_v5  ;;  %v4373_v6 = vld [vmem:[%s4348_s21 + $0x28] sm:$0xff]  ;;  %v4383_v8 = vld [vmem:[%s4348_s21 + $0x38] sm:$0xff]  ;;  %v4386_v9 = vld [vmem:[%s4348_s21 + $0x30] sm:$0xff]  ;;  %vm7036_vm4 = vcmask 195712   ;;  %vm7035_vm5 = vcmask 261312  }
  0x2c   : > { %v4393_v10 = vld [vmem:[%s4348_s21 + $0x48] sm:$0xff]  ;;  %v4396_v11 = vld [vmem:[%s4348_s21 + $0x40] sm:$0xff]  ;;  %v4403_v12 = vld [vmem:[%s4348_s21 + $0x58] sm:$0xff]  ;;  %vm7034_vm6 = vcmask 326912   ;;  %vm7033_vm7 = vcmask 392512   ;;  %vm7029_vm8 = vcmask 458112  }
  0x2d   : > { %v4406_v13 = vld [vmem:[%s4348_s21 + $0x50] sm:$0xff]  ;;  %v4413_v14 = vld [vmem:[%s4348_s21 + $0x68] sm:$0xff]  ;;  %v4416_v15 = vld [vmem:[%s4348_s21 + $0x60] sm:$0xff]  ;;  %vm7032_vm9 = vcmask 523712   ;;  %vm2286_vm10 = vcmask 1041409   ;;  %vm2288_vm11 = vcmask 1042434  }
  0x2e   : > { %360 = vrot.lane.b32.xlu1 %v4363_v4, %s4235_s27  ;;  %356 = vrot.lane.b32.xlu0 %v4366_v5, %s4235_s27  ;;  %v4423_v16 = vld [vmem:[%s4348_s21 + $0x78] sm:$0xff]  ;;  %v4426_v17 = vld [vmem:[%s4348_s21 + $0x70] sm:$0xff]  ;;  %vm7055_vm12 = vcmask 1043459   ;;  %vm2292_vm13 = vcmask 1044484   ;;  %vm2294_vm14 = vcmask 1045509   ;;  %vm2296_vm15 = vcmask 1046534  }
  0x2f   : > { %v4433_v18 = vld [vmem:[%s4348_s21 + $0x88] sm:$0xff]  ;;  %v4436_v19 = vld [vmem:[%s4348_s21 + $0x80] sm:$0xff]  ;;  %v4443_v20 = vld [vmem:[%s4348_s21 + $0x98] sm:$0xff]  ;;  %vm1508_vm0 = vcmask 294144   ;;  %s3987_s5 = sshll.u32 %s4216_s15, 4 }
  0x30   : > { %v4446_v21 = vld [vmem:[%s4348_s21 + $0x90] sm:$0xff]  ;;  %v4453_v22 = vld [vmem:[%s4348_s21 + $0xa8] sm:$0xff]  ;;  %v4456_v23 = vld [vmem:[%s4348_s21 + $0xa0] sm:$0xff]  ;;  %s6412_s7 = scalar_lea.vmem [#allocation2], %s3987_s5 }
  0x31   : > { %v4463_v24 = vld [vmem:[%s4348_s21 + $0xb8] sm:$0xff]  ;;  %v4466_v25 = vld [vmem:[%s4348_s21 + $0xb0] sm:$0xff]  ;;  %v4473_v26 = vld [vmem:[%s4348_s21 + $0xc8] sm:$0xff] }
  0x32   : > { %364 = vrot.lane.b32.xlu1 %v4373_v6, %s4235_s27  ;;  %362 = vrot.lane.b32.xlu0 %v4376_v7, %s4235_s27  ;;  %v4476_v27 = vld [vmem:[%s4348_s21 + $0xc0] sm:$0xff]  ;;  %v4483_v28 = vld [vmem:[%s4348_s21 + $0xd8] sm:$0xff] }
  0x33   : > { %v4486_v29 = vld [vmem:[%s4348_s21 + $0xd0] sm:$0xff]  ;;  %v4493_v30 = vld [vmem:[%s4348_s21 + $0xe8] sm:$0xff]  ;;  %v4496_v31 = vld [vmem:[%s4348_s21 + $0xe0] sm:$0xff] }
  0x34   : > { %v4503_v32 = vld [vmem:[%s4348_s21 + $0xf8] sm:$0xff]  ;;  %v4506_v33 = vld [vmem:[%s4348_s21 + $0xf0] sm:$0xff]  ;;  %v4513_v34 = vld [vmem:[%s4348_s21 + $0x108] sm:$0xff] }
  0x35   : > { %v4516_v35 = vld [vmem:[%s4348_s21 + $0x100] sm:$0xff]  ;;  %v4523_v36 = vld [vmem:[%s4348_s21 + $0x118] sm:$0xff]  ;;  %v4526_v37 = vld [vmem:[%s4348_s21 + $0x110] sm:$0xff] }
  0x36   : > { %368 = vrot.lane.b32.xlu1 %v4383_v8, %s4235_s27  ;;  %366 = vrot.lane.b32.xlu0 %v4386_v9, %s4235_s27  ;;  %v4533_v38 = vld [vmem:[%s4348_s21 + $0x128] sm:$0xff]  ;;  %v4536_v39 = vld [vmem:[%s4348_s21 + $0x120] sm:$0xff] }
  0x37   : > { %v4543_v40 = vld [vmem:[%s4348_s21 + $0x138] sm:$0xff]  ;;  %v4546_v41 = vld [vmem:[%s4348_s21 + $0x130] sm:$0xff]  ;;  %v4553_v42 = vld [vmem:[%s4348_s21 + $0x148] sm:$0xff] }
  0x38   : > { %v4556_v43 = vld [vmem:[%s4348_s21 + $0x140] sm:$0xff]  ;;  %v4563_v44 = vld [vmem:[%s4348_s21 + $0x158] sm:$0xff]  ;;  %v4566_v45 = vld [vmem:[%s4348_s21 + $0x150] sm:$0xff] }
  0x39   : > { %v4573_v46 = vld [vmem:[%s4348_s21 + $0x168] sm:$0xff]  ;;  %v4576_v47 = vld [vmem:[%s4348_s21 + $0x160] sm:$0xff]  ;;  %v4583_v48 = vld [vmem:[%s4348_s21 + $0x178] sm:$0xff] }
  0x3a   : > { %372 = vrot.lane.b32.xlu1 %v4393_v10, %s4235_s27  ;;  %370 = vrot.lane.b32.xlu0 %v4396_v11, %s4235_s27  ;;  %v4586_v49 = vld [vmem:[%s4348_s21 + $0x170] sm:$0xff]  ;;  %v4593_v50 = vld [vmem:[%s4348_s21 + $0x188] sm:$0xff] }
  0x3b   : > { %v4596_v51 = vld [vmem:[%s4348_s21 + $0x180] sm:$0xff]  ;;  %v4603_v52 = vld [vmem:[%s4348_s21 + $0x198] sm:$0xff]  ;;  %v4606_v53 = vld [vmem:[%s4348_s21 + $0x190] sm:$0xff] }
  0x3c   : > { %v4613_v54 = vld [vmem:[%s4348_s21 + $0x1a8] sm:$0xff]  ;;  %v4616_v55 = vld [vmem:[%s4348_s21 + $0x1a0] sm:$0xff]  ;;  %v4623_v56 = vld [vmem:[%s4348_s21 + $0x1b8] sm:$0xff] }
  0x3d   : > { %7067 = vst [vmem:[#allocation11_spill] sm:$0xff] %v4613_v54  ;;  %7068 = vst [vmem:[#allocation12_spill] sm:$0xff] %v4616_v55  ;;  %v4626_v57 = vld [vmem:[%s4348_s21 + $0x1b0] sm:$0xff]  ;;  %v4633_v58 = vld [vmem:[%s4348_s21 + $0x1c8] sm:$0xff] }
  0x3e   : > { %376 = vrot.lane.b32.xlu1 %v4403_v12, %s4235_s27  ;;  %374 = vrot.lane.b32.xlu0 %v4406_v13, %s4235_s27  ;;  %7069 = vst [vmem:[#allocation13_spill] sm:$0xff] %v4623_v56  ;;  %7070 = vst [vmem:[#allocation14_spill] sm:$0xff] %v4626_v57  ;;  %v4636_v59 = vld [vmem:[%s4348_s21 + $0x1c0] sm:$0xff]  ;;  %v4643_v60 = vld [vmem:[%s4348_s21 + $0x1d8] sm:$0xff] }
  0x3f   : > { %7071 = vst [vmem:[#allocation15_spill] sm:$0xff] %v4633_v58  ;;  %7072 = vst [vmem:[#allocation16_spill] sm:$0xff] %v4636_v59  ;;  %v4646_v61 = vld [vmem:[%s4348_s21 + $0x1d0] sm:$0xff]  ;;  %v4657_v0 = vld [vmem:[%s4348_s21 + $0x1e8] sm:$0xff] }
  0x40   : > { %7073 = vst [vmem:[#allocation17_spill] sm:$0xff] %v4643_v60  ;;  %7074 = vst [vmem:[#allocation18_spill] sm:$0xff] %v4646_v61  ;;  %v4660_v1 = vld [vmem:[%s4348_s21 + $0x1e0] sm:$0xff] }
  0x42   : > { %380 = vrot.lane.b32.xlu1 %v4413_v14, %s4235_s27  ;;  %378 = vrot.lane.b32.xlu0 %v4416_v15, %s4235_s27 }
  0x46   : > { %384 = vrot.lane.b32.xlu1 %v4423_v16, %s4235_s27  ;;  %382 = vrot.lane.b32.xlu0 %v4426_v17, %s4235_s27 }
  0x4a   : > { %388 = vrot.lane.b32.xlu1 %v4433_v18, %s4235_s27  ;;  %386 = vrot.lane.b32.xlu0 %v4436_v19, %s4235_s27 }
  0x4e   : > { %392 = vrot.lane.b32.xlu1 %v4443_v20, %s4235_s27  ;;  %390 = vrot.lane.b32.xlu0 %v4446_v21, %s4235_s27 }
  0x52   : > { %396 = vrot.lane.b32.xlu1 %v4453_v22, %s4235_s27  ;;  %394 = vrot.lane.b32.xlu0 %v4456_v23, %s4235_s27 }
  0x56   : > { %400 = vrot.lane.b32.xlu1 %v4463_v24, %s4235_s27  ;;  %398 = vrot.lane.b32.xlu0 %v4466_v25, %s4235_s27 }
  0x5a   : > { %404 = vrot.lane.b32.xlu1 %v4473_v26, %s4235_s27  ;;  %402 = vrot.lane.b32.xlu0 %v4476_v27, %s4235_s27 }
  0x5e   : > { %408 = vrot.lane.b32.xlu1 %v4483_v28, %s4235_s27  ;;  %406 = vrot.lane.b32.xlu0 %v4486_v29, %s4235_s27 }
  0x62   : > { %412 = vrot.lane.b32.xlu1 %v4493_v30, %s4235_s27  ;;  %410 = vrot.lane.b32.xlu0 %v4496_v31, %s4235_s27 }
  0x66   : > { %416 = vrot.lane.b32.xlu1 %v4503_v32, %s4235_s27  ;;  %414 = vrot.lane.b32.xlu0 %v4506_v33, %s4235_s27 }
  0x6a   : > { %420 = vrot.lane.b32.xlu1 %v4513_v34, %s4235_s27  ;;  %418 = vrot.lane.b32.xlu0 %v4516_v35, %s4235_s27 }
  0x6e   : > { %424 = vrot.lane.b32.xlu1 %v4523_v36, %s4235_s27  ;;  %422 = vrot.lane.b32.xlu0 %v4526_v37, %s4235_s27 }
  0x72   : > { %428 = vrot.lane.b32.xlu1 %v4533_v38, %s4235_s27  ;;  %426 = vrot.lane.b32.xlu0 %v4536_v39, %s4235_s27 }
  0x76   : > { %432 = vrot.lane.b32.xlu1 %v4543_v40, %s4235_s27  ;;  %430 = vrot.lane.b32.xlu0 %v4546_v41, %s4235_s27 }
  0x7a   : > { %436 = vrot.lane.b32.xlu1 %v4553_v42, %s4235_s27  ;;  %434 = vrot.lane.b32.xlu0 %v4556_v43, %s4235_s27 }
  0x7e   : > { %440 = vrot.lane.b32.xlu1 %v4563_v44, %s4235_s27  ;;  %438 = vrot.lane.b32.xlu0 %v4566_v45, %s4235_s27 }
  0x82   : > { %444 = vrot.lane.b32.xlu1 %v4573_v46, %s4235_s27  ;;  %442 = vrot.lane.b32.xlu0 %v4576_v47, %s4235_s27 }
  0x86   : > { %448 = vrot.lane.b32.xlu1 %v4583_v48, %s4235_s27  ;;  %446 = vrot.lane.b32.xlu0 %v4586_v49, %s4235_s27 }
  0x8a   : > { %452 = vrot.lane.b32.xlu1 %v4593_v50, %s4235_s27  ;;  %450 = vrot.lane.b32.xlu0 %v4596_v51, %s4235_s27 }
  0x8e   : > { %456 = vrot.lane.b32.xlu1 %v4603_v52, %s4235_s27  ;;  %454 = vrot.lane.b32.xlu0 %v4606_v53, %s4235_s27 }
  0x92   : > { %460 = vrot.lane.b32.xlu1 %v4613_v54, %s4235_s27  ;;  %458 = vrot.lane.b32.xlu0 %v4616_v55, %s4235_s27 }
  0x96   : > { %464 = vrot.lane.b32.xlu1 %v4623_v56, %s4235_s27  ;;  %462 = vrot.lane.b32.xlu0 %v4626_v57, %s4235_s27 }
  0x9a   : > { %468 = vrot.lane.b32.xlu1 %v4633_v58, %s4235_s27  ;;  %466 = vrot.lane.b32.xlu0 %v4636_v59, %s4235_s27 }
  0x9c   : > { %v4648_v62 = vpop.permute.xlu1 %358  ;;  %v4650_v63 = vpop.permute.xlu0 %354 }
  0x9d   : > { %7075 = vst [vmem:[#allocation19_spill] sm:$0xff] %v4648_v62  ;;  %7076 = vst [vmem:[#allocation20_spill] sm:$0xff] %v4650_v63  ;;  %v4671_v62 = vld [vmem:[%s4348_s21 + $0x1f8] sm:$0xff]  ;;  %v4674_v63 = vld [vmem:[%s4348_s21 + $0x1f0] sm:$0xff] }
  0x9e   : > { %472 = vrot.lane.b32.xlu1 %v4643_v60, %s4235_s27  ;;  %470 = vrot.lane.b32.xlu0 %v4646_v61, %s4235_s27 }
  0xa0   : > { %v4662_v58 = vpop.permute.xlu1 %360  ;;  %v4664_v59 = vpop.permute.xlu0 %356 }
  0xa1   : > { %7077 = vst [vmem:[#allocation21_spill] sm:$0xff] %v4662_v58  ;;  %7078 = vst [vmem:[#allocation22_spill] sm:$0xff] %v4664_v59 }
  0xa2   : > { %476 = vrot.lane.b32.xlu1 %v4657_v0, %s4235_s27  ;;  %474 = vrot.lane.b32.xlu0 %v4660_v1, %s4235_s27 }
  0xa4   : > { %v4676_v60 = vpop.permute.xlu1 %364  ;;  %v4678_v61 = vpop.permute.xlu0 %362 }
  0xa5   : > { %7079 = vst [vmem:[#allocation23_spill] sm:$0xff] %v4676_v60  ;;  %7080 = vst [vmem:[#allocation24_spill] sm:$0xff] %v4678_v61 }
  0xa6   : > { %480 = vrot.lane.b32.xlu1 %v4671_v62, %s4235_s27  ;;  %478 = vrot.lane.b32.xlu0 %v4674_v63, %s4235_s27 }
  0xa8   : > { %v4684_v58 = vpop.permute.xlu1 %368  ;;  %v4686_v59 = vpop.permute.xlu0 %366 }
  0xa9   : > { %7081 = vst [vmem:[#allocation25_spill] sm:$0xff] %v4684_v58  ;;  %7082 = vst [vmem:[#allocation26_spill] sm:$0xff] %v4686_v59 }
  0xaa   : > { %612 = vrot.lane.b32.xlu1 %v4366_v5, %s4236_s28  ;;  %610 = vrot.lane.b32.xlu0 %v4356_v3, %s4236_s28 }
  0xac   : > { %v4692_v60 = vpop.permute.xlu1 %372  ;;  %v4694_v61 = vpop.permute.xlu0 %370 }
  0xad   : > { %7083 = vst [vmem:[#allocation27_spill] sm:$0xff] %v4692_v60  ;;  %7084 = vst [vmem:[#allocation28_spill] sm:$0xff] %v4694_v61 }
  0xae   : > { %616 = vrot.lane.b32.xlu1 %v4363_v4, %s4236_s28  ;;  %614 = vrot.lane.b32.xlu0 %v4353_v2, %s4236_s28 }
  0xb0   : > { %v4700_v58 = vpop.permute.xlu1 %376  ;;  %v4702_v59 = vpop.permute.xlu0 %374 }
  0xb1   : > { %7085 = vst [vmem:[#allocation29_spill] sm:$0xff] %v4700_v58  ;;  %7086 = vst [vmem:[#allocation30_spill] sm:$0xff] %v4702_v59 }
  0xb2   : > { %620 = vrot.lane.b32.xlu1 %v4373_v6, %s4236_s28  ;;  %618 = vrot.lane.b32.xlu0 %v4376_v7, %s4236_s28 }
  0xb4   : > { %v4708_v3 = vpop.permute.xlu1 %380  ;;  %v4710_v60 = vpop.permute.xlu0 %378 }
  0xb5   : > { %7087 = vst [vmem:[#allocation31_spill] sm:$0xff] %v4708_v3  ;;  %7088 = vst [vmem:[#allocation32_spill] sm:$0xff] %v4710_v60 }
  0xb6   : > { %624 = vrot.lane.b32.xlu1 %v4383_v8, %s4236_s28  ;;  %622 = vrot.lane.b32.xlu0 %v4386_v9, %s4236_s28 }
  0xb8   : > { %v4716_v61 = vpop.permute.xlu1 %384  ;;  %v4718_v58 = vpop.permute.xlu0 %382 }
  0xb9   : > { %7089 = vst [vmem:[#allocation33_spill] sm:$0xff] %v4716_v61  ;;  %7090 = vst [vmem:[#allocation34_spill] sm:$0xff] %v4718_v58 }
  0xba   : > { %628 = vrot.lane.b32.xlu1 %v4393_v10, %s4236_s28  ;;  %626 = vrot.lane.b32.xlu0 %v4396_v11, %s4236_s28 }
  0xbc   : > { %v4724_v59 = vpop.permute.xlu1 %388  ;;  %v4726_v3 = vpop.permute.xlu0 %386 }
  0xbd   : > { %7091 = vst [vmem:[#allocation35_spill] sm:$0xff] %v4724_v59  ;;  %7092 = vst [vmem:[#allocation36_spill] sm:$0xff] %v4726_v3 }
  0xbe   : > { %632 = vrot.lane.b32.xlu1 %v4403_v12, %s4236_s28  ;;  %630 = vrot.lane.b32.xlu0 %v4406_v13, %s4236_s28 }
  0xc0   : > { %v4732_v60 = vpop.permute.xlu1 %392  ;;  %v4734_v61 = vpop.permute.xlu0 %390 }
  0xc1   : > { %7093 = vst [vmem:[#allocation37_spill] sm:$0xff] %v4732_v60  ;;  %7094 = vst [vmem:[#allocation38_spill] sm:$0xff] %v4734_v61 }
  0xc2   : > { %636 = vrot.lane.b32.xlu1 %v4413_v14, %s4236_s28  ;;  %634 = vrot.lane.b32.xlu0 %v4416_v15, %s4236_s28 }
  0xc4   : > { %v4740_v58 = vpop.permute.xlu1 %396  ;;  %v4742_v59 = vpop.permute.xlu0 %394 }
  0xc5   : > { %7095 = vst [vmem:[#allocation39_spill] sm:$0xff] %v4740_v58  ;;  %7096 = vst [vmem:[#allocation40_spill] sm:$0xff] %v4742_v59 }
  0xc6   : > { %640 = vrot.lane.b32.xlu1 %v4423_v16, %s4236_s28  ;;  %638 = vrot.lane.b32.xlu0 %v4426_v17, %s4236_s28 }
  0xc8   : > { %v4748_v3 = vpop.permute.xlu1 %400  ;;  %v4750_v60 = vpop.permute.xlu0 %398 }
  0xc9   : > { %7097 = vst [vmem:[#allocation41_spill] sm:$0xff] %v4748_v3  ;;  %7098 = vst [vmem:[#allocation42_spill] sm:$0xff] %v4750_v60 }
  0xca   : > { %644 = vrot.lane.b32.xlu1 %v4433_v18, %s4236_s28  ;;  %642 = vrot.lane.b32.xlu0 %v4436_v19, %s4236_s28 }
  0xcc   : > { %v4756_v61 = vpop.permute.xlu1 %404  ;;  %v4758_v58 = vpop.permute.xlu0 %402 }
  0xcd   : > { %7099 = vst [vmem:[#allocation43_spill] sm:$0xff] %v4756_v61  ;;  %7100 = vst [vmem:[#allocation44_spill] sm:$0xff] %v4758_v58 }
  0xce   : > { %648 = vrot.lane.b32.xlu1 %v4443_v20, %s4236_s28  ;;  %646 = vrot.lane.b32.xlu0 %v4446_v21, %s4236_s28 }
  0xd0   : > { %v4764_v59 = vpop.permute.xlu1 %408  ;;  %v4766_v3 = vpop.permute.xlu0 %406 }
  0xd1   : > { %7101 = vst [vmem:[#allocation45_spill] sm:$0xff] %v4764_v59  ;;  %7102 = vst [vmem:[#allocation46_spill] sm:$0xff] %v4766_v3 }
  0xd2   : > { %652 = vrot.lane.b32.xlu1 %v4453_v22, %s4236_s28  ;;  %650 = vrot.lane.b32.xlu0 %v4456_v23, %s4236_s28 }
  0xd4   : > { %v4772_v60 = vpop.permute.xlu1 %412  ;;  %v4774_v61 = vpop.permute.xlu0 %410 }
  0xd5   : > { %7103 = vst [vmem:[#allocation47_spill] sm:$0xff] %v4772_v60  ;;  %7104 = vst [vmem:[#allocation48_spill] sm:$0xff] %v4774_v61 }
  0xd6   : > { %656 = vrot.lane.b32.xlu1 %v4463_v24, %s4236_s28  ;;  %654 = vrot.lane.b32.xlu0 %v4466_v25, %s4236_s28 }
  0xd8   : > { %v4780_v58 = vpop.permute.xlu1 %416  ;;  %v4782_v59 = vpop.permute.xlu0 %414 }
  0xd9   : > { %7105 = vst [vmem:[#allocation49_spill] sm:$0xff] %v4780_v58  ;;  %7106 = vst [vmem:[#allocation50_spill] sm:$0xff] %v4782_v59 }
  0xda   : > { %660 = vrot.lane.b32.xlu1 %v4473_v26, %s4236_s28  ;;  %658 = vrot.lane.b32.xlu0 %v4476_v27, %s4236_s28 }
  0xdc   : > { %v4788_v3 = vpop.permute.xlu1 %420  ;;  %v4790_v60 = vpop.permute.xlu0 %418 }
  0xdd   : > { %7107 = vst [vmem:[#allocation51_spill] sm:$0xff] %v4788_v3  ;;  %7108 = vst [vmem:[#allocation52_spill] sm:$0xff] %v4790_v60 }
  0xde   : > { %664 = vrot.lane.b32.xlu1 %v4483_v28, %s4236_s28  ;;  %662 = vrot.lane.b32.xlu0 %v4486_v29, %s4236_s28 }
  0xe0   : > { %v4796_v61 = vpop.permute.xlu1 %424  ;;  %v4798_v58 = vpop.permute.xlu0 %422 }
  0xe1   : > { %7109 = vst [vmem:[#allocation53_spill] sm:$0xff] %v4796_v61  ;;  %7110 = vst [vmem:[#allocation54_spill] sm:$0xff] %v4798_v58 }
  0xe2   : > { %668 = vrot.lane.b32.xlu1 %v4493_v30, %s4236_s28  ;;  %666 = vrot.lane.b32.xlu0 %v4496_v31, %s4236_s28 }
  0xe4   : > { %v4804_v59 = vpop.permute.xlu1 %428  ;;  %v4806_v3 = vpop.permute.xlu0 %426 }
  0xe5   : > { %7111 = vst [vmem:[#allocation55_spill] sm:$0xff] %v4804_v59  ;;  %7112 = vst [vmem:[#allocation56_spill] sm:$0xff] %v4806_v3 }
  0xe6   : > { %672 = vrot.lane.b32.xlu1 %v4503_v32, %s4236_s28  ;;  %670 = vrot.lane.b32.xlu0 %v4506_v33, %s4236_s28 }
  0xe8   : > { %v4812_v60 = vpop.permute.xlu1 %432  ;;  %v4814_v61 = vpop.permute.xlu0 %430 }
  0xe9   : > { %7113 = vst [vmem:[#allocation57_spill] sm:$0xff] %v4812_v60  ;;  %7114 = vst [vmem:[#allocation58_spill] sm:$0xff] %v4814_v61 }
  0xea   : > { %676 = vrot.lane.b32.xlu1 %v4513_v34, %s4236_s28  ;;  %674 = vrot.lane.b32.xlu0 %v4516_v35, %s4236_s28 }
  0xec   : > { %v4820_v58 = vpop.permute.xlu1 %436  ;;  %v4822_v59 = vpop.permute.xlu0 %434 }
  0xed   : > { %7115 = vst [vmem:[#allocation59_spill] sm:$0xff] %v4820_v58  ;;  %7116 = vst [vmem:[#allocation60_spill] sm:$0xff] %v4822_v59 }
  0xee   : > { %680 = vrot.lane.b32.xlu1 %v4523_v36, %s4236_s28  ;;  %678 = vrot.lane.b32.xlu0 %v4526_v37, %s4236_s28 }
  0xf0   : > { %v4828_v3 = vpop.permute.xlu1 %440  ;;  %v4830_v60 = vpop.permute.xlu0 %438 }
  0xf1   : > { %7117 = vst [vmem:[#allocation61_spill] sm:$0xff] %v4828_v3  ;;  %7118 = vst [vmem:[#allocation62_spill] sm:$0xff] %v4830_v60 }
  0xf2   : > { %684 = vrot.lane.b32.xlu1 %v4533_v38, %s4236_s28  ;;  %682 = vrot.lane.b32.xlu0 %v4536_v39, %s4236_s28 }
  0xf4   : > { %v4836_v61 = vpop.permute.xlu1 %444  ;;  %v4838_v58 = vpop.permute.xlu0 %442 }
  0xf5   : > { %7119 = vst [vmem:[#allocation63_spill] sm:$0xff] %v4836_v61  ;;  %7120 = vst [vmem:[#allocation64_spill] sm:$0xff] %v4838_v58 }
  0xf6   : > { %688 = vrot.lane.b32.xlu1 %v4543_v40, %s4236_s28  ;;  %686 = vrot.lane.b32.xlu0 %v4546_v41, %s4236_s28 }
  0xf8   : > { %v4844_v59 = vpop.permute.xlu1 %448  ;;  %v4846_v3 = vpop.permute.xlu0 %446 }
  0xf9   : > { %7121 = vst [vmem:[#allocation65_spill] sm:$0xff] %v4844_v59  ;;  %7122 = vst [vmem:[#allocation66_spill] sm:$0xff] %v4846_v3 }
  0xfa   : > { %692 = vrot.lane.b32.xlu1 %v4553_v42, %s4236_s28  ;;  %690 = vrot.lane.b32.xlu0 %v4556_v43, %s4236_s28 }
  0xfc   : > { %v4852_v60 = vpop.permute.xlu1 %452  ;;  %v4854_v61 = vpop.permute.xlu0 %450 }
  0xfd   : > { %7123 = vst [vmem:[#allocation67_spill] sm:$0xff] %v4852_v60  ;;  %7124 = vst [vmem:[#allocation68_spill] sm:$0xff] %v4854_v61 }
  0xfe   : > { %696 = vrot.lane.b32.xlu1 %v4563_v44, %s4236_s28  ;;  %694 = vrot.lane.b32.xlu0 %v4566_v45, %s4236_s28 }
 0x100   : > { %v4860_v58 = vpop.permute.xlu1 %456  ;;  %v4862_v59 = vpop.permute.xlu0 %454 }
 0x101   : > { %7125 = vst [vmem:[#allocation69_spill] sm:$0xff] %v4860_v58  ;;  %7126 = vst [vmem:[#allocation70_spill] sm:$0xff] %v4862_v59 }
 0x102   : > { %700 = vrot.lane.b32.xlu1 %v4573_v46, %s4236_s28  ;;  %698 = vrot.lane.b32.xlu0 %v4576_v47, %s4236_s28 }
 0x104   : > { %v4868_v3 = vpop.permute.xlu1 %460  ;;  %v4870_v60 = vpop.permute.xlu0 %458 }
 0x105   : > { %7127 = vst [vmem:[#allocation71_spill] sm:$0xff] %v4868_v3  ;;  %7128 = vst [vmem:[#allocation72_spill] sm:$0xff] %v4870_v60 }
 0x106   : > { %704 = vrot.lane.b32.xlu1 %v4583_v48, %s4236_s28  ;;  %702 = vrot.lane.b32.xlu0 %v4586_v49, %s4236_s28 }
 0x108   : > { %v4876_v61 = vpop.permute.xlu1 %464  ;;  %v4878_v58 = vpop.permute.xlu0 %462 }
 0x109   : > { %7129 = vst [vmem:[#allocation73_spill] sm:$0xff] %v4876_v61  ;;  %7130 = vst [vmem:[#allocation74_spill] sm:$0xff] %v4878_v58 }
 0x10a   : > { %708 = vrot.lane.b32.xlu1 %v4593_v50, %s4236_s28  ;;  %706 = vrot.lane.b32.xlu0 %v4596_v51, %s4236_s28 }
 0x10c   : > { %v4884_v59 = vpop.permute.xlu1 %468  ;;  %v4886_v3 = vpop.permute.xlu0 %466 }
 0x10d   : > { %7131 = vst [vmem:[#allocation75_spill] sm:$0xff] %v4884_v59  ;;  %7132 = vst [vmem:[#allocation76_spill] sm:$0xff] %v4886_v3 }
 0x10e   : > { %712 = vrot.lane.b32.xlu1 %v4603_v52, %s4236_s28  ;;  %710 = vrot.lane.b32.xlu0 %v4606_v53, %s4236_s28 }
 0x110   : > { %v4892_v60 = vpop.permute.xlu1 %472  ;;  %v4894_v61 = vpop.permute.xlu0 %470 }
 0x111   : > { %7133 = vst [vmem:[#allocation77_spill] sm:$0xff] %v4892_v60  ;;  %7134 = vst [vmem:[#allocation78_spill] sm:$0xff] %v4894_v61  ;;  %v7139_v61 = vld [vmem:[#allocation15_spill] sm:$0xff] }
 0x112   : > { %716 = vrot.lane.b32.xlu1 %v4613_v54, %s4236_s28  ;;  %714 = vrot.lane.b32.xlu0 %v4616_v55, %s4236_s28  ;;  %v7140_v54 = vld [vmem:[#allocation16_spill] sm:$0xff] }
 0x114   : > { %v4900_v58 = vpop.permute.xlu1 %476  ;;  %v4902_v59 = vpop.permute.xlu0 %474 }
 0x115   : > { %7135 = vst [vmem:[#allocation79_spill] sm:$0xff] %v4900_v58  ;;  %7136 = vst [vmem:[#allocation80_spill] sm:$0xff] %v4902_v59  ;;  %v7143_v59 = vld [vmem:[#allocation17_spill] sm:$0xff] }
 0x116   : > { %720 = vrot.lane.b32.xlu1 %v4623_v56, %s4236_s28  ;;  %718 = vrot.lane.b32.xlu0 %v4626_v57, %s4236_s28  ;;  %v7144_v56 = vld [vmem:[#allocation18_spill] sm:$0xff] }
 0x118   : > { %v4908_v3 = vpop.permute.xlu1 %480  ;;  %v4910_v60 = vpop.permute.xlu0 %478 }
 0x119   : > { %7137 = vst [vmem:[#allocation81_spill] sm:$0xff] %v4908_v3  ;;  %7138 = vst [vmem:[#allocation82_spill] sm:$0xff] %v4910_v60 }
 0x11a   : > { %724 = vrot.lane.b32.xlu1 %v7139_v61, %s4236_s28  ;;  %722 = vrot.lane.b32.xlu0 %v7140_v54, %s4236_s28 }
 0x11c   : > { %v4916_v55 = vpop.permute.xlu1 %612  ;;  %v4918_v58 = vpop.permute.xlu0 %610 }
 0x11d   : > { %7141 = vst [vmem:[#allocation15_spill] sm:$0xff] %v4916_v55  ;;  %7142 = vst [vmem:[#allocation16_spill] sm:$0xff] %v4918_v58 }
 0x11e   : > { %728 = vrot.lane.b32.xlu1 %v7143_v59, %s4236_s28  ;;  %726 = vrot.lane.b32.xlu0 %v7144_v56, %s4236_s28 }
 0x120   : > { %v4924_v57 = vpop.permute.xlu1 %616  ;;  %v4926_v3 = vpop.permute.xlu0 %614 }
 0x121   : > { %7145 = vst [vmem:[#allocation17_spill] sm:$0xff] %v4924_v57  ;;  %7146 = vst [vmem:[#allocation18_spill] sm:$0xff] %v4926_v3  ;;  %v7151_v3 = vld [vmem:[#allocation9_spill] sm:$0xff] }
 0x122   : > { %732 = vrot.lane.b32.xlu1 %v4657_v0, %s4236_s28  ;;  %730 = vrot.lane.b32.xlu0 %v4660_v1, %s4236_s28 }
 0x124   : > { %v4932_v60 = vpop.permute.xlu1 %620  ;;  %v4934_v55 = vpop.permute.xlu0 %618 }
 0x125   : > { %7147 = vst [vmem:[#allocation83_spill] sm:$0xff] %v4932_v60  ;;  %7148 = vst [vmem:[#allocation84_spill] sm:$0xff] %v4934_v55 }
 0x126   : > { %736 = vrot.lane.b32.xlu1 %v4671_v62, %s4236_s28  ;;  %734 = vrot.lane.b32.xlu0 %v4674_v63, %s4236_s28 }
 0x128   : > { %v4940_v58 = vpop.permute.xlu1 %624  ;;  %v4942_v57 = vpop.permute.xlu0 %622 }
 0x129   : > { %7149 = vst [vmem:[#allocation85_spill] sm:$0xff] %v4940_v58  ;;  %7150 = vst [vmem:[#allocation86_spill] sm:$0xff] %v4942_v57 }
 0x12a   : > { %868 = vrot.lane.b32.xlu1 %v4366_v5, %s4237_s29  ;;  %866 = vrot.lane.b32.xlu0 %v7151_v3, %s4237_s29 }
 0x12c   : > { %v4948_v60 = vpop.permute.xlu1 %628  ;;  %v4950_v55 = vpop.permute.xlu0 %626 }
 0x12d   : > { %7152 = vst [vmem:[#allocation9_spill] sm:$0xff] %v4948_v60  ;;  %7153 = vst [vmem:[#allocation87_spill] sm:$0xff] %v4950_v55 }
 0x12e   : > { %872 = vrot.lane.b32.xlu1 %v4363_v4, %s4237_s29  ;;  %870 = vrot.lane.b32.xlu0 %v4353_v2, %s4237_s29 }
 0x130   : > { %v4956_v58 = vpop.permute.xlu1 %632  ;;  %v4958_v57 = vpop.permute.xlu0 %630 }
 0x131   : > { %7154 = vst [vmem:[#allocation88_spill] sm:$0xff] %v4956_v58  ;;  %7155 = vst [vmem:[#allocation89_spill] sm:$0xff] %v4958_v57 }
 0x132   : > { %876 = vrot.lane.b32.xlu1 %v4373_v6, %s4237_s29  ;;  %874 = vrot.lane.b32.xlu0 %v4376_v7, %s4237_s29 }
 0x134   : > { %v4964_v5 = vpop.permute.xlu1 %636  ;;  %v4966_v60 = vpop.permute.xlu0 %634 }
 0x135   : > { %7156 = vst [vmem:[#allocation90_spill] sm:$0xff] %v4964_v5  ;;  %7157 = vst [vmem:[#allocation91_spill] sm:$0xff] %v4966_v60 }
 0x136   : > { %880 = vrot.lane.b32.xlu1 %v4383_v8, %s4237_s29  ;;  %878 = vrot.lane.b32.xlu0 %v4386_v9, %s4237_s29 }
 0x138   : > { %v4972_v55 = vpop.permute.xlu1 %640  ;;  %v4974_v58 = vpop.permute.xlu0 %638 }
 0x139   : > { %7158 = vst [vmem:[#allocation92_spill] sm:$0xff] %v4972_v55  ;;  %7159 = vst [vmem:[#allocation93_spill] sm:$0xff] %v4974_v58 }
 0x13a   : > { %884 = vrot.lane.b32.xlu1 %v4393_v10, %s4237_s29  ;;  %882 = vrot.lane.b32.xlu0 %v4396_v11, %s4237_s29 }
 0x13c   : > { %v4980_v57 = vpop.permute.xlu1 %644  ;;  %v4982_v5 = vpop.permute.xlu0 %642 }
 0x13d   : > { %7160 = vst [vmem:[#allocation94_spill] sm:$0xff] %v4980_v57  ;;  %7161 = vst [vmem:[#allocation95_spill] sm:$0xff] %v4982_v5 }
 0x13e   : > { %888 = vrot.lane.b32.xlu1 %v4403_v12, %s4237_s29  ;;  %886 = vrot.lane.b32.xlu0 %v4406_v13, %s4237_s29 }
 0x140   : > { %v4988_v60 = vpop.permute.xlu1 %648  ;;  %v4990_v55 = vpop.permute.xlu0 %646 }
 0x141   : > { %7162 = vst [vmem:[#allocation96_spill] sm:$0xff] %v4988_v60  ;;  %7163 = vst [vmem:[#allocation97_spill] sm:$0xff] %v4990_v55 }
 0x142   : > { %892 = vrot.lane.b32.xlu1 %v4413_v14, %s4237_s29  ;;  %890 = vrot.lane.b32.xlu0 %v4416_v15, %s4237_s29 }
 0x144   : > { %v4996_v58 = vpop.permute.xlu1 %652  ;;  %v4998_v57 = vpop.permute.xlu0 %650 }
 0x145   : > { %7164 = vst [vmem:[#allocation98_spill] sm:$0xff] %v4996_v58  ;;  %7165 = vst [vmem:[#allocation99_spill] sm:$0xff] %v4998_v57 }
 0x146   : > { %896 = vrot.lane.b32.xlu1 %v4423_v16, %s4237_s29  ;;  %894 = vrot.lane.b32.xlu0 %v4426_v17, %s4237_s29 }
 0x148   : > { %v5004_v5 = vpop.permute.xlu1 %656  ;;  %v5006_v60 = vpop.permute.xlu0 %654 }
 0x149   : > { %7166 = vst [vmem:[#allocation100_spill] sm:$0xff] %v5004_v5  ;;  %7167 = vst [vmem:[#allocation101_spill] sm:$0xff] %v5006_v60 }
 0x14a   : > { %900 = vrot.lane.b32.xlu1 %v4433_v18, %s4237_s29  ;;  %898 = vrot.lane.b32.xlu0 %v4436_v19, %s4237_s29 }
 0x14c   : > { %v5012_v55 = vpop.permute.xlu1 %660  ;;  %v5014_v58 = vpop.permute.xlu0 %658 }
 0x14d   : > { %7168 = vst [vmem:[#allocation102_spill] sm:$0xff] %v5012_v55  ;;  %7169 = vst [vmem:[#allocation103_spill] sm:$0xff] %v5014_v58 }
 0x14e   : > { %904 = vrot.lane.b32.xlu1 %v4443_v20, %s4237_s29  ;;  %902 = vrot.lane.b32.xlu0 %v4446_v21, %s4237_s29 }
 0x150   : > { %v5020_v57 = vpop.permute.xlu1 %664  ;;  %v5022_v5 = vpop.permute.xlu0 %662 }
 0x151   : > { %7170 = vst [vmem:[#allocation104_spill] sm:$0xff] %v5020_v57  ;;  %7171 = vst [vmem:[#allocation105_spill] sm:$0xff] %v5022_v5 }
 0x152   : > { %908 = vrot.lane.b32.xlu1 %v4453_v22, %s4237_s29  ;;  %906 = vrot.lane.b32.xlu0 %v4456_v23, %s4237_s29 }
 0x154   : > { %v5028_v60 = vpop.permute.xlu1 %668  ;;  %v5030_v55 = vpop.permute.xlu0 %666 }
 0x155   : > { %7172 = vst [vmem:[#allocation106_spill] sm:$0xff] %v5028_v60  ;;  %7173 = vst [vmem:[#allocation107_spill] sm:$0xff] %v5030_v55 }
 0x156   : > { %912 = vrot.lane.b32.xlu1 %v4463_v24, %s4237_s29  ;;  %910 = vrot.lane.b32.xlu0 %v4466_v25, %s4237_s29 }
 0x158   : > { %v5036_v58 = vpop.permute.xlu1 %672  ;;  %v5038_v57 = vpop.permute.xlu0 %670 }
 0x159   : > { %7174 = vst [vmem:[#allocation108_spill] sm:$0xff] %v5036_v58  ;;  %7175 = vst [vmem:[#allocation109_spill] sm:$0xff] %v5038_v57 }
 0x15a   : > { %916 = vrot.lane.b32.xlu1 %v4473_v26, %s4237_s29  ;;  %914 = vrot.lane.b32.xlu0 %v4476_v27, %s4237_s29 }
 0x15c   : > { %v5044_v5 = vpop.permute.xlu1 %676  ;;  %v5046_v60 = vpop.permute.xlu0 %674 }
 0x15d   : > { %7176 = vst [vmem:[#allocation110_spill] sm:$0xff] %v5044_v5  ;;  %7177 = vst [vmem:[#allocation111_spill] sm:$0xff] %v5046_v60 }
 0x15e   : > { %920 = vrot.lane.b32.xlu1 %v4483_v28, %s4237_s29  ;;  %918 = vrot.lane.b32.xlu0 %v4486_v29, %s4237_s29 }
 0x160   : > { %v5052_v55 = vpop.permute.xlu1 %680  ;;  %v5054_v58 = vpop.permute.xlu0 %678 }
 0x161   : > { %7178 = vst [vmem:[#allocation112_spill] sm:$0xff] %v5052_v55  ;;  %7179 = vst [vmem:[#allocation113_spill] sm:$0xff] %v5054_v58 }
 0x162   : > { %924 = vrot.lane.b32.xlu1 %v4493_v30, %s4237_s29  ;;  %922 = vrot.lane.b32.xlu0 %v4496_v31, %s4237_s29 }
 0x164   : > { %v5060_v57 = vpop.permute.xlu1 %684  ;;  %v5062_v5 = vpop.permute.xlu0 %682 }
 0x165   : > { %7180 = vst [vmem:[#allocation114_spill] sm:$0xff] %v5060_v57  ;;  %7181 = vst [vmem:[#allocation115_spill] sm:$0xff] %v5062_v5 }
 0x166   : > { %928 = vrot.lane.b32.xlu1 %v4503_v32, %s4237_s29  ;;  %926 = vrot.lane.b32.xlu0 %v4506_v33, %s4237_s29 }
 0x168   : > { %v5068_v60 = vpop.permute.xlu1 %688  ;;  %v5070_v55 = vpop.permute.xlu0 %686 }
 0x169   : > { %7182 = vst [vmem:[#allocation116_spill] sm:$0xff] %v5068_v60  ;;  %7183 = vst [vmem:[#allocation117_spill] sm:$0xff] %v5070_v55  ;;  %v7220_v55 = vld [vmem:[#allocation21_spill] sm:$0xff] }
 0x16a   : > { %932 = vrot.lane.b32.xlu1 %v4513_v34, %s4237_s29  ;;  %930 = vrot.lane.b32.xlu0 %v4516_v35, %s4237_s29 }
 0x16c   : > { %v5076_v58 = vpop.permute.xlu1 %692  ;;  %v5078_v57 = vpop.permute.xlu0 %690 }
 0x16d   : > { %7184 = vst [vmem:[#allocation118_spill] sm:$0xff] %v5076_v58  ;;  %7185 = vst [vmem:[#allocation119_spill] sm:$0xff] %v5078_v57  ;;  %v7219_v58 = vld [vmem:[#allocation15_spill] sm:$0xff] }
 0x16e   : > { %936 = vrot.lane.b32.xlu1 %v4523_v36, %s4237_s29  ;;  %934 = vrot.lane.b32.xlu0 %v4526_v37, %s4237_s29 }
 0x170   : > { %v5084_v32 = vpop.permute.xlu1 %696  ;;  %v5086_v60 = vpop.permute.xlu0 %694 }
 0x171   : > { %7186 = vst [vmem:[#allocation120_spill] sm:$0xff] %v5084_v32  ;;  %7187 = vst [vmem:[#allocation121_spill] sm:$0xff] %v5086_v60  ;;  %v7217_v32 = vld [vmem:[#allocation10_spill] sm:$0xff] }
 0x172   : > { %940 = vrot.lane.b32.xlu1 %v4533_v38, %s4237_s29  ;;  %938 = vrot.lane.b32.xlu0 %v4536_v39, %s4237_s29 }
 0x174   : > { %v5092_v34 = vpop.permute.xlu1 %700  ;;  %v5094_v35 = vpop.permute.xlu0 %698 }
 0x175   : > { %7188 = vst [vmem:[#allocation122_spill] sm:$0xff] %v5092_v34  ;;  %7189 = vst [vmem:[#allocation123_spill] sm:$0xff] %v5094_v35  ;;  %v7216_v35 = vld [vmem:[#allocation22_spill] sm:$0xff] }
 0x176   : > { %944 = vrot.lane.b32.xlu1 %v4543_v40, %s4237_s29  ;;  %942 = vrot.lane.b32.xlu0 %v4546_v41, %s4237_s29  ;;  %v547_v60 = vmax.f32 %v7217_v32, %v7216_v35 }
 0x178   : > { %v5100_v36 = vpop.permute.xlu1 %704  ;;  %v5102_v37 = vpop.permute.xlu0 %702  ;;  %v803_v57 = vmax.f32 %v547_v60, %v7219_v58  ;;  %v7225_v60 = vld [vmem:[#allocation84_spill] sm:$0xff] }
 0x179   : > { %7190 = vst [vmem:[#allocation124_spill] sm:$0xff] %v5100_v36  ;;  %7191 = vst [vmem:[#allocation125_spill] sm:$0xff] %v5102_v37 }
 0x17a   : > { %948 = vrot.lane.b32.xlu1 %v4553_v42, %s4237_s29  ;;  %946 = vrot.lane.b32.xlu0 %v4556_v43, %s4237_s29 }
 0x17c   : > { %v5108_v38 = vpop.permute.xlu1 %708  ;;  %v5110_v39 = vpop.permute.xlu0 %706 }
 0x17d   : > { %7192 = vst [vmem:[#allocation126_spill] sm:$0xff] %v5108_v38  ;;  %7193 = vst [vmem:[#allocation127_spill] sm:$0xff] %v5110_v39  ;;  %v7214_v38 = vld [vmem:[#allocation19_spill] sm:$0xff] }
 0x17e   : > { %952 = vrot.lane.b32.xlu1 %v4563_v44, %s4237_s29  ;;  %950 = vrot.lane.b32.xlu0 %v4566_v45, %s4237_s29  ;;  %v548_v39 = vmax.f32 %v4353_v2, %v7214_v38 }
 0x180   : > { %v5116_v40 = vpop.permute.xlu1 %712  ;;  %v5118_v41 = vpop.permute.xlu0 %710 }
 0x181   : > { %7194 = vst [vmem:[#allocation128_spill] sm:$0xff] %v5116_v40  ;;  %7195 = vst [vmem:[#allocation129_spill] sm:$0xff] %v5118_v41  ;;  %v7213_v40 = vld [vmem:[#allocation16_spill] sm:$0xff] }
 0x182   : > { %956 = vrot.lane.b32.xlu1 %v4573_v46, %s4237_s29  ;;  %954 = vrot.lane.b32.xlu0 %v4576_v47, %s4237_s29 }
 0x184   : > { %v5124_v42 = vpop.permute.xlu1 %716  ;;  %v5126_v43 = vpop.permute.xlu0 %714 }
 0x185   : > { %7196 = vst [vmem:[#allocation130_spill] sm:$0xff] %v5124_v42  ;;  %7197 = vst [vmem:[#allocation131_spill] sm:$0xff] %v5126_v43 }
 0x186   : > { %960 = vrot.lane.b32.xlu1 %v4583_v48, %s4237_s29  ;;  %958 = vrot.lane.b32.xlu0 %v4586_v49, %s4237_s29 }
 0x188   : > { %v5132_v44 = vpop.permute.xlu1 %720  ;;  %v5134_v45 = vpop.permute.xlu0 %718 }
 0x189   : > { %7198 = vst [vmem:[#allocation132_spill] sm:$0xff] %v5132_v44  ;;  %7199 = vst [vmem:[#allocation133_spill] sm:$0xff] %v5134_v45  ;;  %v7204_v44 = vld [vmem:[#allocation11_spill] sm:$0xff] }
 0x18a   : > { %964 = vrot.lane.b32.xlu1 %v4593_v50, %s4237_s29  ;;  %962 = vrot.lane.b32.xlu0 %v4596_v51, %s4237_s29  ;;  %v7205_v50 = vld [vmem:[#allocation12_spill] sm:$0xff] }
 0x18c   : > { %v5140_v46 = vpop.permute.xlu1 %724  ;;  %v5142_v47 = vpop.permute.xlu0 %722 }
 0x18d   : > { %7200 = vst [vmem:[#allocation134_spill] sm:$0xff] %v5140_v46  ;;  %7201 = vst [vmem:[#allocation135_spill] sm:$0xff] %v5142_v47  ;;  %v7208_v47 = vld [vmem:[#allocation13_spill] sm:$0xff] }
 0x18e   : > { %968 = vrot.lane.b32.xlu1 %v4603_v52, %s4237_s29  ;;  %966 = vrot.lane.b32.xlu0 %v4606_v53, %s4237_s29  ;;  %v7209_v52 = vld [vmem:[#allocation14_spill] sm:$0xff] }
 0x190   : > { %v5148_v48 = vpop.permute.xlu1 %728  ;;  %v5150_v49 = vpop.permute.xlu0 %726 }
 0x191   : > { %7202 = vst [vmem:[#allocation136_spill] sm:$0xff] %v5148_v48  ;;  %7203 = vst [vmem:[#allocation137_spill] sm:$0xff] %v5150_v49 }
 0x192   : > { %972 = vrot.lane.b32.xlu1 %v7204_v44, %s4237_s29  ;;  %970 = vrot.lane.b32.xlu0 %v7205_v50, %s4237_s29 }
 0x194   : > { %v5156_v51 = vpop.permute.xlu1 %732  ;;  %v5158_v46 = vpop.permute.xlu0 %730 }
 0x195   : > { %7206 = vst [vmem:[#allocation11_spill] sm:$0xff] %v5156_v51  ;;  %7207 = vst [vmem:[#allocation12_spill] sm:$0xff] %v5158_v46 }
 0x196   : > { %976 = vrot.lane.b32.xlu1 %v7208_v47, %s4237_s29  ;;  %974 = vrot.lane.b32.xlu0 %v7209_v52, %s4237_s29 }
 0x198   : > { %v5164_v53 = vpop.permute.xlu1 %736  ;;  %v5166_v48 = vpop.permute.xlu0 %734 }
 0x199   : > { %7210 = vst [vmem:[#allocation13_spill] sm:$0xff] %v5164_v53  ;;  %7211 = vst [vmem:[#allocation14_spill] sm:$0xff] %v5166_v48 }
 0x19a   : > { %980 = vrot.lane.b32.xlu1 %v7139_v61, %s4237_s29  ;;  %978 = vrot.lane.b32.xlu0 %v7140_v54, %s4237_s29 }
 0x19c   : > { %v869_v44 = vpop.permute.xlu1 %868  ;;  %v867_v50 = vpop.permute.xlu0 %866 }
 0x19d   : > { %v5229_v35 = vmax.f32 %v803_v57, %v869_v44 }
 0x19e   : > { %984 = vrot.lane.b32.xlu1 %v7143_v59, %s4237_s29  ;;  %982 = vrot.lane.b32.xlu0 %v7144_v56, %s4237_s29 }
 0x19f   : > { %7223 = vst [vmem:[#allocation19_spill] sm:$0xff] %v5229_v35 }
 0x1a0   : > { %v873_v47 = vpop.permute.xlu1 %872  ;;  %v871_v52 = vpop.permute.xlu0 %870 }
 0x1a2   : > { %988 = vrot.lane.b32.xlu1 %v4657_v0, %s4237_s29  ;;  %986 = vrot.lane.b32.xlu0 %v4660_v1, %s4237_s29 }
 0x1a4   : > { %v877_v61 = vpop.permute.xlu1 %876  ;;  %v875_v53 = vpop.permute.xlu0 %874 }
 0x1a6   : > { %992 = vrot.lane.b32.xlu1 %v4671_v62, %s4237_s29  ;;  %990 = vrot.lane.b32.xlu0 %v4674_v63, %s4237_s29  ;;  %v7212_v62 = vld [vmem:[#allocation20_spill] sm:$0xff] }
 0x1a7   : > { %v546_v63 = vmax.f32 %v7151_v3, %v7212_v62  ;;  %v7218_v3 = vld [vmem:[#allocation18_spill] sm:$0xff] }
 0x1a8   : > { %v881_v54 = vpop.permute.xlu1 %880  ;;  %v879_v59 = vpop.permute.xlu0 %878  ;;  %v804_v62 = vmax.f32 %v548_v39, %v7218_v3  ;;  %v7224_v39 = vld [vmem:[#allocation17_spill] sm:$0xff] }
 0x1a9   : > { %v802_v41 = vmax.f32 %v546_v63, %v7213_v40  ;;  %v549_v40 = vmax.f32 %v4363_v4, %v7220_v55  ;;  %v7226_v4 = vld [vmem:[#allocation23_spill] sm:$0xff] }
 0x1aa   : > { %v5219_v63 = vmax.f32 %v804_v62, %v871_v52  ;;  %v551_v55 = vmax.f32 %v4373_v6, %v7226_v4 }
 0x1ab   : > { %v5207_v36 = vmax.f32 %v802_v41, %v867_v50  ;;  %v7222_v50 = vld [vmem:[#allocation24_spill] sm:$0xff]  ;;  %v805_v58 = vmax.f32 %v549_v40, %v7224_v39  ;;  %v1126_v40 = vsel %vm1122_vm1, %v5229_v35, -inf }
 0x1ac   : > { %v5184_v48 = vpop.permute.xlu1 %884  ;;  %v883_v56 = vpop.permute.xlu0 %882  ;;  %7221 = vst [vmem:[#allocation16_spill] sm:$0xff] %v5219_v63  ;;  %v550_v32 = vmax.f32 %v4376_v7, %v7222_v50  ;;  %v7228_v7 = vld [vmem:[#allocation26_spill] sm:$0xff] }
 0x1ad   : > { %7215 = vst [vmem:[#allocation20_spill] sm:$0xff] %v5207_v36  ;;  %v1123_v41 = vsel %vm1122_vm1, %v5207_v36, -inf  ;;  %v5235_v52 = vmax.f32 %v805_v58, %v873_v47  ;;  %v1129_v36 = vsel %vm1122_vm1, %v5219_v63, -inf  ;;  %v552_v57 = vmax.f32 %v4386_v9, %v7228_v7  ;;  %v7231_v47 = vld [vmem:[#allocation86_spill] sm:$0xff]  ;;  %v7236_v7 = vld [vmem:[#allocation85_spill] sm:$0xff] }
 0x1ae   : > { %v806_v3 = vmax.f32 %v550_v32, %v7225_v60  ;;  %v7232_v32 = vld [vmem:[#allocation25_spill] sm:$0xff] }
 0x1af   : > { %7227 = vst [vmem:[#allocation22_spill] sm:$0xff] %v5235_v52  ;;  %v808_v50 = vmax.f32 %v552_v57, %v7231_v47  ;;  %v553_v39 = vmax.f32 %v4383_v8, %v7232_v32  ;;  %v1132_v9 = vsel %vm1122_vm1, %v5235_v52, -inf }
 0x1b0   : > { %v5186_v51 = vpop.permute.xlu1 %888  ;;  %v5188_v46 = vpop.permute.xlu0 %886  ;;  %v5245_v44 = vmax.f32 %v806_v3, %v875_v53 }
 0x1b1   : > { %v5263_v3 = vmax.f32 %v808_v50, %v879_v59  ;;  %v809_v8 = vmax.f32 %v553_v39, %v7236_v7  ;;  %v7240_v59 = vld [vmem:[#allocation30_spill] sm:$0xff] }
 0x1b2   : > { %7229 = vst [vmem:[#allocation10_spill] sm:$0xff] %v5245_v44  ;;  %v556_v50 = vmax.f32 %v4406_v13, %v7240_v59 }
 0x1b3   : > { %7235 = vst [vmem:[#allocation15_spill] sm:$0xff] %v5263_v3  ;;  %v1141_v39 = vsel %vm1122_vm1, %v5263_v3, -inf }
 0x1b4   : > { %v5190_v0 = vpop.permute.xlu1 %892  ;;  %v5192_v1 = vpop.permute.xlu0 %890 }
 0x1b8   : > { %v5194_v49 = vpop.permute.xlu1 %896  ;;  %v5196_v45 = vpop.permute.xlu0 %894 }
 0x1bc   : > { %v5200_v42 = vpop.permute.xlu1 %900  ;;  %v5202_v43 = vpop.permute.xlu0 %898 }
 0x1c0   : > { %v5209_v37 = vpop.permute.xlu1 %904  ;;  %v5211_v34 = vpop.permute.xlu0 %902 }
 0x1c4   : > { %v5221_v2 = vpop.permute.xlu1 %908  ;;  %v5223_v38 = vpop.permute.xlu0 %906 }
 0x1c5   : > { %1124 = vmax.xlane.f32.xlu0 %v1123_v41  ;;  %v7230_v41 = vld [vmem:[#allocation83_spill] sm:$0xff] }
 0x1c6   : > { %v807_v6 = vmax.f32 %v551_v55, %v7230_v41  ;;  %v1135_v55 = vsel %vm1122_vm1, %v5245_v44, -inf }
 0x1c8   : > { %v5237_v62 = vpop.permute.xlu1 %912  ;;  %v5239_v5 = vpop.permute.xlu0 %910  ;;  %v5253_v58 = vmax.f32 %v807_v6, %v877_v61  ;;  %v7237_v61 = vld [vmem:[#allocation87_spill] sm:$0xff]  ;;  %v5271_v6 = vmax.f32 %v809_v8, %v881_v54  ;;  %v7243_v54 = vld [vmem:[#allocation89_spill] sm:$0xff] }
 0x1c9   : > { %1130 = vmax.xlane.f32.xlu0 %v1129_v36  ;;  %v7234_v36 = vld [vmem:[#allocation28_spill] sm:$0xff] }
 0x1ca   : > { %1127 = vmax.xlane.f32.xlu1 %v1126_v40  ;;  %7233 = vst [vmem:[#allocation18_spill] sm:$0xff] %v5253_v58  ;;  %v554_v53 = vmax.f32 %v4396_v11, %v7234_v36  ;;  %v7238_v40 = vld [vmem:[#allocation27_spill] sm:$0xff]  ;;  %7239 = vst [vmem:[#allocation21_spill] sm:$0xff] %v5271_v6  ;;  %v1138_v11 = vsel %vm1122_vm1, %v5253_v58, -inf  ;;  %v7242_v36 = vld [vmem:[#allocation9_spill] sm:$0xff] }
 0x1cb   : > { %v555_v41 = vmax.f32 %v4393_v10, %v7238_v40 }
 0x1cc   : > { %v5255_v60 = vpop.permute.xlu1 %916  ;;  %v5257_v4 = vpop.permute.xlu0 %914  ;;  %v810_v57 = vmax.f32 %v554_v53, %v7237_v61  ;;  %v812_v53 = vmax.f32 %v556_v50, %v7243_v54  ;;  %v7245_v61 = vld [vmem:[#allocation32_spill] sm:$0xff] }
 0x1cd   : > { %1133 = vmax.xlane.f32.xlu0 %v1132_v9  ;;  %v811_v10 = vmax.f32 %v555_v41, %v7242_v36 }
 0x1ce   : > { %1136 = vmax.xlane.f32.xlu1 %v1135_v55  ;;  %v5279_v32 = vmax.f32 %v810_v57, %v883_v56  ;;  %v7244_v55 = vld [vmem:[#allocation29_spill] sm:$0xff]  ;;  %v1144_v56 = vsel %vm1122_vm1, %v5271_v6, -inf  ;;  %v558_v57 = vmax.f32 %v4416_v15, %v7245_v61  ;;  %v5299_v40 = vmax.f32 %v812_v53, %v5188_v46  ;;  %v7249_v46 = vld [vmem:[#allocation34_spill] sm:$0xff] }
 0x1cf   : > { %v557_v7 = vmax.f32 %v4403_v12, %v7244_v55  ;;  %v5290_v8 = vmax.f32 %v811_v10, %v5184_v48  ;;  %v7247_v48 = vld [vmem:[#allocation91_spill] sm:$0xff]  ;;  %v560_v54 = vmax.f32 %v4426_v17, %v7249_v46 }
 0x1d0   : > { %v5273_v47 = vpop.permute.xlu0 %918  ;;  %7241 = vst [vmem:[#allocation24_spill] sm:$0xff] %v5279_v32  ;;  %v5281_v9 = vpop.permute.xlu1 %920  ;;  %v1147_v41 = vsel %vm1122_vm1, %v5279_v32, -inf  ;;  %v814_v59 = vmax.f32 %v558_v57, %v7247_v48  ;;  %v1153_v55 = vsel %vm1122_vm1, %v5299_v40, -inf  ;;  %v7253_v57 = vld [vmem:[#allocation33_spill] sm:$0xff]  ;;  %v7259_v46 = vld [vmem:[#allocation35_spill] sm:$0xff] }
 0x1d1   : > { %1139 = vmax.xlane.f32.xlu0 %v1138_v11  ;;  %v7246_v11 = vld [vmem:[#allocation88_spill] sm:$0xff]  ;;  %v1150_v15 = vsel %vm1122_vm1, %v5290_v8, -inf }
 0x1d2   : > { %1142 = vmax.xlane.f32.xlu1 %v1141_v39  ;;  %v813_v12 = vmax.f32 %v557_v7, %v7246_v11  ;;  %v7248_v39 = vld [vmem:[#allocation31_spill] sm:$0xff]  ;;  %v5317_v53 = vmax.f32 %v814_v59, %v5192_v1  ;;  %v7251_v7 = vld [vmem:[#allocation90_spill] sm:$0xff]  ;;  %v7255_v1 = vld [vmem:[#allocation36_spill] sm:$0xff] }
 0x1d3   : > { %v559_v36 = vmax.f32 %v4413_v14, %v7248_v39  ;;  %v7252_v14 = vld [vmem:[#allocation93_spill] sm:$0xff] }
 0x1d4   : > { %v5292_v13 = vpop.permute.xlu0 %922  ;;  %v5305_v50 = vpop.permute.xlu1 %924  ;;  %v5310_v10 = vmax.f32 %v813_v12, %v5186_v51  ;;  %7250 = vst [vmem:[#allocation17_spill] sm:$0xff] %v5317_v53  ;;  %v816_v51 = vmax.f32 %v560_v54, %v7252_v14  ;;  %v562_v12 = vmax.f32 %v4436_v19, %v7255_v1  ;;  %v1159_v39 = vsel %vm1122_vm1, %v5317_v53, -inf  ;;  %v7264_v1 = vld [vmem:[#allocation37_spill] sm:$0xff] }
 0x1d5   : > { %1145 = vmax.xlane.f32.xlu0 %v1144_v56  ;;  %v815_v56 = vmax.f32 %v559_v36, %v7251_v7  ;;  %v7257_v36 = vld [vmem:[#allocation92_spill] sm:$0xff]  ;;  %v563_v54 = vmax.f32 %v4433_v18, %v7259_v46  ;;  %v7261_v7 = vld [vmem:[#allocation38_spill] sm:$0xff] }
 0x1d6   : > { %1148 = vmax.xlane.f32.xlu1 %v1147_v41  ;;  %v561_v41 = vmax.f32 %v4423_v16, %v7253_v57  ;;  %v1156_v17 = vsel %vm1122_vm1, %v5310_v10, -inf  ;;  %v5335_v48 = vmax.f32 %v816_v51, %v5196_v45  ;;  %v7262_v57 = vld [vmem:[#allocation94_spill] sm:$0xff] }
 0x1d7   : > { %v5328_v11 = vmax.f32 %v815_v56, %v5190_v0  ;;  %v7258_v0 = vld [vmem:[#allocation95_spill] sm:$0xff]  ;;  %v564_v56 = vmax.f32 %v4446_v21, %v7261_v7  ;;  %v819_v18 = vmax.f32 %v563_v54, %v7262_v57 }
 0x1d8   : > { %v5322_v61 = vpop.permute.xlu0 %926  ;;  %7256 = vst [vmem:[#allocation23_spill] sm:$0xff] %v5335_v48  ;;  %v5337_v59 = vpop.permute.xlu1 %928  ;;  %v817_v16 = vmax.f32 %v561_v41, %v7257_v36  ;;  %v1165_v51 = vsel %vm1122_vm1, %v5335_v48, -inf }
 0x1d9   : > { %1151 = vmax.xlane.f32.xlu0 %v1150_v15  ;;  %7254 = vst [vmem:[#allocation84_spill] sm:$0xff] %v5328_v11  ;;  %v818_v15 = vmax.f32 %v562_v12, %v7258_v0  ;;  %v1162_v45 = vsel %vm1122_vm1, %v5328_v11, -inf  ;;  %v565_v12 = vmax.f32 %v4443_v20, %v7264_v1  ;;  %v7267_v20 = vld [vmem:[#allocation99_spill] sm:$0xff] }
 0x1da   : > { %1154 = vmax.xlane.f32.xlu1 %v1153_v55  ;;  %v5346_v55 = vmax.f32 %v817_v16, %v5194_v49  ;;  %v7263_v49 = vld [vmem:[#allocation97_spill] sm:$0xff] }
 0x1db   : > { %v5355_v14 = vmax.f32 %v818_v15, %v5202_v43  ;;  %v820_v41 = vmax.f32 %v564_v56, %v7263_v49  ;;  %v7265_v43 = vld [vmem:[#allocation40_spill] sm:$0xff] }
 0x1dc   : > { %7260 = vst [vmem:[#allocation26_spill] sm:$0xff] %v5346_v55  ;;  %v5348_v19 = vpop.permute.xlu0 %930  ;;  %v1168_v21 = vsel %vm1122_vm1, %v5346_v55, -inf  ;;  %v566_v36 = vmax.f32 %v4456_v23, %v7265_v43  ;;  %v7266_v15 = vld [vmem:[#allocation96_spill] sm:$0xff] }
 0x1dd   : > { %1157 = vmax.xlane.f32.xlu0 %v1156_v17  ;;  %v5361_v17 = vpop.permute.xlu1 %932  ;;  %v5373_v16 = vmax.f32 %v820_v41, %v5211_v34  ;;  %v1171_v0 = vsel %vm1122_vm1, %v5355_v14, -inf  ;;  %v821_v46 = vmax.f32 %v565_v12, %v7266_v15  ;;  %v7269_v34 = vld [vmem:[#allocation42_spill] sm:$0xff]  ;;  %v7272_v12 = vld [vmem:[#allocation41_spill] sm:$0xff] }
 0x1de   : > { %1160 = vmax.xlane.f32.xlu1 %v1159_v39  ;;  %v5366_v39 = vmax.f32 %v819_v18, %v5200_v42  ;;  %v822_v42 = vmax.f32 %v566_v36, %v7267_v20  ;;  %v7270_v41 = vld [vmem:[#allocation98_spill] sm:$0xff]  ;;  %v7274_v36 = vld [vmem:[#allocation44_spill] sm:$0xff] }
 0x1df   : > { %v5384_v56 = vmax.f32 %v821_v46, %v5209_v37  ;;  %v1177_v49 = vsel %vm1122_vm1, %v5373_v16, -inf  ;;  %v7271_v37 = vld [vmem:[#allocation101_spill] sm:$0xff]  ;;  %v7276_v20 = vld [vmem:[#allocation100_spill] sm:$0xff] }
 0x1e0   : > { %v5378_v54 = vpop.permute.xlu0 %934  ;;  %v1174_v23 = vsel %vm1122_vm1, %v5366_v39, -inf  ;;  %v5391_v57 = vmax.f32 %v822_v42, %v5223_v38 }
 0x1e1   : > { %1163 = vmax.xlane.f32.xlu0 %v1162_v45  ;;  %v7268_v45 = vld [vmem:[#allocation39_spill] sm:$0xff]  ;;  %v5393_v18 = vpop.permute.xlu1 %936  ;;  %v1180_v38 = vsel %vm1122_vm1, %v5384_v56, -inf }
 0x1e2   : > { %1166 = vmax.xlane.f32.xlu1 %v1165_v51  ;;  %v567_v7 = vmax.f32 %v4453_v22, %v7268_v45  ;;  %v568_v51 = vmax.f32 %v4466_v25, %v7269_v34  ;;  %v1183_v46 = vsel %vm1122_vm1, %v5391_v57, -inf }
 0x1e4   : > { %v823_v22 = vmax.f32 %v567_v7, %v7270_v41  ;;  %v824_v1 = vmax.f32 %v568_v51, %v7271_v37  ;;  %v5404_v25 = vpop.permute.xlu0 %938  ;;  %v7278_v7 = vld [vmem:[#allocation43_spill] sm:$0xff] }
 0x1e5   : > { %1169 = vmax.xlane.f32.xlu0 %v1168_v21  ;;  %v569_v21 = vmax.f32 %v4463_v24, %v7272_v12  ;;  %v5417_v45 = vpop.permute.xlu1 %940  ;;  %v7283_v12 = vld [vmem:[#allocation45_spill] sm:$0xff] }
 0x1e6   : > { %1172 = vmax.xlane.f32.xlu1 %v1171_v0  ;;  %v5402_v43 = vmax.f32 %v823_v22, %v5221_v2  ;;  %v570_v0 = vmax.f32 %v4476_v27, %v7274_v36  ;;  %v5411_v15 = vmax.f32 %v824_v1, %v5239_v5  ;;  %v7277_v2 = vld [vmem:[#allocation103_spill] sm:$0xff]  ;;  %v7280_v27 = vld [vmem:[#allocation46_spill] sm:$0xff] }
 0x1e7   : > { %v825_v24 = vmax.f32 %v569_v21, %v7276_v20  ;;  %v572_v51 = vmax.f32 %v4486_v29, %v7280_v27  ;;  %v7281_v22 = vld [vmem:[#allocation102_spill] sm:$0xff]  ;;  %v573_v21 = vmax.f32 %v4483_v28, %v7283_v12  ;;  %v7292_v12 = vld [vmem:[#allocation49_spill] sm:$0xff] }
 0x1e8   : > { %7273 = vst [vmem:[#allocation83_spill] sm:$0xff] %v5402_v43  ;;  %7275 = vst [vmem:[#allocation86_spill] sm:$0xff] %v5411_v15  ;;  %v826_v42 = vmax.f32 %v570_v0, %v7277_v2  ;;  %v1186_v5 = vsel %vm1122_vm1, %v5402_v43, -inf  ;;  %v1189_v41 = vsel %vm1122_vm1, %v5411_v15, -inf  ;;  %v5434_v1 = vpop.permute.xlu0 %942 }
 0x1e9   : > { %1175 = vmax.xlane.f32.xlu0 %v1174_v23  ;;  %v571_v23 = vmax.f32 %v4473_v26, %v7278_v7  ;;  %v5422_v34 = vmax.f32 %v825_v24, %v5237_v62  ;;  %v7282_v26 = vld [vmem:[#allocation105_spill] sm:$0xff]  ;;  %v7285_v24 = vld [vmem:[#allocation104_spill] sm:$0xff] }
 0x1ea   : > { %1178 = vmax.xlane.f32.xlu1 %v1177_v49  ;;  %v5429_v49 = vmax.f32 %v826_v42, %v5257_v4  ;;  %v828_v62 = vmax.f32 %v572_v51, %v7282_v26  ;;  %v7284_v4 = vld [vmem:[#allocation48_spill] sm:$0xff]  ;;  %v829_v28 = vmax.f32 %v573_v21, %v7285_v24  ;;  %v7287_v42 = vld [vmem:[#allocation47_spill] sm:$0xff] }
 0x1eb   : > { %7279 = vst [vmem:[#allocation25_spill] sm:$0xff] %v5422_v34  ;;  %v827_v37 = vmax.f32 %v571_v23, %v7281_v22  ;;  %v1192_v29 = vsel %vm1122_vm1, %v5422_v34, -inf  ;;  %v574_v36 = vmax.f32 %v4496_v31, %v7284_v4  ;;  %v575_v7 = vmax.f32 %v4493_v30, %v7287_v42  ;;  %v7290_v30 = vld [vmem:[#allocation106_spill] sm:$0xff]  ;;  %v7294_v4 = vld [vmem:[#allocation52_spill] sm:$0xff] }
 0x1ec   : > { %v5447_v0 = vmax.f32 %v828_v62, %v5273_v47  ;;  %v1195_v20 = vsel %vm1122_vm1, %v5429_v49, -inf  ;;  %v5458_v31 = vmax.f32 %v829_v28, %v5281_v9  ;;  %v5460_v47 = vpop.permute.xlu0 %946  ;;  %v7291_v9 = vld [vmem:[#allocation109_spill] sm:$0xff]  ;;  %v7296_v28 = vld [vmem:[#allocation108_spill] sm:$0xff] }
 0x1ed   : > { %1181 = vmax.xlane.f32.xlu0 %v1180_v38  ;;  %v5440_v38 = vmax.f32 %v827_v37, %v5255_v60  ;;  %v7286_v60 = vld [vmem:[#allocation107_spill] sm:$0xff]  ;;  %v831_v22 = vmax.f32 %v575_v7, %v7290_v30  ;;  %v4089_v62 = vld [vmem:[%s4348_s21 + $0xf8] sm:$0xff]  ;;  %v7300_v30 = vld [vmem:[#allocation54_spill] sm:$0xff] }
 0x1ee   : > { %1184 = vmax.xlane.f32.xlu1 %v1183_v46  ;;  %v5449_v46 = vpop.permute.xlu1 %944  ;;  %v830_v2 = vmax.f32 %v574_v36, %v7286_v60  ;;  %v577_v21 = vmax.f32 %v4089_v62, %v7292_v12  ;;  %v4091_v7 = vld [vmem:[%s4348_s21 + $0x108] sm:$0xff]  ;;  %v7301_v12 = vld [vmem:[#allocation110_spill] sm:$0xff] }
 0x1ef   : > { %v1198_v23 = vsel %vm1122_vm1, %v5440_v38, -inf }
 0x1f0   : > { %v5467_v51 = vmax.f32 %v830_v2, %v5292_v13  ;;  %v1204_v13 = vsel %vm1122_vm1, %v5458_v31, -inf  ;;  %v833_v60 = vmax.f32 %v577_v21, %v7296_v28  ;;  %v5490_v2 = vpop.permute.xlu0 %950 }
 0x1f1   : > { %1187 = vmax.xlane.f32.xlu0 %v1186_v5  ;;  %v7288_v5 = vld [vmem:[#allocation50_spill] sm:$0xff] }
 0x1f2   : > { %1190 = vmax.xlane.f32.xlu1 %v1189_v41  ;;  %v576_v27 = vmax.f32 %v4506_v33, %v7288_v5  ;;  %7289 = vst [vmem:[#allocation28_spill] sm:$0xff] %v5467_v51  ;;  %v1201_v41 = vsel %vm1122_vm1, %v5447_v0, -inf  ;;  %v5473_v26 = vpop.permute.xlu1 %948  ;;  %v5478_v33 = vmax.f32 %v831_v22, %v5305_v50  ;;  %v1207_v24 = vsel %vm1122_vm1, %v5467_v51, -inf  ;;  %v7297_v50 = vld [vmem:[#allocation111_spill] sm:$0xff] }
 0x1f4   : > { %v832_v37 = vmax.f32 %v576_v27, %v7291_v9  ;;  %7293 = vst [vmem:[#allocation85_spill] sm:$0xff] %v5478_v33  ;;  %v5496_v27 = vmax.f32 %v833_v60, %v5337_v59  ;;  %v7302_v59 = vld [vmem:[#allocation113_spill] sm:$0xff]  ;;  %v4094_v60 = vld [vmem:[%s4348_s21 + $0x120] sm:$0xff] }
 0x1f5   : > { %1193 = vmax.xlane.f32.xlu0 %v1192_v29  ;;  %v4090_v29 = vld [vmem:[%s4348_s21 + $0x100] sm:$0xff] }
 0x1f6   : > { %1196 = vmax.xlane.f32.xlu1 %v1195_v20  ;;  %v578_v36 = vmax.f32 %v4090_v29, %v7294_v4  ;;  %v5485_v20 = vmax.f32 %v832_v37, %v5322_v61  ;;  %7299 = vst [vmem:[#allocation27_spill] sm:$0xff] %v5496_v27  ;;  %v1210_v61 = vsel %vm1122_vm1, %v5478_v33, -inf  ;;  %v5505_v37 = vpop.permute.xlu1 %952  ;;  %v4093_v29 = vld [vmem:[%s4348_s21 + $0x118] sm:$0xff]  ;;  %v1216_v28 = vsel %vm1122_vm1, %v5496_v27, -inf }
 0x1f7   : > { %v7303_v4 = vld [vmem:[#allocation53_spill] sm:$0xff] }
 0x1f8   : > { %7295 = vst [vmem:[#allocation87_spill] sm:$0xff] %v5485_v20  ;;  %v834_v42 = vmax.f32 %v578_v36, %v7297_v50  ;;  %v1213_v62 = vsel %vm1122_vm1, %v5485_v20, -inf  ;;  %v581_v36 = vmax.f32 %v4093_v29, %v7303_v4  ;;  %v7304_v50 = vld [vmem:[#allocation56_spill] sm:$0xff] }
 0x1f9   : > { %1199 = vmax.xlane.f32.xlu0 %v1198_v23  ;;  %v7298_v23 = vld [vmem:[#allocation51_spill] sm:$0xff] }
 0x1fa   : > { %1202 = vmax.xlane.f32.xlu1 %v1201_v41  ;;  %v579_v5 = vmax.f32 %v4091_v7, %v7298_v23  ;;  %v4092_v41 = vld [vmem:[%s4348_s21 + $0x110] sm:$0xff]  ;;  %v5503_v9 = vmax.f32 %v834_v42, %v5348_v19  ;;  %v5516_v19 = vpop.permute.xlu0 %954  ;;  %v582_v42 = vmax.f32 %v4094_v60, %v7304_v50 }
 0x1fb   : > { %v580_v22 = vmax.f32 %v4092_v41, %v7300_v30  ;;  %v5529_v30 = vpop.permute.xlu1 %956 }
 0x1fc   : > { %v835_v21 = vmax.f32 %v579_v5, %v7301_v12  ;;  %v1219_v23 = vsel %vm1122_vm1, %v5503_v9, -inf  ;;  %v7305_v5 = vld [vmem:[#allocation112_spill] sm:$0xff] }
 0x1fd   : > { %1205 = vmax.xlane.f32.xlu0 %v1204_v13  ;;  %v836_v13 = vmax.f32 %v580_v22, %v7302_v59  ;;  %v4095_v22 = vld [vmem:[%s4348_s21 + $0x128] sm:$0xff]  ;;  %v4096_v59 = vld [vmem:[%s4348_s21 + $0x130] sm:$0xff] }
 0x1fe   : > { %1208 = vmax.xlane.f32.xlu1 %v1207_v24  ;;  %v5514_v24 = vmax.f32 %v835_v21, %v5361_v17  ;;  %v7306_v17 = vld [vmem:[#allocation115_spill] sm:$0xff]  ;;  %v5546_v50 = vpop.permute.xlu0 %958 }
 0x1ff   : > { %v5523_v7 = vmax.f32 %v836_v13, %v5378_v54  ;;  %v838_v41 = vmax.f32 %v582_v42, %v7306_v17  ;;  %v7309_v13 = vld [vmem:[#allocation58_spill] sm:$0xff] }
 0x200   : > { %v1222_v54 = vsel %vm1122_vm1, %v5514_v24, -inf  ;;  %v584_v29 = vmax.f32 %v4096_v59, %v7309_v13  ;;  %v7317_v13 = vld [vmem:[#allocation116_spill] sm:$0xff] }
 0x201   : > { %1211 = vmax.xlane.f32.xlu0 %v1210_v61  ;;  %v837_v61 = vmax.f32 %v581_v36, %v7305_v5  ;;  %v5541_v4 = vmax.f32 %v838_v41, %v5404_v25  ;;  %v1225_v36 = vsel %vm1122_vm1, %v5523_v7, -inf  ;;  %v7313_v5 = vld [vmem:[#allocation57_spill] sm:$0xff]  ;;  %v4098_v41 = vld [vmem:[%s4348_s21 + $0x140] sm:$0xff] }
 0x202   : > { %1214 = vmax.xlane.f32.xlu1 %v1213_v62  ;;  %v7307_v62 = vld [vmem:[#allocation55_spill] sm:$0xff] }
 0x203   : > { %v583_v12 = vmax.f32 %v4095_v22, %v7307_v62  ;;  %v5534_v21 = vmax.f32 %v837_v61, %v5393_v18  ;;  %7310 = vst [vmem:[#allocation9_spill] sm:$0xff] %v5541_v4  ;;  %v7312_v18 = vld [vmem:[#allocation117_spill] sm:$0xff]  ;;  %v7315_v22 = vld [vmem:[#allocation60_spill] sm:$0xff]  ;;  %v1231_v59 = vsel %vm1122_vm1, %v5541_v4, -inf }
 0x204   : > { %v840_v42 = vmax.f32 %v584_v29, %v7312_v18  ;;  %v586_v62 = vmax.f32 %v4098_v41, %v7315_v22 }
 0x205   : > { %1217 = vmax.xlane.f32.xlu0 %v1216_v28  ;;  %7308 = vst [vmem:[#allocation30_spill] sm:$0xff] %v5534_v21  ;;  %v7311_v28 = vld [vmem:[#allocation114_spill] sm:$0xff]  ;;  %v1228_v25 = vsel %vm1122_vm1, %v5534_v21, -inf }
 0x206   : > { %1220 = vmax.xlane.f32.xlu1 %v1219_v23  ;;  %v839_v60 = vmax.f32 %v583_v12, %v7311_v28  ;;  %v4097_v23 = vld [vmem:[%s4348_s21 + $0x138] sm:$0xff]  ;;  %v5559_v12 = vmax.f32 %v840_v42, %v5434_v1  ;;  %v4099_v28 = vld [vmem:[%s4348_s21 + $0x148] sm:$0xff]  ;;  %v963_v1 = vpop.permute.xlu0 %962 }
 0x207   : > { %v585_v61 = vmax.f32 %v4097_v23, %v7313_v5  ;;  %v4100_v5 = vld [vmem:[%s4348_s21 + $0x150] sm:$0xff] }
 0x208   : > { %v5552_v17 = vmax.f32 %v839_v60, %v5417_v45  ;;  %7316 = vst [vmem:[#allocation29_spill] sm:$0xff] %v5559_v12  ;;  %v7318_v45 = vld [vmem:[#allocation119_spill] sm:$0xff]  ;;  %v1237_v22 = vsel %vm1122_vm1, %v5559_v12, -inf }
 0x209   : > { %1223 = vmax.xlane.f32.xlu0 %v1222_v54  ;;  %v961_v54 = vpop.permute.xlu1 %960  ;;  %v841_v29 = vmax.f32 %v585_v61, %v7317_v13  ;;  %v7319_v60 = vld [vmem:[#allocation59_spill] sm:$0xff] }
 0x20a   : > { %1226 = vmax.xlane.f32.xlu1 %v1225_v36  ;;  %7314 = vst [vmem:[#allocation89_spill] sm:$0xff] %v5552_v17  ;;  %v842_v36 = vmax.f32 %v586_v62, %v7318_v45  ;;  %v587_v18 = vmax.f32 %v4099_v28, %v7319_v60  ;;  %v1234_v42 = vsel %vm1122_vm1, %v5552_v17, -inf  ;;  %v7323_v62 = vld [vmem:[#allocation118_spill] sm:$0xff]  ;;  %v4101_v45 = vld [vmem:[%s4348_s21 + $0x158] sm:$0xff] }
 0x20b   : > { %v5568_v23 = vmax.f32 %v841_v29, %v5449_v46  ;;  %v7324_v46 = vld [vmem:[#allocation121_spill] sm:$0xff] }
 0x20c   : > { %v5575_v61 = vmax.f32 %v842_v36, %v5460_v47  ;;  %v7325_v28 = vld [vmem:[#allocation61_spill] sm:$0xff]  ;;  %v4102_v36 = vld [vmem:[%s4348_s21 + $0x160] sm:$0xff] }
 0x20d   : > { %1229 = vmax.xlane.f32.xlu0 %v1228_v25  ;;  %7320 = vst [vmem:[#allocation32_spill] sm:$0xff] %v5568_v23  ;;  %v7321_v25 = vld [vmem:[#allocation62_spill] sm:$0xff]  ;;  %v965_v29 = vpop.permute.xlu1 %964  ;;  %v589_v60 = vmax.f32 %v4101_v45, %v7325_v28  ;;  %v1240_v47 = vsel %vm1122_vm1, %v5568_v23, -inf  ;;  %v4103_v45 = vld [vmem:[%s4348_s21 + $0x168] sm:$0xff] }
 0x20e   : > { %1232 = vmax.xlane.f32.xlu1 %v1231_v59  ;;  %v588_v41 = vmax.f32 %v4100_v5, %v7321_v25  ;;  %7322 = vst [vmem:[#allocation88_spill] sm:$0xff] %v5575_v61  ;;  %v843_v59 = vmax.f32 %v587_v18, %v7323_v62  ;;  %v7331_v28 = vld [vmem:[#allocation63_spill] sm:$0xff] }
 0x20f   : > { %v591_v23 = vmax.f32 %v4103_v45, %v7331_v28  ;;  %v7337_v45 = vld [vmem:[#allocation65_spill] sm:$0xff] }
 0x210   : > { %v844_v13 = vmax.f32 %v588_v41, %v7324_v46  ;;  %v5584_v5 = vmax.f32 %v843_v59, %v5473_v26  ;;  %v1243_v41 = vsel %vm1122_vm1, %v5575_v61, -inf  ;;  %v967_v46 = vpop.permute.xlu0 %966  ;;  %v7330_v26 = vld [vmem:[#allocation123_spill] sm:$0xff] }
 0x211   : > { %1235 = vmax.xlane.f32.xlu0 %v1234_v42  ;;  %v7327_v42 = vld [vmem:[#allocation64_spill] sm:$0xff] }
 0x212   : > { %1238 = vmax.xlane.f32.xlu1 %v1237_v22  ;;  %7326 = vst [vmem:[#allocation91_spill] sm:$0xff] %v5584_v5  ;;  %v590_v25 = vmax.f32 %v4102_v36, %v7327_v42  ;;  %v5591_v18 = vmax.f32 %v844_v13, %v5490_v2  ;;  %v7329_v22 = vld [vmem:[#allocation120_spill] sm:$0xff]  ;;  %v1246_v2 = vsel %vm1122_vm1, %v5584_v5, -inf  ;;  %v969_v42 = vpop.permute.xlu1 %968 }
 0x213   : > { %v845_v62 = vmax.f32 %v589_v60, %v7329_v22  ;;  %v4104_v13 = vld [vmem:[%s4348_s21 + $0x170] sm:$0xff] }
 0x214   : > { %7328 = vst [vmem:[#allocation31_spill] sm:$0xff] %v5591_v18  ;;  %v846_v59 = vmax.f32 %v590_v25, %v7330_v26  ;;  %v1249_v25 = vsel %vm1122_vm1, %v5591_v18, -inf  ;;  %v4105_v26 = vld [vmem:[%s4348_s21 + $0x178] sm:$0xff] }
 0x215   : > { %1241 = vmax.xlane.f32.xlu0 %v1240_v47  ;;  %v5600_v12 = vmax.f32 %v845_v62, %v5505_v37  ;;  %v7333_v47 = vld [vmem:[#allocation66_spill] sm:$0xff]  ;;  %v7336_v37 = vld [vmem:[#allocation125_spill] sm:$0xff]  ;;  %v593_v28 = vmax.f32 %v4105_v26, %v7337_v45  ;;  %v4107_v26 = vld [vmem:[%s4348_s21 + $0x188] sm:$0xff] }
 0x216   : > { %1244 = vmax.xlane.f32.xlu1 %v1243_v41  ;;  %v592_v36 = vmax.f32 %v4104_v13, %v7333_v47  ;;  %v5607_v60 = vmax.f32 %v846_v59, %v5516_v19  ;;  %v7335_v41 = vld [vmem:[#allocation122_spill] sm:$0xff]  ;;  %v971_v19 = vpop.permute.xlu0 %970  ;;  %v7339_v13 = vld [vmem:[#allocation68_spill] sm:$0xff]  ;;  %v7343_v45 = vld [vmem:[#allocation67_spill] sm:$0xff] }
 0x217   : > { %7332 = vst [vmem:[#allocation34_spill] sm:$0xff] %v5600_v12  ;;  %v847_v22 = vmax.f32 %v591_v23, %v7335_v41  ;;  %v1252_v59 = vsel %vm1122_vm1, %v5600_v12, -inf  ;;  %v595_v12 = vmax.f32 %v4107_v26, %v7343_v45  ;;  %v7349_v26 = vld [vmem:[#allocation69_spill] sm:$0xff] }
 0x218   : > { %7334 = vst [vmem:[#allocation90_spill] sm:$0xff] %v5607_v60  ;;  %v848_v62 = vmax.f32 %v592_v36, %v7336_v37  ;;  %v1255_v36 = vsel %vm1122_vm1, %v5607_v60, -inf  ;;  %v973_v37 = vpop.permute.xlu1 %972 }
 0x219   : > { %1247 = vmax.xlane.f32.xlu0 %v1246_v2  ;;  %v5616_v5 = vmax.f32 %v847_v22, %v5529_v30  ;;  %v4106_v2 = vld [vmem:[%s4348_s21 + $0x180] sm:$0xff]  ;;  %v7342_v30 = vld [vmem:[#allocation127_spill] sm:$0xff] }
 0x21a   : > { %1250 = vmax.xlane.f32.xlu1 %v1249_v25  ;;  %v594_v47 = vmax.f32 %v4106_v2, %v7339_v13  ;;  %v5623_v23 = vmax.f32 %v848_v62, %v5546_v50  ;;  %v7341_v25 = vld [vmem:[#allocation124_spill] sm:$0xff] }
 0x21b   : > { %7338 = vst [vmem:[#allocation93_spill] sm:$0xff] %v5616_v5  ;;  %v849_v41 = vmax.f32 %v593_v28, %v7341_v25  ;;  %v1258_v50 = vsel %vm1122_vm1, %v5616_v5, -inf  ;;  %v4108_v62 = vld [vmem:[%s4348_s21 + $0x190] sm:$0xff]  ;;  %v975_v25 = vpop.permute.xlu0 %974 }
 0x21c   : > { %7340 = vst [vmem:[#allocation33_spill] sm:$0xff] %v5623_v23  ;;  %v850_v22 = vmax.f32 %v594_v47, %v7342_v30  ;;  %v1261_v28 = vsel %vm1122_vm1, %v5623_v23, -inf  ;;  %v7347_v47 = vld [vmem:[#allocation126_spill] sm:$0xff]  ;;  %v7348_v30 = vld [vmem:[#allocation129_spill] sm:$0xff] }
 0x21d   : > { %1253 = vmax.xlane.f32.xlu0 %v1252_v59  ;;  %v5631_v18 = vmax.f32 %v849_v41, %v961_v54  ;;  %v7345_v59 = vld [vmem:[#allocation70_spill] sm:$0xff]  ;;  %v4109_v41 = vld [vmem:[%s4348_s21 + $0x198] sm:$0xff] }
 0x21e   : > { %1256 = vmax.xlane.f32.xlu1 %v1255_v36  ;;  %v596_v2 = vmax.f32 %v4108_v62, %v7345_v59  ;;  %v5637_v13 = vmax.f32 %v850_v22, %v963_v1  ;;  %v851_v36 = vmax.f32 %v595_v12, %v7347_v47  ;;  %v597_v45 = vmax.f32 %v4109_v41, %v7349_v26  ;;  %v4110_v22 = vld [vmem:[%s4348_s21 + $0x1a0] sm:$0xff]  ;;  %v977_v12 = vpop.permute.xlu1 %976  ;;  %v7355_v41 = vld [vmem:[#allocation71_spill] sm:$0xff] }
 0x21f   : > { %7344 = vst [vmem:[#allocation36_spill] sm:$0xff] %v5631_v18  ;;  %v1264_v1 = vsel %vm1122_vm1, %v5631_v18, -inf }
 0x220   : > { %7346 = vst [vmem:[#allocation92_spill] sm:$0xff] %v5637_v13  ;;  %v852_v54 = vmax.f32 %v596_v2, %v7348_v30  ;;  %v5645_v5 = vmax.f32 %v851_v36, %v965_v29  ;;  %v7353_v2 = vld [vmem:[#allocation128_spill] sm:$0xff]  ;;  %v7354_v30 = vld [vmem:[#allocation131_spill] sm:$0xff] }
 0x221   : > { %1259 = vmax.xlane.f32.xlu0 %v1258_v50  ;;  %v7351_v50 = vld [vmem:[#allocation72_spill] sm:$0xff]  ;;  %v853_v47 = vmax.f32 %v597_v45, %v7353_v2  ;;  %v4111_v36 = vld [vmem:[%s4348_s21 + $0x1a8] sm:$0xff]  ;;  %v7360_v2 = vld [vmem:[#allocation133_spill] sm:$0xff] }
 0x222   : > { %1262 = vmax.xlane.f32.xlu1 %v1261_v28  ;;  %7350 = vst [vmem:[#allocation95_spill] sm:$0xff] %v5645_v5  ;;  %v598_v62 = vmax.f32 %v4110_v22, %v7351_v50  ;;  %v5651_v59 = vmax.f32 %v852_v54, %v967_v46  ;;  %v1267_v28 = vsel %vm1122_vm1, %v5637_v13, -inf  ;;  %v599_v26 = vmax.f32 %v4111_v36, %v7355_v41  ;;  %v979_v22 = vpop.permute.xlu0 %978  ;;  %v4112_v54 = vld [vmem:[%s4348_s21 + $0x1b0] sm:$0xff]  ;;  %v7361_v36 = vld [vmem:[#allocation73_spill] sm:$0xff] }
 0x223   : > { %v5659_v18 = vmax.f32 %v853_v47, %v969_v42  ;;  %v1270_v46 = vsel %vm1122_vm1, %v5645_v5, -inf  ;;  %v981_v47 = vpop.permute.xlu1 %980 }
 0x224   : > { %7352 = vst [vmem:[#allocation35_spill] sm:$0xff] %v5651_v59  ;;  %v854_v29 = vmax.f32 %v598_v62, %v7354_v30  ;;  %v1273_v45 = vsel %vm1122_vm1, %v5651_v59, -inf  ;;  %v7359_v62 = vld [vmem:[#allocation130_spill] sm:$0xff]  ;;  %v4113_v30 = vld [vmem:[%s4348_s21 + $0x1b8] sm:$0xff] }
 0x225   : > { %1265 = vmax.xlane.f32.xlu0 %v1264_v1  ;;  %7356 = vst [vmem:[#allocation38_spill] sm:$0xff] %v5659_v18  ;;  %v7357_v1 = vld [vmem:[#allocation74_spill] sm:$0xff]  ;;  %v601_v41 = vmax.f32 %v4113_v30, %v7361_v36  ;;  %v7367_v30 = vld [vmem:[#allocation75_spill] sm:$0xff] }
 0x226   : > { %1268 = vmax.xlane.f32.xlu1 %v1267_v28  ;;  %v600_v50 = vmax.f32 %v4112_v54, %v7357_v1  ;;  %v5665_v13 = vmax.f32 %v854_v29, %v971_v19  ;;  %v855_v28 = vmax.f32 %v599_v26, %v7359_v62  ;;  %v1276_v19 = vsel %vm1122_vm1, %v5659_v18, -inf  ;;  %v4114_v29 = vld [vmem:[%s4348_s21 + $0x1c0] sm:$0xff]  ;;  %v983_v62 = vpop.permute.xlu0 %982 }
 0x228   : > { %7358 = vst [vmem:[#allocation94_spill] sm:$0xff] %v5665_v13  ;;  %v856_v42 = vmax.f32 %v600_v50, %v7360_v2  ;;  %v5673_v5 = vmax.f32 %v855_v28, %v973_v37  ;;  %v1279_v26 = vsel %vm1122_vm1, %v5665_v13, -inf  ;;  %v7365_v50 = vld [vmem:[#allocation132_spill] sm:$0xff]  ;;  %v7366_v2 = vld [vmem:[#allocation135_spill] sm:$0xff] }
 0x229   : > { %1271 = vmax.xlane.f32.xlu0 %v1270_v46  ;;  %v7363_v46 = vld [vmem:[#allocation76_spill] sm:$0xff]  ;;  %v4115_v28 = vld [vmem:[%s4348_s21 + $0x1c8] sm:$0xff] }
 0x22a   : > { %1274 = vmax.xlane.f32.xlu1 %v1273_v45  ;;  %7362 = vst [vmem:[#allocation97_spill] sm:$0xff] %v5673_v5  ;;  %v602_v54 = vmax.f32 %v4114_v29, %v7363_v46  ;;  %v5679_v1 = vmax.f32 %v856_v42, %v975_v25  ;;  %v857_v45 = vmax.f32 %v601_v41, %v7365_v50  ;;  %v1282_v25 = vsel %vm1122_vm1, %v5673_v5, -inf  ;;  %v4116_v42 = vld [vmem:[%s4348_s21 + $0x1d0] sm:$0xff]  ;;  %v985_v41 = vpop.permute.xlu1 %984 }
 0x22b   : > { %v603_v36 = vmax.f32 %v4115_v28, %v7367_v30  ;;  %v7373_v28 = vld [vmem:[#allocation77_spill] sm:$0xff] }
 0x22c   : > { %7364 = vst [vmem:[#allocation37_spill] sm:$0xff] %v5679_v1  ;;  %v858_v37 = vmax.f32 %v602_v54, %v7366_v2  ;;  %v5687_v18 = vmax.f32 %v857_v45, %v977_v12  ;;  %v7371_v54 = vld [vmem:[#allocation134_spill] sm:$0xff]  ;;  %v7372_v2 = vld [vmem:[#allocation137_spill] sm:$0xff] }
 0x22d   : > { %1277 = vmax.xlane.f32.xlu0 %v1276_v19  ;;  %v7369_v19 = vld [vmem:[#allocation78_spill] sm:$0xff]  ;;  %v859_v50 = vmax.f32 %v603_v36, %v7371_v54  ;;  %v4117_v45 = vld [vmem:[%s4348_s21 + $0x1d8] sm:$0xff]  ;;  %v7378_v54 = vld [vmem:[#allocation12_spill] sm:$0xff] }
 0x22e   : > { %1280 = vmax.xlane.f32.xlu1 %v1279_v26  ;;  %7368 = vst [vmem:[#allocation40_spill] sm:$0xff] %v5687_v18  ;;  %v604_v29 = vmax.f32 %v4116_v42, %v7369_v19  ;;  %v5693_v46 = vmax.f32 %v858_v37, %v979_v22  ;;  %v1285_v26 = vsel %vm1122_vm1, %v5679_v1, -inf  ;;  %v605_v30 = vmax.f32 %v4117_v45, %v7373_v28  ;;  %v987_v42 = vpop.permute.xlu0 %986  ;;  %v4118_v37 = vld [vmem:[%s4348_s21 + $0x1e0] sm:$0xff]  ;;  %v7379_v45 = vld [vmem:[#allocation79_spill] sm:$0xff] }
 0x22f   : > { %v5701_v5 = vmax.f32 %v859_v50, %v981_v47  ;;  %v1288_v22 = vsel %vm1122_vm1, %v5687_v18, -inf  ;;  %v989_v50 = vpop.permute.xlu1 %988 }
 0x230   : > { %7370 = vst [vmem:[#allocation96_spill] sm:$0xff] %v5693_v46  ;;  %v860_v12 = vmax.f32 %v604_v29, %v7372_v2  ;;  %v1291_v36 = vsel %vm1122_vm1, %v5693_v46, -inf  ;;  %v7377_v29 = vld [vmem:[#allocation136_spill] sm:$0xff]  ;;  %v4119_v2 = vld [vmem:[%s4348_s21 + $0x1e8] sm:$0xff] }
 0x231   : > { %1283 = vmax.xlane.f32.xlu0 %v1282_v25  ;;  %7374 = vst [vmem:[#allocation99_spill] sm:$0xff] %v5701_v5  ;;  %v7375_v25 = vld [vmem:[#allocation80_spill] sm:$0xff]  ;;  %v607_v28 = vmax.f32 %v4119_v2, %v7379_v45 }
 0x232   : > { %1286 = vmax.xlane.f32.xlu1 %v1285_v26  ;;  %v606_v19 = vmax.f32 %v4118_v37, %v7375_v25  ;;  %v5707_v1 = vmax.f32 %v860_v12, %v983_v62  ;;  %v861_v26 = vmax.f32 %v605_v30, %v7377_v29  ;;  %v1294_v62 = vsel %vm1122_vm1, %v5701_v5, -inf  ;;  %v4120_v12 = vld [vmem:[%s4348_s21 + $0x1f0] sm:$0xff]  ;;  %v991_v29 = vpop.permute.xlu0 %990 }
 0x234   : > { %7376 = vst [vmem:[#allocation39_spill] sm:$0xff] %v5707_v1  ;;  %v862_v47 = vmax.f32 %v606_v19, %v7378_v54  ;;  %v5715_v18 = vmax.f32 %v861_v26, %v985_v41  ;;  %v1297_v30 = vsel %vm1122_vm1, %v5707_v1, -inf  ;;  %v7384_v54 = vld [vmem:[#allocation14_spill] sm:$0xff]  ;;  %v4121_v41 = vld [vmem:[%s4348_s21 + $0x1f8] sm:$0xff] }
 0x235   : > { %1289 = vmax.xlane.f32.xlu0 %v1288_v22  ;;  %v7381_v22 = vld [vmem:[#allocation82_spill] sm:$0xff]  ;;  %v7385_v26 = vld [vmem:[#allocation81_spill] sm:$0xff] }
 0x236   : > { %1292 = vmax.xlane.f32.xlu1 %v1291_v36  ;;  %7380 = vst [vmem:[#allocation42_spill] sm:$0xff] %v5715_v18  ;;  %v608_v37 = vmax.f32 %v4120_v12, %v7381_v22  ;;  %v5721_v25 = vmax.f32 %v862_v47, %v987_v42  ;;  %v7383_v36 = vld [vmem:[#allocation11_spill] sm:$0xff]  ;;  %v609_v45 = vmax.f32 %v4121_v41, %v7385_v26  ;;  %v1300_v12 = vsel %vm1122_vm1, %v5715_v18, -inf  ;;  %v993_v42 = vpop.permute.xlu1 %992 }
 0x237   : > { %v863_v19 = vmax.f32 %v607_v28, %v7383_v36  ;;  %v7387_v28 = vld [vmem:[#allocation13_spill] sm:$0xff]  ;;  %v1322_v41 = vsel %vm1315_vm2, %v5219_v63, -inf }
 0x238   : > { %7382 = vst [vmem:[#allocation98_spill] sm:$0xff] %v5721_v25  ;;  %v864_v2 = vmax.f32 %v608_v37, %v7384_v54  ;;  %v865_v22 = vmax.f32 %v609_v45, %v7387_v28  ;;  %v6982_v54 = vlaneseq  ;;  %v1325_v45 = vsel %vm1315_vm2, %v5235_v52, -inf }
 0x239   : > { %1295 = vmax.xlane.f32.xlu0 %v1294_v62  ;;  %v5729_v46 = vmax.f32 %v863_v19, %v989_v50  ;;  %v1303_v62 = vsel %vm1122_vm1, %v5721_v25, -inf  ;;  %v7388_v19 = vld [vmem:[#allocation20_spill] sm:$0xff] }
 0x23a   : > { %1298 = vmax.xlane.f32.xlu1 %v1297_v30  ;;  %v5733_v47 = vmax.f32 %v864_v2, %v991_v29  ;;  %v5738_v30 = vmax.f32 %v865_v22, %v993_v42  ;;  %v1316_v29 = vsel %vm1315_vm2, %v7388_v19, -inf  ;;  %v1319_v2 = vsel %vm1315_vm2, %v5229_v35, -inf }
 0x23b   : > { %v1306_v37 = vsel %vm1122_vm1, %v5729_v46, -inf  ;;  %v5753_v26 = vand.u32 127, %v6982_v54 }
 0x23c   : > { %7386 = vst [vmem:[#allocation101_spill] sm:$0xff] %v5733_v47  ;;  %v1309_v50 = vsel %vm1122_vm1, %v5733_v47, -inf  ;;  %v1312_v36 = vsel %vm1122_vm1, %v5738_v30, -inf  ;;  %vm2298_vm1 = vcmask 1047559  }
 0x23d   : > { %1301 = vmax.xlane.f32.xlu0 %v1300_v12  ;;  %v5758_v12 = vshrl.u32 %v6982_v54, 7  ;;  %v1964_v42 = vadd.s32 4294967288, %v5753_v26  ;;  %v1971_v28 = vadd.s32 4294967280, %v5753_v26  ;;  %v1337_v54 = vsel %vm1315_vm2, %v5271_v6, -inf }
 0x23e   : > { %1304 = vmax.xlane.f32.xlu1 %v1303_v62  ;;  %v1328_v62 = vsel %vm1315_vm2, %v5245_v44, -inf  ;;  %v1340_v6 = vsel %vm1315_vm2, %v5279_v32, -inf  ;;  %v1343_v32 = vsel %vm1315_vm2, %v5290_v8, -inf }
 0x23f   : > { %7389 = vst [vmem:[#allocation41_spill] sm:$0xff] %v5758_v12 }
 0x241   : > { %1307 = vmax.xlane.f32.xlu0 %v1306_v37  ;;  %v1978_v37 = vadd.s32 4294967272, %v5753_v26 }
 0x242   : > { %1310 = vmax.xlane.f32.xlu1 %v1309_v50  ;;  %v5767_v50 = vsub.s32 %v5753_v26, %v5758_v12 }
 0x244   : > { %7390 = vst [vmem:[#allocation44_spill] sm:$0xff] %v5767_v50 }
 0x245   : > { %1313 = vmax.xlane.f32.xlu0 %v1312_v36  ;;  %v1331_v36 = vsel %vm1315_vm2, %v5253_v58, -inf  ;;  %v1992_v58 = vadd.s32 4294967256, %v5753_v26 }
 0x246   : > { %1317 = vmax.xlane.f32.xlu1 %v1316_v29  ;;  %v5772_v29 = vsub.s32 %v1964_v42, %v5758_v12  ;;  %v5783_v42 = vsub.s32 %v1978_v37, %v5758_v12 }
 0x247   : > { %v5799_v35 = vsub.s32 %v1992_v58, %v5758_v12 }
 0x248   : > { %7391 = vst [vmem:[#allocation100_spill] sm:$0xff] %v5772_v29  ;;  %7393 = vst [vmem:[#allocation43_spill] sm:$0xff] %v5783_v42 }
 0x249   : > { %1320 = vmax.xlane.f32.xlu0 %v1319_v2  ;;  %v1985_v2 = vadd.s32 4294967264, %v5753_v26  ;;  %7395 = vst [vmem:[#allocation102_spill] sm:$0xff] %v5799_v35 }
 0x24a   : > { %1323 = vmax.xlane.f32.xlu1 %v1322_v41  ;;  %v1334_v41 = vsel %vm1315_vm2, %v5263_v3, -inf }
 0x24d   : > { %1326 = vmax.xlane.f32.xlu0 %v1325_v45  ;;  %v5778_v45 = vsub.s32 %v1971_v28, %v5758_v12  ;;  %v5789_v28 = vsub.s32 %v1985_v2, %v5758_v12 }
 0x24e   : > { %1329 = vmax.xlane.f32.xlu1 %v1328_v62  ;;  %v1125_v22 = vpop.xlane.xlu0 %1124 }
 0x24f   : > { %7392 = vst [vmem:[#allocation103_spill] sm:$0xff] %v5778_v45  ;;  %7394 = vst [vmem:[#allocation46_spill] sm:$0xff] %v5789_v28 }
 0x251   : > { %1332 = vmax.xlane.f32.xlu0 %v1331_v36  ;;  %v1963_v36 = vrot.slane %v1125_v22, %v5767_v50 }
 0x252   : > { %1335 = vmax.xlane.f32.xlu1 %v1334_v41  ;;  %v1131_v62 = vpop.xlane.xlu0 %1130  ;;  %v1999_v41 = vadd.s32 4294967248, %v5753_v26 }
 0x253   : > { %v1128_v44 = vpop.xlane.xlu1 %1127  ;;  %v1975_v52 = vrot.slane %v1131_v62, %v5778_v45  ;;  %v2006_v62 = vadd.s32 4294967240, %v5753_v26 }
 0x254   : > { %v1968_v3 = vrot.slane %v1128_v44, %v5772_v29 }
 0x255   : > { %1338 = vmax.xlane.f32.xlu0 %v1337_v54 }
 0x256   : > { %v1970_v37 = vsel %vm1969_vm3, %v1968_v3, %v1963_v36  ;;  %1341 = vmax.xlane.f32.xlu1 %v1340_v6  ;;  %v1134_v63 = vpop.xlane.xlu0 %1133  ;;  %v5806_v3 = vsub.s32 %v1999_v41, %v5758_v12 }
 0x257   : > { %v1977_v22 = vsel %vm7036_vm4, %v1975_v52, %v1970_v37  ;;  %v1982_v44 = vrot.slane %v1134_v63, %v5783_v42  ;;  %v1137_v2 = vpop.xlane.xlu1 %1136  ;;  %v1346_v63 = vsel %vm1315_vm2, %v5299_v40, -inf }
 0x258   : > { %v1989_v54 = vrot.slane %v1137_v2, %v5789_v28  ;;  %7396 = vst [vmem:[#allocation105_spill] sm:$0xff] %v5806_v3  ;;  %v5814_v2 = vsub.s32 %v2006_v62, %v5758_v12 }
 0x259   : > { %v1984_v6 = vsel %vm7035_vm5, %v1982_v44, %v1977_v22  ;;  %1344 = vmax.xlane.f32.xlu0 %v1343_v32  ;;  %v1349_v32 = vsel %vm1315_vm2, %v5310_v10, -inf  ;;  %v1352_v44 = vsel %vm1315_vm2, %v5317_v53, -inf }
 0x25a   : > { %v1991_v52 = vsel %vm7034_vm6, %v1989_v54, %v1984_v6  ;;  %1347 = vmax.xlane.f32.xlu1 %v1346_v63  ;;  %v1140_v58 = vpop.xlane.xlu0 %1139  ;;  %7397 = vst [vmem:[#allocation45_spill] sm:$0xff] %v5814_v2 }
 0x25b   : > { %v1996_v36 = vrot.slane %v1140_v58, %v5799_v35  ;;  %v1143_v37 = vpop.xlane.xlu1 %1142  ;;  %v1355_v58 = vsel %vm1315_vm2, %v5328_v11, -inf }
 0x25c   : > { %v2003_v41 = vrot.slane %v1143_v37, %v5806_v3 }
 0x25d   : > { %v1998_v22 = vsel %vm7033_vm7, %v1996_v36, %v1991_v52  ;;  %1350 = vmax.xlane.f32.xlu0 %v1349_v32  ;;  %v1358_v52 = vsel %vm1315_vm2, %v5335_v48, -inf }
 0x25e   : > { %v2005_v54 = vsel %vm7029_vm8, %v2003_v41, %v1998_v22  ;;  %1353 = vmax.xlane.f32.xlu1 %v1352_v44  ;;  %v1146_v6 = vpop.xlane.xlu0 %1145 }
 0x25f   : > { %v2010_v63 = vrot.slane %v1146_v6, %v5814_v2  ;;  %v1149_v62 = vpop.xlane.xlu1 %1148  ;;  %v1361_v6 = vsel %vm1315_vm2, %v5346_v55, -inf }
 0x260   : > { %v2016_v32 = vrot.slane %v1149_v62, %v5767_v50 }
 0x261   : > { %v2012_v37 = vsel %vm7032_vm9, %v2010_v63, %v2005_v54  ;;  %1356 = vmax.xlane.f32.xlu0 %v1355_v58  ;;  %v1364_v54 = vsel %vm1315_vm2, %v5355_v14, -inf }
 0x262   : > { %1359 = vmax.xlane.f32.xlu1 %v1358_v52  ;;  %v1152_v36 = vpop.xlane.xlu0 %1151 }
 0x263   : > { %v2020_v41 = vrot.slane %v1152_v36, %v5772_v29  ;;  %v1155_v22 = vpop.xlane.xlu1 %1154 }
 0x264   : > { %v2025_v44 = vrot.slane %v1155_v22, %v5778_v45  ;;  %v1367_v22 = vsel %vm1315_vm2, %v5366_v39, -inf }
 0x265   : > { %v2021_v11 = vsel %vm1969_vm3, %v2020_v41, %v2016_v32  ;;  %1362 = vmax.xlane.f32.xlu0 %v1361_v6  ;;  %v1370_v32 = vsel %vm1315_vm2, %v5373_v16, -inf }
 0x266   : > { %v2026_v63 = vsel %vm7036_vm4, %v2025_v44, %v2021_v11  ;;  %1365 = vmax.xlane.f32.xlu1 %v1364_v54  ;;  %v1158_v58 = vpop.xlane.xlu0 %1157 }
 0x267   : > { %v2030_v62 = vrot.slane %v1158_v58, %v5783_v42  ;;  %v1161_v52 = vpop.xlane.xlu1 %1160  ;;  %v1373_v58 = vsel %vm1315_vm2, %v5384_v56, -inf }
 0x268   : > { %v2035_v36 = vrot.slane %v1161_v52, %v5789_v28 }
 0x269   : > { %v2031_v55 = vsel %vm7035_vm5, %v2030_v62, %v2026_v63  ;;  %1368 = vmax.xlane.f32.xlu0 %v1367_v22  ;;  %v1376_v63 = vsel %vm1315_vm2, %v5391_v57, -inf }
 0x26a   : > { %v2036_v41 = vsel %vm7034_vm6, %v2035_v36, %v2031_v55  ;;  %1371 = vmax.xlane.f32.xlu1 %v1370_v32  ;;  %v1164_v11 = vpop.xlane.xlu0 %1163  ;;  %v1379_v32 = vsel %vm1315_vm2, %v5402_v43, -inf }
 0x26b   : > { %v2040_v44 = vrot.slane %v1164_v11, %v5799_v35  ;;  %v1167_v6 = vpop.xlane.xlu1 %1166 }
 0x26c   : > { %v2045_v54 = vrot.slane %v1167_v6, %v5806_v3 }
 0x26d   : > { %v2041_v52 = vsel %vm7033_vm7, %v2040_v44, %v2036_v41  ;;  %1374 = vmax.xlane.f32.xlu0 %v1373_v58  ;;  %v1382_v41 = vsel %vm1315_vm2, %v5411_v15, -inf }
 0x26e   : > { %v2046_v62 = vsel %vm7029_vm8, %v2045_v54, %v2041_v52  ;;  %1377 = vmax.xlane.f32.xlu1 %v1376_v63  ;;  %v1170_v55 = vpop.xlane.xlu0 %1169 }
 0x26f   : > { %v2050_v36 = vrot.slane %v1170_v55, %v5814_v2  ;;  %v1173_v22 = vpop.xlane.xlu1 %1172  ;;  %v1385_v55 = vsel %vm1315_vm2, %v5422_v34, -inf }
 0x270   : > { %v2055_v54 = vrot.slane %v1173_v22, %v5767_v50 }
 0x271   : > { %v2051_v11 = vsel %vm7032_vm9, %v2050_v36, %v2046_v62  ;;  %1380 = vmax.xlane.f32.xlu0 %v1379_v32  ;;  %v1388_v36 = vsel %vm1315_vm2, %v5429_v49, -inf }
 0x272   : > { %v2287_v44 = vsel %vm2286_vm10, %v2051_v11, %v2012_v37  ;;  %1383 = vmax.xlane.f32.xlu1 %v1382_v41  ;;  %v1176_v6 = vpop.xlane.xlu0 %1175 }
 0x273   : > { %v2059_v58 = vrot.slane %v1176_v6, %v5772_v29  ;;  %v1179_v52 = vpop.xlane.xlu1 %1178  ;;  %v1391_v6 = vsel %vm1315_vm2, %v5440_v38, -inf }
 0x274   : > { %v2064_v63 = vrot.slane %v1179_v52, %v5778_v45 }
 0x275   : > { %v2060_v62 = vsel %vm1969_vm3, %v2059_v58, %v2055_v54  ;;  %1386 = vmax.xlane.f32.xlu0 %v1385_v55  ;;  %v1394_v54 = vsel %vm1315_vm2, %v5447_v0, -inf }
 0x276   : > { %v2065_v37 = vsel %vm7036_vm4, %v2064_v63, %v2060_v62  ;;  %1389 = vmax.xlane.f32.xlu1 %v1388_v36  ;;  %v1182_v32 = vpop.xlane.xlu0 %1181 }
 0x277   : > { %v2069_v22 = vrot.slane %v1182_v32, %v5783_v42  ;;  %v1185_v11 = vpop.xlane.xlu1 %1184  ;;  %v1397_v32 = vsel %vm1315_vm2, %v5458_v31, -inf }
 0x278   : > { %v2074_v41 = vrot.slane %v1185_v11, %v5789_v28 }
 0x279   : > { %v2070_v52 = vsel %vm7035_vm5, %v2069_v22, %v2065_v37  ;;  %1392 = vmax.xlane.f32.xlu0 %v1391_v6  ;;  %v1400_v37 = vsel %vm1315_vm2, %v5467_v51, -inf }
 0x27a   : > { %v2075_v58 = vsel %vm7034_vm6, %v2074_v41, %v2070_v52  ;;  %1395 = vmax.xlane.f32.xlu1 %v1394_v54  ;;  %v1188_v63 = vpop.xlane.xlu0 %1187  ;;  %v1403_v54 = vsel %vm1315_vm2, %v5478_v33, -inf }
 0x27b   : > { %v2079_v55 = vrot.slane %v1188_v63, %v5799_v35  ;;  %v1191_v62 = vpop.xlane.xlu1 %1190 }
 0x27c   : > { %v2084_v36 = vrot.slane %v1191_v62, %v5806_v3 }
 0x27d   : > { %v2080_v11 = vsel %vm7033_vm7, %v2079_v55, %v2075_v58  ;;  %1398 = vmax.xlane.f32.xlu0 %v1397_v32  ;;  %v1406_v58 = vsel %vm1315_vm2, %v5485_v20, -inf }
 0x27e   : > { %v2085_v22 = vsel %vm7029_vm8, %v2084_v36, %v2080_v11  ;;  %1401 = vmax.xlane.f32.xlu1 %v1400_v37  ;;  %v1194_v41 = vpop.xlane.xlu0 %1193 }
 0x27f   : > { %v2089_v6 = vrot.slane %v1194_v41, %v5814_v2  ;;  %v1197_v52 = vpop.xlane.xlu1 %1196  ;;  %v1409_v41 = vsel %vm1315_vm2, %v5496_v27, -inf }
 0x280   : > { %v2094_v36 = vrot.slane %v1197_v52, %v5767_v50 }
 0x281   : > { %v2090_v63 = vsel %vm7032_vm9, %v2089_v6, %v2085_v22  ;;  %1404 = vmax.xlane.f32.xlu0 %v1403_v54  ;;  %v1412_v6 = vsel %vm1315_vm2, %v5503_v9, -inf }
 0x282   : > { %v2289_v55 = vsel %vm2288_vm11, %v2090_v63, %v2287_v44  ;;  %1407 = vmax.xlane.f32.xlu1 %v1406_v58  ;;  %v1200_v62 = vpop.xlane.xlu0 %1199 }
 0x283   : > { %v2098_v32 = vrot.slane %v1200_v62, %v5772_v29  ;;  %v1203_v11 = vpop.xlane.xlu1 %1202  ;;  %v1415_v62 = vsel %vm1315_vm2, %v5514_v24, -inf }
 0x284   : > { %v2103_v37 = vrot.slane %v1203_v11, %v5778_v45 }
 0x285   : > { %v2099_v22 = vsel %vm1969_vm3, %v2098_v32, %v2094_v36  ;;  %1410 = vmax.xlane.f32.xlu0 %v1409_v41  ;;  %v1418_v36 = vsel %vm1315_vm2, %v5523_v7, -inf }
 0x286   : > { %v2104_v44 = vsel %vm7036_vm4, %v2103_v37, %v2099_v22  ;;  %1413 = vmax.xlane.f32.xlu1 %v1412_v6  ;;  %v1206_v54 = vpop.xlane.xlu0 %1205 }
 0x287   : > { %v2108_v52 = vrot.slane %v1206_v54, %v5783_v42  ;;  %v1209_v63 = vpop.xlane.xlu1 %1208  ;;  %v1421_v54 = vsel %vm1315_vm2, %v5534_v21, -inf }
 0x288   : > { %v2113_v58 = vrot.slane %v1209_v63, %v5789_v28 }
 0x289   : > { %v2109_v11 = vsel %vm7035_vm5, %v2108_v52, %v2104_v44  ;;  %1416 = vmax.xlane.f32.xlu0 %v1415_v62  ;;  %v1424_v44 = vsel %vm1315_vm2, %v5541_v4, -inf  ;;  %v7399_v4 = vld [vmem:[#allocation32_spill] sm:$0xff] }
 0x28a   : > { %v2114_v32 = vsel %vm7034_vm6, %v2113_v58, %v2109_v11  ;;  %1419 = vmax.xlane.f32.xlu1 %v1418_v36  ;;  %v1212_v37 = vpop.xlane.xlu0 %1211  ;;  %v1427_v36 = vsel %vm1315_vm2, %v5552_v17, -inf  ;;  %v1433_v17 = vsel %vm1315_vm2, %v7399_v4, -inf }
 0x28b   : > { %v2118_v41 = vrot.slane %v1212_v37, %v5799_v35  ;;  %v1215_v22 = vpop.xlane.xlu1 %1214 }
 0x28c   : > { %v2123_v6 = vrot.slane %v1215_v22, %v5806_v3  ;;  %v7398_v22 = vld [vmem:[#allocation29_spill] sm:$0xff] }
 0x28d   : > { %v2119_v63 = vsel %vm7033_vm7, %v2118_v41, %v2114_v32  ;;  %1422 = vmax.xlane.f32.xlu0 %v1421_v54  ;;  %v1430_v32 = vsel %vm1315_vm2, %v7398_v22, -inf }
 0x28e   : > { %v2124_v52 = vsel %vm7029_vm8, %v2123_v6, %v2119_v63  ;;  %1425 = vmax.xlane.f32.xlu1 %v1424_v44  ;;  %v1218_v58 = vpop.xlane.xlu0 %1217 }
 0x28f   : > { %v2128_v62 = vrot.slane %v1218_v58, %v5814_v2  ;;  %v1221_v11 = vpop.xlane.xlu1 %1220 }
 0x290   : > { %v2133_v6 = vrot.slane %v1221_v11, %v5767_v50 }
 0x291   : > { %v2129_v37 = vsel %vm7032_vm9, %v2128_v62, %v2124_v52  ;;  %1428 = vmax.xlane.f32.xlu0 %v1427_v36  ;;  %v1436_v62 = vsel %vm1315_vm2, %v5575_v61, -inf  ;;  %v7402_v61 = vld [vmem:[#allocation34_spill] sm:$0xff] }
 0x292   : > { %v2291_v41 = vsel %vm7055_vm12, %v2129_v37, %v2289_v55  ;;  %1431 = vmax.xlane.f32.xlu1 %v1430_v32  ;;  %v1224_v54 = vpop.xlane.xlu0 %1223 }
 0x293   : > { %v2137_v63 = vrot.slane %v1224_v54, %v5772_v29  ;;  %v1227_v44 = vpop.xlane.xlu1 %1226  ;;  %v7400_v54 = vld [vmem:[#allocation91_spill] sm:$0xff] }
 0x294   : > { %v2142_v58 = vrot.slane %v1227_v44, %v5778_v45  ;;  %v1439_v44 = vsel %vm1315_vm2, %v7400_v54, -inf }
 0x295   : > { %v2138_v52 = vsel %vm1969_vm3, %v2137_v63, %v2133_v6  ;;  %1434 = vmax.xlane.f32.xlu0 %v1433_v17  ;;  %v7401_v6 = vld [vmem:[#allocation31_spill] sm:$0xff] }
 0x296   : > { %v2143_v55 = vsel %vm7036_vm4, %v2142_v58, %v2138_v52  ;;  %1437 = vmax.xlane.f32.xlu1 %v1436_v62  ;;  %v1230_v36 = vpop.xlane.xlu0 %1229  ;;  %v1442_v17 = vsel %vm1315_vm2, %v7401_v6, -inf }
 0x297   : > { %v2147_v11 = vrot.slane %v1230_v36, %v5783_v42  ;;  %v1233_v37 = vpop.xlane.xlu1 %1232 }
 0x298   : > { %v2152_v32 = vrot.slane %v1233_v37, %v5789_v28  ;;  %v1445_v37 = vsel %vm1315_vm2, %v7402_v61, -inf }
 0x299   : > { %v2148_v4 = vsel %vm7035_vm5, %v2147_v11, %v2143_v55  ;;  %1440 = vmax.xlane.f32.xlu0 %v1439_v44  ;;  %v1448_v55 = vsel %vm1315_vm2, %v5607_v60, -inf  ;;  %v7404_v60 = vld [vmem:[#allocation36_spill] sm:$0xff] }
 0x29a   : > { %v2153_v63 = vsel %vm7034_vm6, %v2152_v32, %v2148_v4  ;;  %1443 = vmax.xlane.f32.xlu1 %v1442_v17  ;;  %v1236_v58 = vpop.xlane.xlu0 %1235  ;;  %v7403_v17 = vld [vmem:[#allocation93_spill] sm:$0xff] }
 0x29b   : > { %v2157_v52 = vrot.slane %v1236_v58, %v5799_v35  ;;  %v1239_v62 = vpop.xlane.xlu1 %1238  ;;  %v1451_v58 = vsel %vm1315_vm2, %v7403_v17, -inf  ;;  %v1457_v17 = vsel %vm1315_vm2, %v7404_v60, -inf }
 0x29c   : > { %v2162_v36 = vrot.slane %v1239_v62, %v5806_v3 }
 0x29d   : > { %v2158_v54 = vsel %vm7033_vm7, %v2157_v52, %v2153_v63  ;;  %1446 = vmax.xlane.f32.xlu0 %v1445_v37  ;;  %v1454_v63 = vsel %vm1315_vm2, %v5623_v23, -inf  ;;  %v7406_v23 = vld [vmem:[#allocation95_spill] sm:$0xff] }
 0x29e   : > { %v2163_v11 = vsel %vm7029_vm8, %v2162_v36, %v2158_v54  ;;  %1449 = vmax.xlane.f32.xlu1 %v1448_v55  ;;  %v1242_v4 = vpop.xlane.xlu0 %1241 }
 0x29f   : > { %v2167_v32 = vrot.slane %v1242_v4, %v5814_v2  ;;  %v1245_v44 = vpop.xlane.xlu1 %1244 }
 0x2a0   : > { %v2172_v54 = vrot.slane %v1245_v44, %v5767_v50 }
 0x2a1   : > { %v2168_v62 = vsel %vm7032_vm9, %v2167_v32, %v2163_v11  ;;  %1452 = vmax.xlane.f32.xlu0 %v1451_v58  ;;  %v7405_v32 = vld [vmem:[#allocation92_spill] sm:$0xff] }
 0x2a2   : > { %v2293_v52 = vsel %vm2292_vm13, %v2168_v62, %v2291_v41  ;;  %1455 = vmax.xlane.f32.xlu1 %v1454_v63  ;;  %v1248_v37 = vpop.xlane.xlu0 %1247  ;;  %v1460_v58 = vsel %vm1315_vm2, %v7405_v32, -inf }
 0x2a3   : > { %v2176_v36 = vrot.slane %v1248_v37, %v5772_v29  ;;  %v1251_v55 = vpop.xlane.xlu1 %1250 }
 0x2a4   : > { %v2181_v4 = vrot.slane %v1251_v55, %v5778_v45  ;;  %v1463_v55 = vsel %vm1315_vm2, %v7406_v23, -inf }
 0x2a5   : > { %v2177_v11 = vsel %vm1969_vm3, %v2176_v36, %v2172_v54  ;;  %1458 = vmax.xlane.f32.xlu0 %v1457_v17  ;;  %v1466_v17 = vsel %vm1315_vm2, %v5651_v59, -inf }
 0x2a6   : > { %v2182_v41 = vsel %vm7036_vm4, %v2181_v4, %v2177_v11  ;;  %1461 = vmax.xlane.f32.xlu1 %v1460_v58  ;;  %v1254_v62 = vpop.xlane.xlu0 %1253 }
 0x2a7   : > { %v2186_v44 = vrot.slane %v1254_v62, %v5783_v42  ;;  %v1257_v63 = vpop.xlane.xlu1 %1256  ;;  %v7407_v62 = vld [vmem:[#allocation38_spill] sm:$0xff] }
 0x2a8   : > { %v2191_v37 = vrot.slane %v1257_v63, %v5789_v28  ;;  %v1469_v63 = vsel %vm1315_vm2, %v7407_v62, -inf  ;;  %v7409_v62 = vld [vmem:[#allocation37_spill] sm:$0xff] }
 0x2a9   : > { %v2187_v60 = vsel %vm7035_vm5, %v2186_v44, %v2182_v41  ;;  %1464 = vmax.xlane.f32.xlu0 %v1463_v55  ;;  %v1472_v41 = vsel %vm1315_vm2, %v5665_v13, -inf  ;;  %v7410_v13 = vld [vmem:[#allocation40_spill] sm:$0xff] }
 0x2aa   : > { %v2192_v54 = vsel %vm7034_vm6, %v2191_v37, %v2187_v60  ;;  %1467 = vmax.xlane.f32.xlu1 %v1466_v17  ;;  %v1260_v36 = vpop.xlane.xlu0 %1259  ;;  %v7408_v17 = vld [vmem:[#allocation97_spill] sm:$0xff] }
 0x2ab   : > { %v2196_v4 = vrot.slane %v1260_v36, %v5799_v35  ;;  %v1263_v11 = vpop.xlane.xlu1 %1262  ;;  %v1475_v36 = vsel %vm1315_vm2, %v7408_v17, -inf  ;;  %v1481_v17 = vsel %vm1315_vm2, %v7410_v13, -inf }
 0x2ac   : > { %v2201_v58 = vrot.slane %v1263_v11, %v5806_v3 }
 0x2ad   : > { %v2197_v23 = vsel %vm7033_vm7, %v2196_v4, %v2192_v54  ;;  %1470 = vmax.xlane.f32.xlu0 %v1469_v63  ;;  %v1478_v54 = vsel %vm1315_vm2, %v7409_v62, -inf }
 0x2ae   : > { %v2202_v44 = vsel %vm7029_vm8, %v2201_v58, %v2197_v23  ;;  %1473 = vmax.xlane.f32.xlu1 %v1472_v41  ;;  %v1266_v60 = vpop.xlane.xlu0 %1265 }
 0x2af   : > { %v2206_v37 = vrot.slane %v1266_v60, %v5814_v2  ;;  %v1269_v55 = vpop.xlane.xlu1 %1268 }
 0x2b0   : > { %v2211_v23 = vrot.slane %v1269_v55, %v5767_v50 }
 0x2b1   : > { %v2207_v11 = vsel %vm7032_vm9, %v2206_v37, %v2202_v44  ;;  %1476 = vmax.xlane.f32.xlu0 %v1475_v36  ;;  %v7411_v37 = vld [vmem:[#allocation96_spill] sm:$0xff] }
 0x2b2   : > { %v2295_v4 = vsel %vm2294_vm14, %v2207_v11, %v2293_v52  ;;  %1479 = vmax.xlane.f32.xlu1 %v1478_v54  ;;  %v1272_v63 = vpop.xlane.xlu0 %1271  ;;  %v1484_v36 = vsel %vm1315_vm2, %v7411_v37, -inf }
 0x2b3   : > { %v2215_v58 = vrot.slane %v1272_v63, %v5772_v29  ;;  %v1275_v41 = vpop.xlane.xlu1 %1274 }
 0x2b4   : > { %v2220_v60 = vrot.slane %v1275_v41, %v5778_v45  ;;  %v1487_v41 = vsel %vm1315_vm2, %v5701_v5, -inf }
 0x2b5   : > { %v2216_v44 = vsel %vm1969_vm3, %v2215_v58, %v2211_v23  ;;  %1482 = vmax.xlane.f32.xlu0 %v1481_v17  ;;  %v1490_v17 = vsel %vm1315_vm2, %v5707_v1, -inf }
 0x2b6   : > { %v2221_v52 = vsel %vm7036_vm4, %v2220_v60, %v2216_v44  ;;  %1485 = vmax.xlane.f32.xlu1 %v1484_v36  ;;  %v1278_v11 = vpop.xlane.xlu0 %1277 }
 0x2b7   : > { %v2225_v55 = vrot.slane %v1278_v11, %v5783_v42  ;;  %v1281_v54 = vpop.xlane.xlu1 %1280  ;;  %v1493_v11 = vsel %vm1315_vm2, %v5715_v18, -inf }
 0x2b8   : > { %v2230_v63 = vrot.slane %v1281_v54, %v5789_v28 }
 0x2b9   : > { %v2226_v13 = vsel %vm7035_vm5, %v2225_v55, %v2221_v52  ;;  %1488 = vmax.xlane.f32.xlu0 %v1487_v41  ;;  %v1496_v52 = vsel %vm1315_vm2, %v5721_v25, -inf }
 0x2ba   : > { %v2231_v23 = vsel %vm7034_vm6, %v2230_v63, %v2226_v13  ;;  %1491 = vmax.xlane.f32.xlu1 %v1490_v17  ;;  %v1284_v58 = vpop.xlane.xlu0 %1283  ;;  %v1499_v17 = vsel %vm1315_vm2, %v5729_v46, -inf }
 0x2bb   : > { %v2235_v60 = vrot.slane %v1284_v58, %v5799_v35  ;;  %v1287_v44 = vpop.xlane.xlu1 %1286 }
 0x2bc   : > { %v2240_v36 = vrot.slane %v1287_v44, %v5806_v3 }
 0x2bd   : > { %v2236_v54 = vsel %vm7033_vm7, %v2235_v60, %v2231_v23  ;;  %1494 = vmax.xlane.f32.xlu0 %v1493_v11  ;;  %v1502_v23 = vsel %vm1315_vm2, %v5733_v47, -inf }
 0x2be   : > { %v2241_v55 = vsel %vm7029_vm8, %v2240_v36, %v2236_v54  ;;  %1497 = vmax.xlane.f32.xlu1 %v1496_v52  ;;  %v1290_v13 = vpop.xlane.xlu0 %1289 }
 0x2bf   : > { %v2245_v63 = vrot.slane %v1290_v13, %v5814_v2  ;;  %v1293_v41 = vpop.xlane.xlu1 %1292  ;;  %v1505_v13 = vsel %vm1315_vm2, %v5738_v30, -inf  ;;  %vm2375_vm2 = vcmask 654912  }
 0x2c0   : > { %v2250_v36 = vrot.slane %v1293_v41, %v5767_v50 }
 0x2c1   : > { %v2246_v58 = vsel %vm7032_vm9, %v2245_v63, %v2241_v55  ;;  %1500 = vmax.xlane.f32.xlu0 %v1499_v17  ;;  %v1509_v63 = vsel %vm1508_vm0, %v7388_v19, -inf }
 0x2c2   : > { %v2297_v60 = vsel %vm2296_vm15, %v2246_v58, %v2295_v4  ;;  %1503 = vmax.xlane.f32.xlu1 %v1502_v23  ;;  %v1296_v44 = vpop.xlane.xlu0 %1295 }
 0x2c3   : > { %v2254_v11 = vrot.slane %v1296_v44, %v5772_v29  ;;  %v1299_v54 = vpop.xlane.xlu1 %1298  ;;  %v7412_v44 = vld [vmem:[#allocation19_spill] sm:$0xff] }
 0x2c4   : > { %v2259_v52 = vrot.slane %v1299_v54, %v5778_v45  ;;  %v1512_v54 = vsel %vm1508_vm0, %v7412_v44, -inf }
 0x2c5   : > { %v2255_v55 = vsel %vm1969_vm3, %v2254_v11, %v2250_v36  ;;  %1506 = vmax.xlane.f32.xlu0 %v1505_v13  ;;  %v7413_v36 = vld [vmem:[#allocation16_spill] sm:$0xff] }
 0x2c6   : > { %v2260_v4 = vsel %vm7036_vm4, %v2259_v52, %v2255_v55  ;;  %1510 = vmax.xlane.f32.xlu1 %v1509_v63  ;;  %v1302_v17 = vpop.xlane.xlu0 %1301  ;;  %v1515_v11 = vsel %vm1508_vm0, %v7413_v36, -inf  ;;  %vm7061_vm4 = vcmask 1048512  }
 0x2c7   : > { %v2264_v41 = vrot.slane %v1302_v17, %v5783_v42  ;;  %v1305_v58 = vpop.xlane.xlu1 %1304  ;;  %v2365_v17 = vadd.s32 4294967232, %v5753_v26  ;;  %v7414_v42 = vld [vmem:[#allocation22_spill] sm:$0xff] }
 0x2c8   : > { %v2269_v23 = vrot.slane %v1305_v58, %v5789_v28  ;;  %v2370_v58 = vadd.s32 4294967224, %v5753_v26 }
 0x2c9   : > { %v2265_v45 = vsel %vm7035_vm5, %v2264_v41, %v2260_v4  ;;  %1513 = vmax.xlane.f32.xlu0 %v1512_v54  ;;  %v1518_v4 = vsel %vm1508_vm0, %v7414_v42, -inf  ;;  %v2377_v41 = vadd.s32 4294967216, %v5753_v26  ;;  %v2412_v42 = vadd.s32 4294967176, %v5753_v26 }
 0x2ca   : > { %v2270_v13 = vsel %vm7034_vm6, %v2269_v23, %v2265_v45  ;;  %1516 = vmax.xlane.f32.xlu1 %v1515_v11  ;;  %v1308_v52 = vpop.xlane.xlu0 %1307  ;;  %v7415_v45 = vld [vmem:[#allocation10_spill] sm:$0xff]  ;;  %v6054_v29 = vsub.s32 %v2370_v58, %v5758_v12  ;;  %vm2403_vm6 = vcmask 917312   ;;  %vm7062_vm5 = vcmask 982912  }
 0x2cb   : > { %v2274_v55 = vrot.slane %v1308_v52, %v5799_v35  ;;  %v1311_v63 = vpop.xlane.xlu1 %1310  ;;  %v1521_v23 = vsel %vm1508_vm0, %v7415_v45, -inf  ;;  %v6060_v50 = vsub.s32 %v2377_v41, %v5758_v12 }
 0x2cc   : > { %v2279_v28 = vrot.slane %v1311_v63, %v5806_v3  ;;  %v6051_v63 = vsub.s32 %v2365_v17, %v5758_v12 }
 0x2cd   : > { %v2275_v54 = vsel %vm7033_vm7, %v2274_v55, %v2270_v13  ;;  %1519 = vmax.xlane.f32.xlu0 %v1518_v4  ;;  %v2384_v13 = vadd.s32 4294967208, %v5753_v26  ;;  %v7416_v55 = vld [vmem:[#allocation18_spill] sm:$0xff]  ;;  %vm2396_vm7 = vcmask 851712  }
 0x2ce   : > { %v2280_v11 = vsel %vm7029_vm8, %v2279_v28, %v2275_v54  ;;  %1522 = vmax.xlane.f32.xlu1 %v1521_v23  ;;  %v1314_v52 = vpop.xlane.xlu0 %1313  ;;  %v1524_v4 = vsel %vm1508_vm0, %v7416_v55, -inf  ;;  %v2391_v28 = vadd.s32 4294967200, %v5753_v26  ;;  %v7417_v23 = vld [vmem:[#allocation15_spill] sm:$0xff]  ;;  %vm2382_vm8 = vcmask 720512  }
 0x2cf   : > { %v2284_v35 = vrot.slane %v1314_v52, %v5814_v2  ;;  %v1318_v3 = vpop.xlane.xlu1 %1317  ;;  %v1527_v17 = vsel %vm1508_vm0, %v7417_v23, -inf  ;;  %v6072_v45 = vsub.s32 %v2384_v13, %v5758_v12 }
 0x2d0   : > { %v2369_v2 = vrot.slane %v1318_v3, %v6051_v63 }
 0x2d1   : > { %v2285_v54 = vsel %vm7032_vm9, %v2284_v35, %v2280_v11  ;;  %1525 = vmax.xlane.f32.xlu0 %v1524_v4  ;;  %v2398_v35 = vadd.s32 4294967192, %v5753_v26  ;;  %v7419_v4 = vld [vmem:[#allocation21_spill] sm:$0xff]  ;;  %vm2389_vm9 = vcmask 786112  }
 0x2d2   : > { %v6067_v52 = vsel %vm2298_vm1, %v2285_v54, %v2297_v60  ;;  %1528 = vmax.xlane.f32.xlu1 %v1527_v17  ;;  %v1321_v58 = vpop.xlane.xlu0 %1320  ;;  %v1530_v60 = vsel %vm1508_vm0, %v7419_v4, -inf  ;;  %v6079_v54 = vsub.s32 %v2391_v28, %v5758_v12  ;;  %v2405_v17 = vadd.s32 4294967184, %v5753_v26 }
 0x2d3   : > { %7418 = vst [vmem:[#allocation48_spill] sm:$0xff] %v6067_v52  ;;  %v2374_v41 = vrot.slane %v1321_v58, %v6054_v29  ;;  %v1324_v55 = vpop.xlane.xlu1 %1323  ;;  %v7420_v58 = vld [vmem:[#allocation24_spill] sm:$0xff]  ;;  %v6088_v28 = vsub.s32 %v2398_v35, %v5758_v12 }
 0x2d4   : > { %v2381_v11 = vrot.slane %v1324_v55, %v6060_v50  ;;  %v1533_v52 = vsel %vm1508_vm0, %v7420_v58, -inf }
 0x2d5   : > { %v2376_v3 = vsel %vm2375_vm2, %v2374_v41, %v2369_v2  ;;  %1531 = vmax.xlane.f32.xlu0 %v1530_v60  ;;  %v1536_v41 = vsel %vm1508_vm0, %v5290_v8, -inf  ;;  %v6095_v60 = vsub.s32 %v2405_v17, %v5758_v12 }
 0x2d6   : > { %v2383_v13 = vsel %vm2382_vm8, %v2381_v11, %v2376_v3  ;;  %1534 = vmax.xlane.f32.xlu1 %v1533_v52  ;;  %v1327_v23 = vpop.xlane.xlu0 %1326  ;;  %v6103_v3 = vsub.s32 %v2412_v42, %v5758_v12 }
 0x2d7   : > { %v2388_v55 = vrot.slane %v1327_v23, %v6072_v45  ;;  %v1330_v4 = vpop.xlane.xlu1 %1329  ;;  %v1539_v23 = vsel %vm1508_vm0, %v5299_v40, -inf }
 0x2d8   : > { %v2395_v2 = vrot.slane %v1330_v4, %v6079_v54 }
 0x2d9   : > { %v2390_v52 = vsel %vm2389_vm9, %v2388_v55, %v2383_v13  ;;  %1537 = vmax.xlane.f32.xlu0 %v1536_v41  ;;  %v1542_v13 = vsel %vm1508_vm0, %v5310_v10, -inf }
 0x2da   : > { %v2397_v11 = vsel %vm2396_vm7, %v2395_v2, %v2390_v52  ;;  %1540 = vmax.xlane.f32.xlu1 %v1539_v23  ;;  %v1333_v35 = vpop.xlane.xlu0 %1332  ;;  %v1545_v2 = vsel %vm1508_vm0, %v5317_v53, -inf }
 0x2db   : > { %v2402_v26 = vrot.slane %v1333_v35, %v6088_v28  ;;  %v1336_v4 = vpop.xlane.xlu1 %1335  ;;  %v7421_v35 = vld [vmem:[#allocation84_spill] sm:$0xff] }
 0x2dc   : > { %v2409_v17 = vrot.slane %v1336_v4, %v6095_v60  ;;  %v1548_v4 = vsel %vm1508_vm0, %v7421_v35, -inf }
 0x2dd   : > { %v2404_v55 = vsel %vm2403_vm6, %v2402_v26, %v2397_v11  ;;  %1543 = vmax.xlane.f32.xlu0 %v1542_v13  ;;  %v1551_v11 = vsel %vm1508_vm0, %v5335_v48, -inf }
 0x2de   : > { %v2411_v41 = vsel %vm7062_vm5, %v2409_v17, %v2404_v55  ;;  %1546 = vmax.xlane.f32.xlu1 %v1545_v2  ;;  %v1339_v52 = vpop.xlane.xlu0 %1338 }
 0x2df   : > { %v2416_v23 = vrot.slane %v1339_v52, %v6103_v3  ;;  %v1342_v42 = vpop.xlane.xlu1 %1341  ;;  %v7422_v52 = vld [vmem:[#allocation26_spill] sm:$0xff] }
 0x2e0   : > { %v2422_v13 = vrot.slane %v1342_v42, %v6051_v63  ;;  %v1554_v53 = vsel %vm1508_vm0, %v7422_v52, -inf }
 0x2e1   : > { %v2418_v12 = vsel %vm7061_vm4, %v2416_v23, %v2411_v41  ;;  %1549 = vmax.xlane.f32.xlu0 %v1548_v4  ;;  %v1557_v41 = vsel %vm1508_vm0, %v5355_v14, -inf }
 0x2e2   : > { %1552 = vmax.xlane.f32.xlu1 %v1551_v11  ;;  %v1345_v26 = vpop.xlane.xlu0 %1344 }
 0x2e3   : > { %v2426_v17 = vrot.slane %v1345_v26, %v6054_v29  ;;  %v1348_v55 = vpop.xlane.xlu1 %1347 }
 0x2e4   : > { %v2431_v2 = vrot.slane %v1348_v55, %v6060_v50  ;;  %v1560_v55 = vsel %vm1508_vm0, %v5366_v39, -inf }
 0x2e5   : > { %v2427_v35 = vsel %vm2375_vm2, %v2426_v17, %v2422_v13  ;;  %1555 = vmax.xlane.f32.xlu0 %v1554_v53  ;;  %v1563_v53 = vsel %vm1508_vm0, %v5373_v16, -inf }
 0x2e6   : > { %v2432_v23 = vsel %vm2382_vm8, %v2431_v2, %v2427_v35  ;;  %1558 = vmax.xlane.f32.xlu1 %v1557_v41  ;;  %v1351_v4 = vpop.xlane.xlu0 %1350 }
 0x2e7   : > { %v2436_v42 = vrot.slane %v1351_v4, %v6072_v45  ;;  %v1354_v11 = vpop.xlane.xlu1 %1353  ;;  %v1566_v4 = vsel %vm1508_vm0, %v5384_v56, -inf }
 0x2e8   : > { %v2441_v26 = vrot.slane %v1354_v11, %v6079_v54 }
 0x2e9   : > { %v2437_v52 = vsel %vm2389_vm9, %v2436_v42, %v2432_v23  ;;  %1561 = vmax.xlane.f32.xlu0 %v1560_v55  ;;  %v1569_v23 = vsel %vm1508_vm0, %v5391_v57, -inf }
 0x2ea   : > { %v2442_v13 = vsel %vm2396_vm7, %v2441_v26, %v2437_v52  ;;  %1564 = vmax.xlane.f32.xlu1 %v1563_v53  ;;  %v1357_v35 = vpop.xlane.xlu0 %1356  ;;  %v1572_v53 = vsel %vm1508_vm0, %v5402_v43, -inf }
 0x2eb   : > { %v2446_v17 = vrot.slane %v1357_v35, %v6088_v28  ;;  %v1360_v2 = vpop.xlane.xlu1 %1359 }
 0x2ec   : > { %v2451_v41 = vrot.slane %v1360_v2, %v6095_v60 }
 0x2ed   : > { %v2447_v11 = vsel %vm2403_vm6, %v2446_v17, %v2442_v13  ;;  %1567 = vmax.xlane.f32.xlu0 %v1566_v4  ;;  %v1575_v13 = vsel %vm1508_vm0, %v5411_v15, -inf }
 0x2ee   : > { %v2452_v42 = vsel %vm7062_vm5, %v2451_v41, %v2447_v11  ;;  %1570 = vmax.xlane.f32.xlu1 %v1569_v23  ;;  %v1363_v52 = vpop.xlane.xlu0 %1362 }
 0x2ef   : > { %v2456_v26 = vrot.slane %v1363_v52, %v6103_v3  ;;  %v1366_v55 = vpop.xlane.xlu1 %1365  ;;  %v1578_v52 = vsel %vm1508_vm0, %v5422_v34, -inf }
 0x2f0   : > { %v2461_v41 = vrot.slane %v1366_v55, %v6051_v63 }
 0x2f1   : > { %v2457_v35 = vsel %vm7061_vm4, %v2456_v26, %v2452_v42  ;;  %1573 = vmax.xlane.f32.xlu0 %v1572_v53  ;;  %v1581_v26 = vsel %vm1508_vm0, %v5429_v49, -inf }
 0x2f2   : > { %v2692_v17 = vsel %vm2286_vm10, %v2457_v35, %v2418_v12  ;;  %1576 = vmax.xlane.f32.xlu1 %v1575_v13  ;;  %v1369_v2 = vpop.xlane.xlu0 %1368 }
 0x2f3   : > { %v2465_v4 = vrot.slane %v1369_v2, %v6054_v29  ;;  %v1372_v11 = vpop.xlane.xlu1 %1371  ;;  %v1584_v2 = vsel %vm1508_vm0, %v5440_v38, -inf }
 0x2f4   : > { %v2470_v23 = vrot.slane %v1372_v11, %v6060_v50 }
 0x2f5   : > { %v2466_v42 = vsel %vm2375_vm2, %v2465_v4, %v2461_v41  ;;  %1579 = vmax.xlane.f32.xlu0 %v1578_v52  ;;  %v1587_v41 = vsel %vm1508_vm0, %v5447_v0, -inf }
 0x2f6   : > { %v2471_v12 = vsel %vm2382_vm8, %v2470_v23, %v2466_v42  ;;  %1582 = vmax.xlane.f32.xlu1 %v1581_v26  ;;  %v1375_v53 = vpop.xlane.xlu0 %1374 }
 0x2f7   : > { %v2475_v55 = vrot.slane %v1375_v53, %v6072_v45  ;;  %v1378_v35 = vpop.xlane.xlu1 %1377  ;;  %v1590_v53 = vsel %vm1508_vm0, %v5458_v31, -inf }
 0x2f8   : > { %v2480_v13 = vrot.slane %v1378_v35, %v6079_v54 }
 0x2f9   : > { %v2476_v11 = vsel %vm2389_vm9, %v2475_v55, %v2471_v12  ;;  %1585 = vmax.xlane.f32.xlu0 %v1584_v2  ;;  %v1593_v12 = vsel %vm1508_vm0, %v5467_v51, -inf }
 0x2fa   : > { %v2481_v4 = vsel %vm2396_vm7, %v2480_v13, %v2476_v11  ;;  %1588 = vmax.xlane.f32.xlu1 %v1587_v41  ;;  %v1381_v23 = vpop.xlane.xlu0 %1380  ;;  %v1596_v41 = vsel %vm1508_vm0, %v5478_v33, -inf }
 0x2fb   : > { %v2485_v52 = vrot.slane %v1381_v23, %v6088_v28  ;;  %v1384_v42 = vpop.xlane.xlu1 %1383 }
 0x2fc   : > { %v2490_v26 = vrot.slane %v1384_v42, %v6095_v60 }
 0x2fd   : > { %v2486_v35 = vsel %vm2403_vm6, %v2485_v52, %v2481_v4  ;;  %1591 = vmax.xlane.f32.xlu0 %v1590_v53  ;;  %v1599_v4 = vsel %vm1508_vm0, %v5485_v20, -inf }
 0x2fe   : > { %v2491_v55 = vsel %vm7062_vm5, %v2490_v26, %v2486_v35  ;;  %1594 = vmax.xlane.f32.xlu1 %v1593_v12  ;;  %v1387_v13 = vpop.xlane.xlu0 %1386 }
 0x2ff   : > { %v2495_v2 = vrot.slane %v1387_v13, %v6103_v3  ;;  %v1390_v11 = vpop.xlane.xlu1 %1389  ;;  %v1602_v13 = vsel %vm1508_vm0, %v5496_v27, -inf }
 0x300   : > { %v2500_v26 = vrot.slane %v1390_v11, %v6051_v63 }
 0x301   : > { %v2496_v23 = vsel %vm7061_vm4, %v2495_v2, %v2491_v55  ;;  %1597 = vmax.xlane.f32.xlu0 %v1596_v41  ;;  %v1605_v2 = vsel %vm1508_vm0, %v5503_v9, -inf }
 0x302   : > { %v2693_v52 = vsel %vm2288_vm11, %v2496_v23, %v2692_v17  ;;  %1600 = vmax.xlane.f32.xlu1 %v1599_v4  ;;  %v1393_v42 = vpop.xlane.xlu0 %1392 }
 0x303   : > { %v2504_v53 = vrot.slane %v1393_v42, %v6054_v29  ;;  %v1396_v35 = vpop.xlane.xlu1 %1395  ;;  %v1608_v42 = vsel %vm1508_vm0, %v5514_v24, -inf }
 0x304   : > { %v2509_v12 = vrot.slane %v1396_v35, %v6060_v50 }
 0x305   : > { %v2505_v55 = vsel %vm2375_vm2, %v2504_v53, %v2500_v26  ;;  %1603 = vmax.xlane.f32.xlu0 %v1602_v13  ;;  %v1611_v26 = vsel %vm1508_vm0, %v5523_v7, -inf }
 0x306   : > { %v2510_v17 = vsel %vm2382_vm8, %v2509_v12, %v2505_v55  ;;  %1606 = vmax.xlane.f32.xlu1 %v1605_v2  ;;  %v1399_v41 = vpop.xlane.xlu0 %1398 }
 0x307   : > { %v2514_v11 = vrot.slane %v1399_v41, %v6072_v45  ;;  %v1402_v23 = vpop.xlane.xlu1 %1401  ;;  %v1614_v41 = vsel %vm1508_vm0, %v5534_v21, -inf }
 0x308   : > { %v2519_v4 = vrot.slane %v1402_v23, %v6079_v54 }
 0x309   : > { %v2515_v35 = vsel %vm2389_vm9, %v2514_v11, %v2510_v17  ;;  %1609 = vmax.xlane.f32.xlu0 %v1608_v42  ;;  %v7423_v17 = vld [vmem:[#allocation9_spill] sm:$0xff] }
 0x30a   : > { %1612 = vmax.xlane.f32.xlu1 %v1611_v26  ;;  %v1405_v53 = vpop.xlane.xlu0 %1404  ;;  %v2520_v55 = vsel %vm2396_vm7, %v2519_v4, %v2515_v35  ;;  %v1617_v11 = vsel %vm1508_vm0, %v7423_v17, -inf  ;;  %v7424_v4 = vld [vmem:[#allocation89_spill] sm:$0xff] }
 0x30b   : > { %v2524_v12 = vrot.slane %v1405_v53, %v6088_v28  ;;  %v1408_v13 = vpop.xlane.xlu1 %1407  ;;  %v1620_v35 = vsel %vm1508_vm0, %v7424_v4, -inf }
 0x30c   : > { %v2529_v2 = vrot.slane %v1408_v13, %v6095_v60 }
 0x30d   : > { %v2525_v23 = vsel %vm2403_vm6, %v2524_v12, %v2520_v55  ;;  %1615 = vmax.xlane.f32.xlu0 %v1614_v41  ;;  %v1623_v12 = vsel %vm1508_vm0, %v7398_v22, -inf }
 0x30e   : > { %1618 = vmax.xlane.f32.xlu1 %v1617_v11  ;;  %v1411_v42 = vpop.xlane.xlu0 %1410  ;;  %v2530_v53 = vsel %vm7062_vm5, %v2529_v2, %v2525_v23  ;;  %v7426_v23 = vld [vmem:[#allocation88_spill] sm:$0xff] }
 0x30f   : > { %v2534_v26 = vrot.slane %v1411_v42, %v6103_v3  ;;  %v6207_v27 = vpop.xlane.xlu1 %1413  ;;  %v7425_v42 = vld [vmem:[#allocation32_spill] sm:$0xff]  ;;  %v1629_v4 = vsel %vm1508_vm0, %v7426_v23, -inf }
 0x310   : > { %v1626_v2 = vsel %vm1508_vm0, %v7425_v42, -inf  ;;  %v7436_v23 = vld [vmem:[#allocation40_spill] sm:$0xff] }
 0x311   : > { %v2535_v13 = vsel %vm7061_vm4, %v2534_v26, %v2530_v53  ;;  %1621 = vmax.xlane.f32.xlu0 %v1620_v35  ;;  %v7427_v35 = vld [vmem:[#allocation91_spill] sm:$0xff] }
 0x312   : > { %v6216_v55 = vsel %vm7055_vm12, %v2535_v13, %v2693_v52  ;;  %1624 = vmax.xlane.f32.xlu1 %v1623_v12  ;;  %v6218_v41 = vpop.xlane.xlu0 %1416  ;;  %v1632_v52 = vsel %vm1508_vm0, %v7427_v35, -inf  ;;  %v1635_v13 = vsel %vm1508_vm0, %v7401_v6, -inf  ;;  %vm1701_vm12 = vcmask 326944  }
 0x313   : > { %v6220_v11 = vpop.xlane.xlu1 %1419 }
 0x315   : > { %1627 = vmax.xlane.f32.xlu0 %v1626_v2  ;;  %v1638_v2 = vsel %vm1508_vm0, %v7402_v61, -inf }
 0x316   : > { %1630 = vmax.xlane.f32.xlu1 %v1629_v4  ;;  %v6226_v26 = vpop.xlane.xlu0 %1422  ;;  %v7428_v4 = vld [vmem:[#allocation90_spill] sm:$0xff] }
 0x317   : > { %v6228_v53 = vpop.xlane.xlu1 %1425  ;;  %v1641_v22 = vsel %vm1508_vm0, %v7428_v4, -inf }
 0x319   : > { %1633 = vmax.xlane.f32.xlu0 %v1632_v52  ;;  %v7429_v52 = vld [vmem:[#allocation93_spill] sm:$0xff] }
 0x31a   : > { %1636 = vmax.xlane.f32.xlu1 %v1635_v13  ;;  %v6234_v12 = vpop.xlane.xlu0 %1428  ;;  %v1644_v17 = vsel %vm1508_vm0, %v7429_v52, -inf  ;;  %v7430_v13 = vld [vmem:[#allocation33_spill] sm:$0xff] }
 0x31b   : > { %v6236_v42 = vpop.xlane.xlu1 %1431  ;;  %v1647_v33 = vsel %vm1508_vm0, %v7430_v13, -inf }
 0x31d   : > { %1639 = vmax.xlane.f32.xlu0 %v1638_v2  ;;  %v7431_v2 = vld [vmem:[#allocation36_spill] sm:$0xff] }
 0x31e   : > { %1642 = vmax.xlane.f32.xlu1 %v1641_v22  ;;  %v6242_v20 = vpop.xlane.xlu0 %1434  ;;  %v1650_v61 = vsel %vm1508_vm0, %v7431_v2, -inf  ;;  %v1653_v22 = vsel %vm1508_vm0, %v7405_v32, -inf }
 0x31f   : > { %v6244_v34 = vpop.xlane.xlu1 %1437 }
 0x321   : > { %1645 = vmax.xlane.f32.xlu0 %v1644_v17  ;;  %v7432_v17 = vld [vmem:[#allocation95_spill] sm:$0xff] }
 0x322   : > { %1648 = vmax.xlane.f32.xlu1 %v1647_v33  ;;  %v1441_v15 = vpop.xlane.xlu0 %1440  ;;  %v1656_v52 = vsel %vm1508_vm0, %v7432_v17, -inf  ;;  %v1659_v33 = vsel %vm1508_vm0, %v5651_v59, -inf }
 0x323   : > { %v6250_v6 = vpop.xlane.xlu1 %1443 }
 0x325   : > { %1651 = vmax.xlane.f32.xlu0 %v1650_v61  ;;  %v7433_v61 = vld [vmem:[#allocation38_spill] sm:$0xff] }
 0x326   : > { %1654 = vmax.xlane.f32.xlu1 %v1653_v22  ;;  %v6256_v4 = vpop.xlane.xlu0 %1446  ;;  %v1662_v32 = vsel %vm1508_vm0, %v7433_v61, -inf  ;;  %v7434_v22 = vld [vmem:[#allocation94_spill] sm:$0xff] }
 0x327   : > { %v6258_v21 = vpop.xlane.xlu1 %1449  ;;  %v1665_v51 = vsel %vm1508_vm0, %v7434_v22, -inf }
 0x329   : > { %1657 = vmax.xlane.f32.xlu0 %v1656_v52  ;;  %v7435_v52 = vld [vmem:[#allocation97_spill] sm:$0xff] }
 0x32a   : > { %1660 = vmax.xlane.f32.xlu1 %v1659_v33  ;;  %v6264_v13 = vpop.xlane.xlu0 %1452  ;;  %v1668_v48 = vsel %vm1508_vm0, %v7435_v52, -inf  ;;  %v1671_v33 = vsel %vm1508_vm0, %v7409_v62, -inf  ;;  %v2543_v62 = vrot.slane %v6218_v41, %v6054_v29  ;;  %v2582_v52 = vrot.slane %v1441_v15, %v6054_v29 }
 0x32b   : > { %v6266_v2 = vpop.xlane.xlu1 %1455  ;;  %v1689_v41 = vsel %vm1508_vm0, %v5721_v25, -inf  ;;  %v1702_v25 = vsel %vm1701_vm12, %v7388_v19, -inf }
 0x32d   : > { %1663 = vmax.xlane.f32.xlu0 %v1662_v32  ;;  %v1674_v32 = vsel %vm1508_vm0, %v7436_v23, -inf }
 0x32e   : > { %1666 = vmax.xlane.f32.xlu1 %v1665_v51  ;;  %v6272_v43 = vpop.xlane.xlu0 %1458  ;;  %v1677_v51 = vsel %vm1508_vm0, %v7411_v37, -inf }
 0x32f   : > { %v1462_v17 = vpop.xlane.xlu1 %1461 }
 0x331   : > { %1669 = vmax.xlane.f32.xlu0 %v1668_v48  ;;  %v1680_v48 = vsel %vm1508_vm0, %v5701_v5, -inf  ;;  %v1686_v5 = vsel %vm1508_vm0, %v5715_v18, -inf }
 0x332   : > { %1672 = vmax.xlane.f32.xlu1 %v1671_v33  ;;  %v1465_v59 = vpop.xlane.xlu0 %1464  ;;  %v1683_v33 = vsel %vm1508_vm0, %v5707_v1, -inf  ;;  %v2553_v1 = vrot.slane %v6226_v26, %v6072_v45 }
 0x333   : > { %v1468_v35 = vpop.xlane.xlu1 %1467  ;;  %v2621_v15 = vrot.slane %v1465_v59, %v6054_v29  ;;  %v2617_v59 = vrot.slane %v1462_v17, %v6051_v63 }
 0x334   : > { %v2626_v19 = vrot.slane %v1468_v35, %v6060_v50 }
 0x335   : > { %1675 = vmax.xlane.f32.xlu0 %v1674_v32  ;;  %v2622_v17 = vsel %vm2375_vm2, %v2621_v15, %v2617_v59 }
 0x336   : > { %1678 = vmax.xlane.f32.xlu1 %v1677_v51  ;;  %v1471_v22 = vpop.xlane.xlu0 %1470  ;;  %v2539_v51 = vrot.slane %v6207_v27, %v6051_v63  ;;  %v2578_v27 = vrot.slane %v6244_v34, %v6051_v63  ;;  %v2592_v34 = vrot.slane %v6256_v4, %v6072_v45  ;;  %v2563_v4 = vrot.slane %v6234_v12, %v6088_v28 }
 0x337   : > { %v6282_v61 = vpop.xlane.xlu1 %1473  ;;  %v2602_v12 = vrot.slane %v6264_v13, %v6088_v28  ;;  %v2568_v13 = vrot.slane %v6236_v42, %v6095_v60  ;;  %v2607_v42 = vrot.slane %v6266_v2, %v6095_v60 }
 0x338   : > { %v2583_v26 = vsel %vm2375_vm2, %v2582_v52, %v2578_v27  ;;  %v2631_v27 = vrot.slane %v1471_v22, %v6072_v45  ;;  %v1698_v22 = vsel %vm1508_vm0, %v5738_v30, -inf }
 0x339   : > { %1681 = vmax.xlane.f32.xlu0 %v1680_v48  ;;  %v2548_v48 = vrot.slane %v6220_v11, %v6060_v50  ;;  %v2587_v11 = vrot.slane %v6250_v6, %v6060_v50  ;;  %v2558_v6 = vrot.slane %v6228_v53, %v6079_v54  ;;  %v2597_v53 = vrot.slane %v6258_v21, %v6079_v54 }
 0x33a   : > { %1684 = vmax.xlane.f32.xlu1 %v1683_v33  ;;  %v6290_v23 = vpop.xlane.xlu0 %1476  ;;  %v2544_v33 = vsel %vm2375_vm2, %v2543_v62, %v2539_v51  ;;  %v1705_v62 = vsel %vm1701_vm12, %v7412_v44, -inf  ;;  %v1692_v51 = vsel %vm1508_vm0, %v5729_v46, -inf  ;;  %v1695_v44 = vsel %vm1508_vm0, %v5733_v47, -inf }
 0x33b   : > { %v6292_v32 = vpop.xlane.xlu1 %1479  ;;  %v2636_v21 = vrot.slane %v6282_v61, %v6079_v54  ;;  %v2641_v59 = vrot.slane %v6290_v23, %v6088_v28  ;;  %v2612_v23 = vrot.slane %v6272_v43, %v6103_v3  ;;  %vm7060_vm0 = vcmask 523264  }
 0x33d   : > { %1687 = vmax.xlane.f32.xlu0 %v1686_v5 }
 0x33e   : > { %1690 = vmax.xlane.f32.xlu1 %v1689_v41  ;;  %v6309_v18 = vpop.xlane.xlu0 %1482  ;;  %v2549_v41 = vsel %vm2382_vm8, %v2548_v48, %v2544_v33  ;;  %v2588_v33 = vsel %vm2382_vm8, %v2587_v11, %v2583_v26  ;;  %v2627_v11 = vsel %vm2382_vm8, %v2626_v19, %v2622_v17  ;;  %v1708_v26 = vsel %vm1701_vm12, %v7413_v36, -inf }
 0x33f   : > { %v1486_v5 = vpop.xlane.xlu1 %1485  ;;  %v2554_v52 = vsel %vm2389_vm9, %v2553_v1, %v2549_v41  ;;  %v2593_v1 = vsel %vm2389_vm9, %v2592_v34, %v2588_v33  ;;  %v2573_v19 = vrot.slane %v6242_v20, %v6103_v3  ;;  %v2646_v20 = vrot.slane %v6292_v32, %v6095_v60 }
 0x340   : > { %v2656_v35 = vrot.slane %v1486_v5, %v6051_v63  ;;  %v2559_v34 = vsel %vm2396_vm7, %v2558_v6, %v2554_v52  ;;  %v2651_v2 = vrot.slane %v6309_v18, %v6103_v3 }
 0x341   : > { %1693 = vmax.xlane.f32.xlu0 %v1692_v51  ;;  %v2564_v61 = vsel %vm2403_vm6, %v2563_v4, %v2559_v34 }
 0x342   : > { %1696 = vmax.xlane.f32.xlu1 %v1695_v44  ;;  %v1489_v48 = vpop.xlane.xlu0 %1488  ;;  %v2598_v44 = vsel %vm2396_vm7, %v2597_v53, %v2593_v1  ;;  %v2569_v53 = vsel %vm7062_vm5, %v2568_v13, %v2564_v61 }
 0x343   : > { %v2660_v51 = vrot.slane %v1489_v48, %v6054_v29  ;;  %v1492_v47 = vpop.xlane.xlu1 %1491  ;;  %v2603_v52 = vsel %vm2403_vm6, %v2602_v12, %v2598_v44  ;;  %v2574_v32 = vsel %vm7061_vm4, %v2573_v19, %v2569_v53  ;;  %v7439_v19 = vld [vmem:[#allocation18_spill] sm:$0xff] }
 0x344   : > { %v2665_v15 = vrot.slane %v1492_v47, %v6060_v50  ;;  %v2632_v47 = vsel %vm2389_vm9, %v2631_v27, %v2627_v11  ;;  %v2695_v13 = vsel %vm2292_vm13, %v2574_v32, %v6216_v55  ;;  %v1717_v44 = vsel %vm1701_vm12, %v7439_v19, -inf }
 0x345   : > { %v2661_v5 = vsel %vm2375_vm2, %v2660_v51, %v2656_v35  ;;  %1699 = vmax.xlane.f32.xlu0 %v1698_v22  ;;  %v2637_v4 = vsel %vm2396_vm7, %v2636_v21, %v2632_v47  ;;  %v7437_v51 = vld [vmem:[#allocation22_spill] sm:$0xff]  ;;  %v1750_v19 = vsel %vm1701_vm12, %v5355_v14, -inf  ;;  %v1756_v14 = vsel %vm1701_vm12, %v5373_v16, -inf }
 0x346   : > { %1703 = vmax.xlane.f32.xlu1 %v1702_v25  ;;  %v1495_v41 = vpop.xlane.xlu0 %1494  ;;  %v2666_v17 = vsel %vm2382_vm8, %v2665_v15, %v2661_v5  ;;  %v2642_v48 = vsel %vm2403_vm6, %v2641_v59, %v2637_v4  ;;  %v1711_v1 = vsel %vm1701_vm12, %v7437_v51, -inf  ;;  %v7438_v21 = vld [vmem:[#allocation10_spill] sm:$0xff]  ;;  %v7442_v4 = vld [vmem:[#allocation44_spill] sm:$0xff] }
 0x347   : > { %v2670_v36 = vrot.slane %v1495_v41, %v6072_v45  ;;  %v1498_v6 = vpop.xlane.xlu1 %1497  ;;  %v2647_v22 = vsel %vm7062_vm5, %v2646_v20, %v2642_v48  ;;  %v1714_v5 = vsel %vm1701_vm12, %v7438_v21, -inf  ;;  %v1729_v21 = vsel %vm1701_vm12, %v5290_v8, -inf }
 0x348   : > { %v2675_v25 = vrot.slane %v1498_v6, %v6079_v54 }
 0x349   : > { %v2671_v27 = vsel %vm2389_vm9, %v2670_v36, %v2666_v17  ;;  %1706 = vmax.xlane.f32.xlu0 %v1705_v62  ;;  %v2608_v62 = vsel %vm7062_vm5, %v2607_v42, %v2603_v52  ;;  %v7440_v52 = vld [vmem:[#allocation15_spill] sm:$0xff] }
 0x34a   : > { %1709 = vmax.xlane.f32.xlu1 %v1708_v26  ;;  %v1501_v33 = vpop.xlane.xlu0 %1500  ;;  %v2676_v12 = vsel %vm2396_vm7, %v2675_v25, %v2671_v27  ;;  %v2613_v18 = vsel %vm7061_vm4, %v2612_v23, %v2608_v62  ;;  %v2652_v26 = vsel %vm7061_vm4, %v2651_v2, %v2647_v22  ;;  %v1720_v42 = vsel %vm1701_vm12, %v7440_v52, -inf  ;;  %v7441_v25 = vld [vmem:[#allocation48_spill] sm:$0xff]  ;;  %v7448_v22 = vld [vmem:[#allocation46_spill] sm:$0xff] }
 0x34b   : > { %v2680_v43 = vrot.slane %v1501_v33, %v6088_v28  ;;  %v1504_v35 = vpop.xlane.xlu1 %1503  ;;  %v2696_v41 = vsel %vm2294_vm14, %v2613_v18, %v2695_v13  ;;  %v7443_v27 = vld [vmem:[#allocation100_spill] sm:$0xff]  ;;  %v7444_v33 = vld [vmem:[#allocation103_spill] sm:$0xff]  ;;  %v7451_v13 = vld [vmem:[#allocation102_spill] sm:$0xff] }
 0x34c   : > { %v2685_v15 = vrot.slane %v1504_v35, %v6095_v60  ;;  %v2697_v36 = vsel %vm2296_vm15, %v2652_v26, %v2696_v41  ;;  %v1732_v26 = vsel %vm1701_vm12, %v5299_v40, -inf  ;;  %v7452_v41 = vld [vmem:[#allocation105_spill] sm:$0xff] }
 0x34d   : > { %v2681_v11 = vsel %vm2403_vm6, %v2680_v43, %v2676_v12  ;;  %1712 = vmax.xlane.f32.xlu0 %v1711_v1  ;;  %v7445_v43 = vld [vmem:[#allocation21_spill] sm:$0xff]  ;;  %v1726_v1 = vsel %vm1701_vm12, %v7420_v58, -inf  ;;  %v7447_v12 = vld [vmem:[#allocation43_spill] sm:$0xff] }
 0x34e   : > { %1715 = vmax.xlane.f32.xlu1 %v1714_v5  ;;  %v1507_v34 = vpop.xlane.xlu0 %1506  ;;  %v2686_v61 = vsel %vm7062_vm5, %v2685_v15, %v2681_v11  ;;  %v1723_v35 = vsel %vm1701_vm12, %v7445_v43, -inf  ;;  %vm7450_vm5 = vcmask 326912   ;;  %v1777_v43 = vsel %vm1701_vm12, %v5440_v38, -inf }
 0x34f   : > { %v2690_v47 = vrot.slane %v1507_v34, %v6103_v3  ;;  %v1511_v59 = vpop.xlane.xlu1 %1510 }
 0x350   : > { %v2767_v20 = vrot.slane %v1511_v59, %v7442_v4 }
 0x351   : > { %v2691_v6 = vsel %vm7061_vm4, %v2690_v47, %v2686_v61  ;;  %1718 = vmax.xlane.f32.xlu0 %v1717_v44  ;;  %vm7449_vm4 = vcmask 261312   ;;  %v1753_v44 = vsel %vm1701_vm12, %v5366_v39, -inf }
 0x352   : > { %v2698_v55 = vsel %vm2298_vm1, %v2691_v6, %v2697_v36  ;;  %1721 = vmax.xlane.f32.xlu1 %v1720_v42  ;;  %v1514_v17 = vpop.xlane.xlu0 %1513  ;;  %v7455_v6 = vld [vmem:[#allocation45_spill] sm:$0xff] }
 0x353   : > { %v6405_v23 = vsel %vm7060_vm0, %v7441_v25, %v2698_v55  ;;  %v2771_v48 = vrot.slane %v1514_v17, %v7443_v27  ;;  %v1517_v2 = vpop.xlane.xlu1 %1516  ;;  %vm7446_vm0 = vcmask 195712   ;;  %v1735_v55 = vsel %vm1701_vm12, %v5310_v10, -inf }
 0x354   : > { %v2776_v53 = vrot.slane %v1517_v2, %v7444_v33  ;;  %3474 = vst [vmem:[%s6412_s7] sm:$0xff] %v6405_v23 }
 0x355   : > { %v2772_v51 = vsel %vm1969_vm3, %v2771_v48, %v2767_v20  ;;  %1724 = vmax.xlane.f32.xlu0 %v1723_v35 }
 0x356   : > { %v2777_v32 = vsel %vm7446_vm0, %v2776_v53, %v2772_v51  ;;  %1727 = vmax.xlane.f32.xlu1 %v1726_v1  ;;  %v1520_v62 = vpop.xlane.xlu0 %1519  ;;  %vm7453_vm0 = vcmask 392512   ;;  %v1774_v53 = vsel %vm1701_vm12, %v5429_v49, -inf }
 0x357   : > { %v2781_v15 = vrot.slane %v1520_v62, %v7447_v12  ;;  %v1523_v18 = vpop.xlane.xlu1 %1522  ;;  %v7458_v62 = vld [vmem:[#allocation17_spill] sm:$0xff] }
 0x358   : > { %v2786_v11 = vrot.slane %v1523_v18, %v7448_v22  ;;  %v1759_v18 = vsel %vm1701_vm12, %v5384_v56, -inf }
 0x359   : > { %v2782_v5 = vsel %vm7449_vm4, %v2781_v15, %v2777_v32  ;;  %1730 = vmax.xlane.f32.xlu0 %v1729_v21  ;;  %vm7454_vm4 = vcmask 458112   ;;  %v1738_v15 = vsel %vm1701_vm12, %v7458_v62, -inf  ;;  %v7469_v62 = vld [vmem:[#allocation91_spill] sm:$0xff] }
 0x35a   : > { %v2787_v58 = vsel %vm7450_vm5, %v2786_v11, %v2782_v5  ;;  %1733 = vmax.xlane.f32.xlu1 %v1732_v26  ;;  %v1526_v34 = vpop.xlane.xlu0 %1525  ;;  %vm7456_vm5 = vcmask 523712  }
 0x35b   : > { %v2791_v47 = vrot.slane %v1526_v34, %v7451_v13  ;;  %v1529_v59 = vpop.xlane.xlu1 %1528 }
 0x35c   : > { %v2796_v61 = vrot.slane %v1529_v59, %v7452_v41 }
 0x35d   : > { %v2792_v8 = vsel %vm7453_vm0, %v2791_v47, %v2787_v58  ;;  %1751 = vmax.xlane.f32.xlu0 %v1750_v19  ;;  %vm7457_vm0 = vcmask 195712   ;;  %v1780_v58 = vsel %vm1701_vm12, %v5447_v0, -inf  ;;  %v1798_v47 = vsel %vm1701_vm12, %v5503_v9, -inf  ;;  %v7464_v0 = vld [vmem:[#allocation84_spill] sm:$0xff] }
 0x35e   : > { %v2797_v40 = vsel %vm7454_vm4, %v2796_v61, %v2792_v8  ;;  %1754 = vmax.xlane.f32.xlu1 %v1753_v44  ;;  %v1532_v36 = vpop.xlane.xlu0 %1531  ;;  %vm7459_vm4 = vcmask 261312   ;;  %v1801_v8 = vsel %vm1701_vm12, %v5514_v24, -inf  ;;  %v1762_v24 = vsel %vm1701_vm12, %v5391_v57, -inf }
 0x35f   : > { %v2801_v52 = vrot.slane %v1532_v36, %v7455_v6  ;;  %v1535_v42 = vpop.xlane.xlu1 %1534 }
 0x360   : > { %v2806_v39 = vrot.slane %v1535_v42, %v7442_v4 }
 0x361   : > { %v2802_v17 = vsel %vm7456_vm5, %v2801_v52, %v2797_v40  ;;  %1736 = vmax.xlane.f32.xlu0 %v1735_v55  ;;  %vm7460_vm5 = vcmask 326912   ;;  %v1741_v40 = vsel %vm1701_vm12, %v7464_v0, -inf }
 0x362   : > { %1757 = vmax.xlane.f32.xlu1 %v1756_v14  ;;  %v1538_v25 = vpop.xlane.xlu0 %1537 }
 0x363   : > { %v2810_v20 = vrot.slane %v1538_v25, %v7443_v27  ;;  %v1541_v48 = vpop.xlane.xlu1 %1540 }
 0x364   : > { %v2815_v2 = vrot.slane %v1541_v48, %v7444_v33 }
 0x365   : > { %v2811_v10 = vsel %vm1969_vm3, %v2810_v20, %v2806_v39  ;;  %1775 = vmax.xlane.f32.xlu0 %v1774_v53  ;;  %v1783_v39 = vsel %vm1701_vm12, %v5458_v31, -inf }
 0x366   : > { %v2816_v16 = vsel %vm7457_vm0, %v2815_v2, %v2811_v10  ;;  %1778 = vmax.xlane.f32.xlu1 %v1777_v43  ;;  %v1544_v35 = vpop.xlane.xlu0 %1543  ;;  %vm7461_vm0 = vcmask 392512   ;;  %v1804_v10 = vsel %vm1701_vm12, %v5523_v7, -inf  ;;  %v7467_v43 = vld [vmem:[#allocation88_spill] sm:$0xff] }
 0x367   : > { %v2820_v51 = vrot.slane %v1544_v35, %v7447_v12  ;;  %v1547_v1 = vpop.xlane.xlu1 %1546 }
 0x368   : > { %v2825_v32 = vrot.slane %v1547_v1, %v7448_v22 }
 0x369   : > { %v2821_v49 = vsel %vm7459_vm4, %v2820_v51, %v2816_v16  ;;  %1739 = vmax.xlane.f32.xlu0 %v1738_v15  ;;  %vm7462_vm4 = vcmask 458112   ;;  %v1822_v16 = vsel %vm1701_vm12, %v7467_v43, -inf  ;;  %v1825_v15 = vsel %vm1701_vm12, %v7469_v62, -inf }
 0x36a   : > { %v2826_v38 = vsel %vm7460_vm5, %v2825_v32, %v2821_v49  ;;  %1760 = vmax.xlane.f32.xlu1 %v1759_v18  ;;  %v1550_v11 = vpop.xlane.xlu0 %1549  ;;  %vm7463_vm5 = vcmask 523712   ;;  %v7471_v49 = vld [vmem:[#allocation23_spill] sm:$0xff] }
 0x36b   : > { %v2830_v21 = vrot.slane %v1550_v11, %v7451_v13  ;;  %v1553_v5 = vpop.xlane.xlu1 %1552  ;;  %v1744_v18 = vsel %vm1701_vm12, %v7471_v49, -inf }
 0x36c   : > { %v2835_v26 = vrot.slane %v1553_v5, %v7452_v41 }
 0x36d   : > { %v2831_v34 = vsel %vm7461_vm0, %v2830_v21, %v2826_v38  ;;  %1781 = vmax.xlane.f32.xlu0 %v1780_v58  ;;  %vm7465_vm0 = vcmask 195712  }
 0x36e   : > { %v2836_v56 = vsel %vm7462_vm4, %v2835_v26, %v2831_v34  ;;  %1799 = vmax.xlane.f32.xlu1 %v1798_v47  ;;  %v1556_v59 = vpop.xlane.xlu0 %1555  ;;  %vm7466_vm4 = vcmask 261312   ;;  %v7473_v26 = vld [vmem:[#allocation83_spill] sm:$0xff]  ;;  %v7475_v47 = vld [vmem:[#allocation28_spill] sm:$0xff] }
 0x36f   : > { %v2840_v61 = vrot.slane %v1556_v59, %v7455_v6  ;;  %v1559_v19 = vpop.xlane.xlu1 %1558  ;;  %v1765_v58 = vsel %vm1701_vm12, %v7473_v26, -inf }
 0x370   : > { %v2845_v52 = vrot.slane %v1559_v19, %v7442_v4 }
 0x371   : > { %v2841_v44 = vsel %vm7463_vm5, %v2840_v61, %v2836_v56  ;;  %1802 = vmax.xlane.f32.xlu0 %v1801_v8  ;;  %vm7468_vm5 = vcmask 326912   ;;  %v1786_v56 = vsel %vm1701_vm12, %v7475_v47, -inf }
 0x372   : > { %v3076_v36 = vsel %vm2286_vm10, %v2841_v44, %v2802_v17  ;;  %1742 = vmax.xlane.f32.xlu1 %v1741_v40  ;;  %v1562_v9 = vpop.xlane.xlu0 %1561  ;;  %v7476_v40 = vld [vmem:[#allocation30_spill] sm:$0xff] }
 0x373   : > { %v2849_v42 = vrot.slane %v1562_v9, %v7443_v27  ;;  %v1565_v55 = vpop.xlane.xlu1 %1564  ;;  %v1807_v9 = vsel %vm1701_vm12, %v7476_v40, -inf  ;;  %v7492_v40 = vld [vmem:[#allocation35_spill] sm:$0xff] }
 0x374   : > { %v2854_v14 = vrot.slane %v1565_v55, %v7444_v33 }
 0x375   : > { %v2850_v25 = vsel %vm1969_vm3, %v2849_v42, %v2845_v52  ;;  %1763 = vmax.xlane.f32.xlu0 %v1762_v24  ;;  %v7477_v42 = vld [vmem:[#allocation31_spill] sm:$0xff] }
 0x376   : > { %v2855_v17 = vsel %vm7465_vm0, %v2854_v14, %v2850_v25  ;;  %1784 = vmax.xlane.f32.xlu1 %v1783_v39  ;;  %v1568_v20 = vpop.xlane.xlu0 %1567  ;;  %vm7470_vm0 = vcmask 392512   ;;  %v1828_v55 = vsel %vm1701_vm12, %v7477_v42, -inf }
 0x377   : > { %v2859_v48 = vrot.slane %v1568_v20, %v7447_v12  ;;  %v1571_v2 = vpop.xlane.xlu1 %1570 }
 0x378   : > { %v2864_v53 = vrot.slane %v1571_v2, %v7448_v22  ;;  %v7481_v2 = vld [vmem:[#allocation95_spill] sm:$0xff] }
 0x379   : > { %v2860_v57 = vsel %vm7466_vm4, %v2859_v48, %v2855_v17  ;;  %1805 = vmax.xlane.f32.xlu0 %v1804_v10  ;;  %vm7472_vm4 = vcmask 458112   ;;  %v7479_v17 = vld [vmem:[#allocation92_spill] sm:$0xff] }
 0x37a   : > { %v2865_v31 = vsel %vm7468_vm5, %v2864_v53, %v2860_v57  ;;  %1823 = vmax.xlane.f32.xlu1 %v1822_v16  ;;  %v1574_v35 = vpop.xlane.xlu0 %1573  ;;  %vm7474_vm5 = vcmask 523712   ;;  %v1846_v20 = vsel %vm1701_vm12, %v7479_v17, -inf  ;;  %v1849_v53 = vsel %vm1701_vm12, %v7481_v2, -inf }
 0x37b   : > { %v2869_v51 = vrot.slane %v1574_v35, %v7451_v13  ;;  %v1577_v1 = vpop.xlane.xlu1 %1576  ;;  %v7483_v35 = vld [vmem:[#allocation26_spill] sm:$0xff] }
 0x37c   : > { %v2874_v32 = vrot.slane %v1577_v1, %v7452_v41 }
 0x37d   : > { %v2870_v7 = vsel %vm7470_vm0, %v2869_v51, %v2865_v31  ;;  %1826 = vmax.xlane.f32.xlu0 %v1825_v15  ;;  %vm7478_vm0 = vcmask 195712   ;;  %v1747_v51 = vsel %vm1701_vm12, %v7483_v35, -inf }
 0x37e   : > { %v2875_v38 = vsel %vm7472_vm4, %v2874_v32, %v2870_v7  ;;  %1745 = vmax.xlane.f32.xlu1 %v1744_v18  ;;  %v1580_v11 = vpop.xlane.xlu0 %1579  ;;  %vm7480_vm4 = vcmask 261312   ;;  %v7485_v32 = vld [vmem:[#allocation86_spill] sm:$0xff] }
 0x37f   : > { %v2879_v21 = vrot.slane %v1580_v11, %v7455_v6  ;;  %v1583_v5 = vpop.xlane.xlu1 %1582  ;;  %v1768_v62 = vsel %vm1701_vm12, %v7485_v32, -inf  ;;  %v7501_v32 = vld [vmem:[#allocation89_spill] sm:$0xff] }
 0x380   : > { %v2884_v19 = vrot.slane %v1583_v5, %v7442_v4  ;;  %v7489_v5 = vld [vmem:[#allocation9_spill] sm:$0xff] }
 0x381   : > { %v2880_v34 = vsel %vm7474_vm5, %v2879_v21, %v2875_v38  ;;  %1766 = vmax.xlane.f32.xlu0 %v1765_v58  ;;  %vm7482_vm5 = vcmask 326912   ;;  %v7487_v38 = vld [vmem:[#allocation85_spill] sm:$0xff]  ;;  %v1810_v26 = vsel %vm1701_vm12, %v7489_v5, -inf }
 0x382   : > { %v3077_v59 = vsel %vm2288_vm11, %v2880_v34, %v3076_v36  ;;  %1787 = vmax.xlane.f32.xlu1 %v1786_v56  ;;  %v1586_v61 = vpop.xlane.xlu0 %1585  ;;  %v1789_v11 = vsel %vm1701_vm12, %v7487_v38, -inf }
 0x383   : > { %v2888_v8 = vrot.slane %v1586_v61, %v7443_v27  ;;  %v1589_v44 = vpop.xlane.xlu1 %1588 }
 0x384   : > { %v2893_v0 = vrot.slane %v1589_v44, %v7444_v33 }
 0x385   : > { %v2889_v52 = vsel %vm1969_vm3, %v2888_v8, %v2884_v19  ;;  %1808 = vmax.xlane.f32.xlu0 %v1807_v9  ;;  %v7491_v8 = vld [vmem:[#allocation34_spill] sm:$0xff]  ;;  %v1852_v9 = vsel %vm1701_vm12, %v7492_v40, -inf }
 0x386   : > { %v2894_v36 = vsel %vm7478_vm0, %v2893_v0, %v2889_v52  ;;  %1829 = vmax.xlane.f32.xlu1 %v1828_v55  ;;  %v1592_v14 = vpop.xlane.xlu0 %1591  ;;  %vm7484_vm0 = vcmask 392512   ;;  %v1831_v44 = vsel %vm1701_vm12, %v7491_v8, -inf }
 0x387   : > { %v2898_v24 = vrot.slane %v1592_v14, %v7447_v12  ;;  %v1595_v25 = vpop.xlane.xlu1 %1594  ;;  %v1870_v14 = vsel %vm1701_vm12, %v7411_v37, -inf }
 0x388   : > { %v2903_v39 = vrot.slane %v1595_v25, %v7448_v22  ;;  %v7495_v25 = vld [vmem:[#allocation99_spill] sm:$0xff] }
 0x389   : > { %v2899_v48 = vsel %vm7480_vm4, %v2898_v24, %v2894_v36  ;;  %1847 = vmax.xlane.f32.xlu0 %v1846_v20  ;;  %vm7486_vm4 = vcmask 458112  }
 0x38a   : > { %v2904_v10 = vsel %vm7482_vm5, %v2903_v39, %v2899_v48  ;;  %1850 = vmax.xlane.f32.xlu1 %v1849_v53  ;;  %v1598_v57 = vpop.xlane.xlu0 %1597  ;;  %vm7488_vm5 = vcmask 523712   ;;  %v1873_v39 = vsel %vm1701_vm12, %v7495_v25, -inf }
 0x38b   : > { %v2908_v43 = vrot.slane %v1598_v57, %v7451_v13  ;;  %v1601_v16 = vpop.xlane.xlu1 %1600 }
 0x38c   : > { %v2913_v31 = vrot.slane %v1601_v16, %v7452_v41 }
 0x38d   : > { %v2909_v1 = vsel %vm7484_vm0, %v2908_v43, %v2904_v10  ;;  %1748 = vmax.xlane.f32.xlu0 %v1747_v51  ;;  %vm7490_vm0 = vcmask 1043459   ;;  %v7497_v10 = vld [vmem:[#allocation25_spill] sm:$0xff]  ;;  %v7499_v43 = vld [vmem:[#allocation87_spill] sm:$0xff] }
 0x38e   : > { %v2914_v15 = vsel %vm7486_vm4, %v2913_v31, %v2909_v1  ;;  %1769 = vmax.xlane.f32.xlu1 %v1768_v62  ;;  %v1604_v7 = vpop.xlane.xlu0 %1603  ;;  %vm7493_vm4 = vcmask 195712   ;;  %v1771_v57 = vsel %vm1701_vm12, %v7497_v10, -inf  ;;  %v1792_v16 = vsel %vm1701_vm12, %v7499_v43, -inf }
 0x38f   : > { %v2918_v49 = vrot.slane %v1604_v7, %v7455_v6  ;;  %v1607_v18 = vpop.xlane.xlu1 %1606  ;;  %v1813_v62 = vsel %vm1701_vm12, %v7501_v32, -inf  ;;  %v7503_v7 = vld [vmem:[#allocation90_spill] sm:$0xff] }
 0x390   : > { %v2923_v47 = vrot.slane %v1607_v18, %v7442_v4 }
 0x391   : > { %v2919_v21 = vsel %vm7488_vm5, %v2918_v49, %v2914_v15  ;;  %1790 = vmax.xlane.f32.xlu0 %v1789_v11  ;;  %vm7494_vm5 = vcmask 261312   ;;  %v1834_v49 = vsel %vm1701_vm12, %v7503_v7, -inf }
 0x392   : > { %v3078_v58 = vsel %vm7490_vm0, %v2919_v21, %v3077_v59  ;;  %1811 = vmax.xlane.f32.xlu1 %v1810_v26  ;;  %v1610_v34 = vpop.xlane.xlu0 %1609  ;;  %vm7496_vm0 = vcmask 326912  }
 0x393   : > { %v2927_v56 = vrot.slane %v1610_v34, %v7443_v27  ;;  %v1613_v61 = vpop.xlane.xlu1 %1612  ;;  %v7504_v34 = vld [vmem:[#allocation38_spill] sm:$0xff] }
 0x394   : > { %v2932_v19 = vrot.slane %v1613_v61, %v7444_v33  ;;  %v7505_v61 = vld [vmem:[#allocation39_spill] sm:$0xff] }
 0x395   : > { %v2928_v0 = vsel %vm1969_vm3, %v2927_v56, %v2923_v47  ;;  %1832 = vmax.xlane.f32.xlu0 %v1831_v44  ;;  %v1855_v47 = vsel %vm1701_vm12, %v7504_v34, -inf }
 0x396   : > { %v2933_v59 = vsel %vm7493_vm4, %v2932_v19, %v2928_v0  ;;  %1853 = vmax.xlane.f32.xlu1 %v1852_v9  ;;  %v1616_v52 = vpop.xlane.xlu0 %1615  ;;  %vm7498_vm4 = vcmask 392512   ;;  %v1876_v19 = vsel %vm1701_vm12, %v7505_v61, -inf  ;;  %v7507_v9 = vld [vmem:[#allocation27_spill] sm:$0xff] }
 0x397   : > { %v2937_v42 = vrot.slane %v1616_v52, %v7447_v12  ;;  %v1619_v55 = vpop.xlane.xlu1 %1618 }
 0x398   : > { %v2942_v36 = vrot.slane %v1619_v55, %v7448_v22 }
 0x399   : > { %v2938_v24 = vsel %vm7494_vm5, %v2937_v42, %v2933_v59  ;;  %1871 = vmax.xlane.f32.xlu0 %v1870_v14  ;;  %vm7500_vm5 = vcmask 458112   ;;  %v1795_v59 = vsel %vm1701_vm12, %v7507_v9, -inf  ;;  %v7509_v42 = vld [vmem:[#allocation29_spill] sm:$0xff] }
 0x39a   : > { %v2943_v17 = vsel %vm7496_vm0, %v2942_v36, %v2938_v24  ;;  %1874 = vmax.xlane.f32.xlu1 %v1873_v39  ;;  %v1622_v20 = vpop.xlane.xlu0 %1621  ;;  %vm7502_vm0 = vcmask 523712   ;;  %v1816_v55 = vsel %vm1701_vm12, %v7509_v42, -inf }
 0x39b   : > { %v2947_v48 = vrot.slane %v1622_v20, %v7451_v13  ;;  %v1625_v2 = vpop.xlane.xlu1 %1624 }
 0x39c   : > { %v2952_v53 = vrot.slane %v1625_v2, %v7452_v41  ;;  %v7513_v2 = vld [vmem:[#allocation94_spill] sm:$0xff] }
 0x39d   : > { %v2948_v37 = vsel %vm7498_vm4, %v2947_v48, %v2943_v17  ;;  %1772 = vmax.xlane.f32.xlu0 %v1771_v57  ;;  %vm7506_vm4 = vcmask 195712   ;;  %v7511_v17 = vld [vmem:[#allocation93_spill] sm:$0xff] }
 0x39e   : > { %v2953_v31 = vsel %vm7500_vm5, %v2952_v53, %v2948_v37  ;;  %1793 = vmax.xlane.f32.xlu1 %v1792_v16  ;;  %v1628_v35 = vpop.xlane.xlu0 %1627  ;;  %vm7508_vm5 = vcmask 261312   ;;  %v1837_v20 = vsel %vm1701_vm12, %v7511_v17, -inf  ;;  %v1858_v53 = vsel %vm1701_vm12, %v7513_v2, -inf  ;;  %v7515_v16 = vld [vmem:[#allocation42_spill] sm:$0xff]  ;;  %v7528_v2 = vld [vmem:[#allocation40_spill] sm:$0xff] }
 0x39f   : > { %v2957_v51 = vrot.slane %v1628_v35, %v7455_v6  ;;  %v1631_v1 = vpop.xlane.xlu1 %1630 }
 0x3a0   : > { %v2962_v11 = vrot.slane %v1631_v1, %v7442_v4 }
 0x3a1   : > { %v2958_v15 = vsel %vm7502_vm0, %v2957_v51, %v2953_v31  ;;  %1814 = vmax.xlane.f32.xlu0 %v1813_v62  ;;  %vm7510_vm0 = vcmask 326912   ;;  %v1879_v31 = vsel %vm1701_vm12, %v7515_v16, -inf  ;;  %v7517_v51 = vld [vmem:[#allocation32_spill] sm:$0xff] }
 0x3a2   : > { %v3079_v18 = vsel %vm2292_vm13, %v2958_v15, %v3078_v58  ;;  %1835 = vmax.xlane.f32.xlu1 %v1834_v49  ;;  %v1634_v38 = vpop.xlane.xlu0 %1633  ;;  %v1819_v1 = vsel %vm1701_vm12, %v7517_v51, -inf }
 0x3a3   : > { %v2966_v21 = vrot.slane %v1634_v38, %v7443_v27  ;;  %v1637_v5 = vpop.xlane.xlu1 %1636 }
 0x3a4   : > { %v2971_v26 = vrot.slane %v1637_v5, %v7444_v33 }
 0x3a5   : > { %v2967_v56 = vsel %vm1969_vm3, %v2966_v21, %v2962_v11  ;;  %1856 = vmax.xlane.f32.xlu0 %v1855_v47  ;;  %v7518_v11 = vld [vmem:[#allocation33_spill] sm:$0xff] }
 0x3a6   : > { %v2972_v58 = vsel %vm7506_vm4, %v2971_v26, %v2967_v56  ;;  %1877 = vmax.xlane.f32.xlu1 %v1876_v19  ;;  %v1640_v8 = vpop.xlane.xlu0 %1639  ;;  %vm7512_vm4 = vcmask 392512   ;;  %v1840_v21 = vsel %vm1701_vm12, %v7518_v11, -inf  ;;  %v7519_v26 = vld [vmem:[#allocation97_spill] sm:$0xff] }
 0x3a7   : > { %v2976_v44 = vrot.slane %v1640_v8, %v7447_v12  ;;  %v1643_v0 = vpop.xlane.xlu1 %1642  ;;  %v1861_v34 = vsel %vm1701_vm12, %v7519_v26, -inf }
 0x3a8   : > { %v2981_v40 = vrot.slane %v1643_v0, %v7448_v22  ;;  %v7523_v0 = vld [vmem:[#allocation36_spill] sm:$0xff] }
 0x3a9   : > { %v2977_v52 = vsel %vm7508_vm5, %v2976_v44, %v2972_v58  ;;  %1796 = vmax.xlane.f32.xlu0 %v1795_v59  ;;  %vm7514_vm5 = vcmask 458112   ;;  %v7521_v58 = vld [vmem:[#allocation98_spill] sm:$0xff] }
 0x3aa   : > { %v2982_v36 = vsel %vm7510_vm0, %v2981_v40, %v2977_v52  ;;  %1817 = vmax.xlane.f32.xlu1 %v1816_v55  ;;  %v1646_v14 = vpop.xlane.xlu0 %1645  ;;  %vm7516_vm0 = vcmask 523712   ;;  %v1882_v8 = vsel %vm1701_vm12, %v7521_v58, -inf  ;;  %v1843_v40 = vsel %vm1701_vm12, %v7523_v0, -inf }
 0x3ab   : > { %v2986_v24 = vrot.slane %v1646_v14, %v7451_v13  ;;  %v1649_v25 = vpop.xlane.xlu1 %1648 }
 0x3ac   : > { %v2991_v39 = vrot.slane %v1649_v25, %v7452_v41  ;;  %v1885_v25 = vsel %vm1701_vm12, %v5729_v46, -inf }
 0x3ad   : > { %v2987_v48 = vsel %vm7512_vm4, %v2986_v24, %v2982_v36  ;;  %1838 = vmax.xlane.f32.xlu0 %v1837_v20  ;;  %vm7520_vm4 = vcmask 195712   ;;  %v7525_v36 = vld [vmem:[#allocation37_spill] sm:$0xff] }
 0x3ae   : > { %v2992_v10 = vsel %vm7514_vm5, %v2991_v39, %v2987_v48  ;;  %1859 = vmax.xlane.f32.xlu1 %v1858_v53  ;;  %v1652_v57 = vpop.xlane.xlu0 %1651  ;;  %vm7522_vm5 = vcmask 261312   ;;  %v1864_v14 = vsel %vm1701_vm12, %v7525_v36, -inf  ;;  %v1867_v53 = vsel %vm1701_vm12, %v7528_v2, -inf }
 0x3af   : > { %v2996_v37 = vrot.slane %v1652_v57, %v7455_v6  ;;  %v1655_v43 = vpop.xlane.xlu1 %1654  ;;  %v7530_v57 = vld [vmem:[#allocation101_spill] sm:$0xff] }
 0x3b0   : > { %v3001_v15 = vrot.slane %v1655_v43, %v7442_v4 }
 0x3b1   : > { %v2997_v35 = vsel %vm7516_vm0, %v2996_v37, %v2992_v10  ;;  %1880 = vmax.xlane.f32.xlu0 %v1879_v31  ;;  %vm7524_vm0 = vcmask 326912   ;;  %v1888_v37 = vsel %vm1701_vm12, %v7530_v57, -inf }
 0x3b2   : > { %v3080_v32 = vsel %vm2294_vm14, %v2997_v35, %v3079_v18  ;;  %1820 = vmax.xlane.f32.xlu1 %v1819_v1  ;;  %v1658_v62 = vpop.xlane.xlu0 %1657  ;;  %v1891_v1 = vsel %vm1701_vm12, %v5738_v30, -inf  ;;  %vm7535_vm12 = vcmask 458112  }
 0x3b3   : > { %v3005_v7 = vrot.slane %v1658_v62, %v7443_v27  ;;  %v1661_v49 = vpop.xlane.xlu1 %1660 }
 0x3b4   : > { %v3010_v38 = vrot.slane %v1661_v49, %v7444_v33 }
 0x3b5   : > { %v3006_v5 = vsel %vm1969_vm3, %v3005_v7, %v3001_v15  ;;  %1841 = vmax.xlane.f32.xlu0 %v1840_v21 }
 0x3b6   : > { %v3011_v18 = vsel %vm7520_vm4, %v3010_v38, %v3006_v5  ;;  %1862 = vmax.xlane.f32.xlu1 %v1861_v34  ;;  %v1664_v47 = vpop.xlane.xlu0 %1663  ;;  %vm7526_vm4 = vcmask 392512  }
 0x3b7   : > { %v3015_v56 = vrot.slane %v1664_v47, %v7447_v12  ;;  %v1667_v61 = vpop.xlane.xlu1 %1666 }
 0x3b8   : > { %v3020_v19 = vrot.slane %v1667_v61, %v7448_v22 }
 0x3b9   : > { %v3016_v44 = vsel %vm7522_vm5, %v3015_v56, %v3011_v18  ;;  %1883 = vmax.xlane.f32.xlu0 %v1882_v8  ;;  %vm7527_vm5 = vcmask 458112  }
 0x3ba   : > { %v3021_v9 = vsel %vm7524_vm0, %v3020_v19, %v3016_v44  ;;  %1844 = vmax.xlane.f32.xlu1 %v1843_v40  ;;  %v1670_v59 = vpop.xlane.xlu0 %1669  ;;  %vm7529_vm0 = vcmask 523712  }
 0x3bb   : > { %v3025_v52 = vrot.slane %v1670_v59, %v7451_v13  ;;  %v1673_v42 = vpop.xlane.xlu1 %1672 }
 0x3bc   : > { %v3030_v55 = vrot.slane %v1673_v42, %v7452_v41 }
 0x3bd   : > { %v3026_v24 = vsel %vm7526_vm4, %v3025_v52, %v3021_v9  ;;  %1865 = vmax.xlane.f32.xlu0 %v1864_v14  ;;  %vm7531_vm4 = vcmask 195712  }
 0x3be   : > { %v3031_v39 = vsel %vm7527_vm5, %v3030_v55, %v3026_v24  ;;  %1886 = vmax.xlane.f32.xlu1 %v1885_v25  ;;  %v1676_v17 = vpop.xlane.xlu0 %1675  ;;  %vm7532_vm5 = vcmask 261312  }
 0x3bf   : > { %v3035_v20 = vrot.slane %v1676_v17, %v7455_v6  ;;  %v1679_v48 = vpop.xlane.xlu1 %1678 }
 0x3c0   : > { %v3040_v16 = vrot.slane %v1679_v48, %v7442_v4 }
 0x3c1   : > { %v3036_v10 = vsel %vm7529_vm0, %v3035_v20, %v3031_v39  ;;  %1868 = vmax.xlane.f32.xlu0 %v1867_v53  ;;  %vm7533_vm0 = vcmask 326912  }
 0x3c2   : > { %v3081_v43 = vsel %vm2296_vm15, %v3036_v10, %v3080_v32  ;;  %1889 = vmax.xlane.f32.xlu1 %v1888_v37  ;;  %v1682_v46 = vpop.xlane.xlu0 %1681 }
 0x3c3   : > { %v3044_v31 = vrot.slane %v1682_v46, %v7443_v27  ;;  %v1685_v35 = vpop.xlane.xlu1 %1684 }
 0x3c4   : > { %v3049_v51 = vrot.slane %v1685_v35, %v7444_v33 }
 0x3c5   : > { %v3045_v62 = vsel %vm1969_vm3, %v3044_v31, %v3040_v16  ;;  %1892 = vmax.xlane.f32.xlu0 %v1891_v1  ;;  %vm7534_vm3 = vcmask 392512  }
 0x3c6   : > { %v3050_v15 = vsel %vm7531_vm4, %v3049_v51, %v3045_v62  ;;  %v1688_v7 = vpop.xlane.xlu0 %1687  ;;  %vm7536_vm4 = vcmask 523712  }
 0x3c7   : > { %v3054_v32 = vrot.slane %v1688_v7, %v7447_v12  ;;  %v1691_v49 = vpop.xlane.xlu1 %1690 }
 0x3c8   : > { %v3059_v38 = vrot.slane %v1691_v49, %v7448_v22 }
 0x3c9   : > { %v3055_v4 = vsel %vm7532_vm5, %v3054_v32, %v3050_v15  ;;  %vm7537_vm5 = vcmask 982912  }
 0x3ca   : > { %v3060_v27 = vsel %vm7533_vm0, %v3059_v38, %v3055_v4  ;;  %v1694_v11 = vpop.xlane.xlu0 %1693  ;;  %vm7538_vm0 = vcmask 1048512  }
 0x3cb   : > { %v3064_v33 = vrot.slane %v1694_v11, %v7451_v13  ;;  %v1697_v21 = vpop.xlane.xlu1 %1696 }
 0x3cc   : > { %v3069_v30 = vrot.slane %v1697_v21, %v7452_v41 }
 0x3cd   : > { %v3065_v5 = vsel %vm7534_vm3, %v3064_v33, %v3060_v27  ;;  %vm7539_vm3 = vmmov %vm7537_vm5 }
 0x3ce   : > { %v3070_v26 = vsel %vm7535_vm12, %v3069_v30, %v3065_v5  ;;  %v1700_v34 = vpop.xlane.xlu0 %1699  ;;  %vm7540_vm12 = vmmov %vm7538_vm0 }
 0x3cf   : > { %v3074_v12 = vrot.slane %v1700_v34, %v7455_v6  ;;  %v1704_v18 = vpop.xlane.xlu1 %1703 }
 0x3d0   : > { %v3151_v61 = vrot.slane %v1704_v18, %v6051_v63 }
 0x3d1   : > { %v3075_v22 = vsel %vm7536_vm4, %v3074_v12, %v3070_v26  ;;  %vm7542_vm4 = vmmov %vm7538_vm0 }
 0x3d2   : > { %v6652_v47 = vsel %vm2298_vm1, %v3075_v22, %v3081_v43  ;;  %v1707_v56 = vpop.xlane.xlu0 %1706 }
 0x3d3   : > { %v3155_v13 = vrot.slane %v1707_v56, %v6054_v29  ;;  %v1710_v19 = vpop.xlane.xlu1 %1709 }
 0x3d4   : > { %v3160_v41 = vrot.slane %v1710_v19, %v6060_v50 }
 0x3d5   : > { %v3156_v58 = vsel %vm2375_vm2, %v3155_v13, %v3151_v61 }
 0x3d6   : > { %v3161_v8 = vsel %vm2382_vm8, %v3160_v41, %v3156_v58  ;;  %v1713_v44 = vpop.xlane.xlu0 %1712 }
 0x3d7   : > { %v3165_v6 = vrot.slane %v1713_v44, %v6072_v45  ;;  %v1716_v0 = vpop.xlane.xlu1 %1715 }
 0x3d8   : > { %v3170_v40 = vrot.slane %v1716_v0, %v6079_v54 }
 0x3d9   : > { %v3166_v9 = vsel %vm2389_vm9, %v3165_v6, %v3161_v8 }
 0x3da   : > { %v3171_v59 = vsel %vm2396_vm7, %v3170_v40, %v3166_v9  ;;  %v1719_v52 = vpop.xlane.xlu0 %1718 }
 0x3db   : > { %v3175_v42 = vrot.slane %v1719_v52, %v6088_v28  ;;  %v1722_v55 = vpop.xlane.xlu1 %1721 }
 0x3dc   : > { %v3180_v36 = vrot.slane %v1722_v55, %v6095_v60 }
 0x3dd   : > { %v3176_v14 = vsel %vm2403_vm6, %v3175_v42, %v3171_v59 }
 0x3de   : > { %v3181_v24 = vsel %vm7537_vm5, %v3180_v36, %v3176_v14  ;;  %v1725_v25 = vpop.xlane.xlu0 %1724  ;;  %vm7544_vm5 = vmmov %vm7538_vm0 }
 0x3df   : > { %v3185_v39 = vrot.slane %v1725_v25, %v6103_v3  ;;  %v1728_v17 = vpop.xlane.xlu1 %1727 }
 0x3e0   : > { %v3190_v2 = vrot.slane %v1728_v17, %v6051_v63 }
 0x3e1   : > { %v6669_v20 = vsel %vm7538_vm0, %v3185_v39, %v3181_v24  ;;  %vm7545_vm0 = vcmask 1043459  }
 0x3e2   : > { %v1731_v48 = vpop.xlane.xlu0 %1730 }
 0x3e3   : > { %v3194_v53 = vrot.slane %v1731_v48, %v6054_v29  ;;  %v1734_v10 = vpop.xlane.xlu1 %1733 }
 0x3e4   : > { %v3199_v57 = vrot.slane %v1734_v10, %v6060_v50 }
 0x3e5   : > { %v3195_v37 = vsel %vm2375_vm2, %v3194_v53, %v3190_v2 }
 0x3e6   : > { %v3200_v43 = vsel %vm2382_vm8, %v3199_v57, %v3195_v37  ;;  %v1752_v46 = vpop.xlane.xlu0 %1751 }
 0x3e7   : > { %v3229_v16 = vrot.slane %v1752_v46, %v6051_v63  ;;  %v1755_v31 = vpop.xlane.xlu1 %1754 }
 0x3e8   : > { %v3233_v35 = vrot.slane %v1755_v31, %v6054_v29 }
 0x3ea   : > { %v3234_v51 = vsel %vm2375_vm2, %v3233_v35, %v3229_v16  ;;  %v1737_v1 = vpop.xlane.xlu0 %1736 }
 0x3eb   : > { %v3204_v62 = vrot.slane %v1737_v1, %v6072_v45  ;;  %v1758_v15 = vpop.xlane.xlu1 %1757 }
 0x3ec   : > { %v3238_v7 = vrot.slane %v1758_v15, %v6060_v50 }
 0x3ed   : > { %v3205_v32 = vsel %vm2389_vm9, %v3204_v62, %v3200_v43 }
 0x3ee   : > { %v3239_v49 = vsel %vm2382_vm8, %v3238_v7, %v3234_v51  ;;  %v1776_v38 = vpop.xlane.xlu0 %1775 }
 0x3ef   : > { %v3268_v4 = vrot.slane %v1776_v38, %v6051_v63  ;;  %v1779_v27 = vpop.xlane.xlu1 %1778 }
 0x3f0   : > { %v3272_v11 = vrot.slane %v1779_v27, %v6054_v29 }
 0x3f2   : > { %v3273_v33 = vsel %vm2375_vm2, %v3272_v11, %v3268_v4  ;;  %v1740_v21 = vpop.xlane.xlu0 %1739 }
 0x3f3   : > { %v3209_v30 = vrot.slane %v1740_v21, %v6079_v54  ;;  %v1761_v5 = vpop.xlane.xlu1 %1760 }
 0x3f4   : > { %v3243_v26 = vrot.slane %v1761_v5, %v6072_v45 }
 0x3f5   : > { %v3210_v34 = vsel %vm2396_vm7, %v3209_v30, %v3205_v32 }
 0x3f6   : > { %v3244_v12 = vsel %vm2389_vm9, %v3243_v26, %v3239_v49  ;;  %v1782_v18 = vpop.xlane.xlu0 %1781 }
 0x3f7   : > { %v3277_v22 = vrot.slane %v1782_v18, %v6060_v50  ;;  %v1800_v56 = vpop.xlane.xlu1 %1799 }
 0x3f8   : > { %v3307_v19 = vrot.slane %v1800_v56, %v6051_v63 }
 0x3f9   : > { %v3278_v61 = vsel %vm2382_vm8, %v3277_v22, %v3273_v33 }
 0x3fa   : > { %v1803_v13 = vpop.xlane.xlu0 %1802 }
 0x3fb   : > { %v3311_v41 = vrot.slane %v1803_v13, %v6054_v29  ;;  %v1743_v58 = vpop.xlane.xlu1 %1742 }
 0x3fc   : > { %v3214_v8 = vrot.slane %v1743_v58, %v6088_v28 }
 0x3fd   : > { %v3312_v44 = vsel %vm2375_vm2, %v3311_v41, %v3307_v19 }
 0x3fe   : > { %v3215_v6 = vsel %vm2403_vm6, %v3214_v8, %v3210_v34  ;;  %v1764_v0 = vpop.xlane.xlu0 %1763 }
 0x3ff   : > { %v3248_v40 = vrot.slane %v1764_v0, %v6079_v54  ;;  %v1785_v9 = vpop.xlane.xlu1 %1784 }
 0x400   : > { %v3282_v59 = vrot.slane %v1785_v9, %v6072_v45 }
 0x401   : > { %v3249_v52 = vsel %vm2396_vm7, %v3248_v40, %v3244_v12 }
 0x402   : > { %v3283_v42 = vsel %vm2389_vm9, %v3282_v59, %v3278_v61  ;;  %v1806_v55 = vpop.xlane.xlu0 %1805 }
 0x403   : > { %v3316_v36 = vrot.slane %v1806_v55, %v6060_v50  ;;  %v1824_v14 = vpop.xlane.xlu1 %1823 }
 0x404   : > { %v3346_v39 = vrot.slane %v1824_v14, %v6051_v63 }
 0x405   : > { %v3317_v24 = vsel %vm2382_vm8, %v3316_v36, %v3312_v44 }
 0x406   : > { %v1827_v25 = vpop.xlane.xlu0 %1826 }
 0x407   : > { %v3350_v17 = vrot.slane %v1827_v25, %v6054_v29  ;;  %v1746_v48 = vpop.xlane.xlu1 %1745 }
 0x408   : > { %v3219_v16 = vrot.slane %v1746_v48, %v6095_v60 }
 0x409   : > { %v6706_v2 = vsel %vm2375_vm2, %v3350_v17, %v3346_v39 }
 0x40a   : > { %v1767_v53 = vpop.xlane.xlu0 %1766  ;;  %v3220_v1 = vsel %vm7539_vm3, %v3219_v16, %v3215_v6 }
 0x40b   : > { %v1788_v10 = vpop.xlane.xlu1 %1787  ;;  %v3253_v27 = vrot.slane %v1767_v53, %v6088_v28 }
 0x40c   : > { %v3287_v56 = vrot.slane %v1788_v10, %v6079_v54 }
 0x40d   : > { %v3254_v30 = vsel %vm2403_vm6, %v3253_v27, %v3249_v52 }
 0x40e   : > { %v1809_v57 = vpop.xlane.xlu0 %1808  ;;  %v3288_v58 = vsel %vm2396_vm7, %v3287_v56, %v3283_v42 }
 0x40f   : > { %v6708_v37 = vpop.xlane.xlu1 %1829  ;;  %v3321_v59 = vrot.slane %v1809_v57, %v6072_v45 }
 0x410   : > { %v3355_v16 = vrot.slane %v6708_v37, %v6060_v50 }
 0x411   : > { %v3322_v39 = vsel %vm2389_vm9, %v3321_v59, %v3317_v24 }
 0x412   : > { %v6710_v43 = vpop.xlane.xlu0 %1847 }
 0x413   : > { %v6712_v46 = vpop.xlane.xlu1 %1850 }
 0x416   : > { %v1749_v31 = vpop.xlane.xlu0 %1748 }
 0x417   : > { %v3224_v35 = vrot.slane %v1749_v31, %v6103_v3  ;;  %v1770_v51 = vpop.xlane.xlu1 %1769 }
 0x418   : > { %v3258_v33 = vrot.slane %v1770_v51, %v6095_v60 }
 0x419   : > { %v3225_v62 = vsel %vm7540_vm12, %v3224_v35, %v3220_v1  ;;  %vm7546_vm12 = vmmov %vm7542_vm4 }
 0x41a   : > { %v3460_v15 = vsel %vm2286_vm10, %v3225_v62, %v6669_v20  ;;  %v1791_v7 = vpop.xlane.xlu0 %1790  ;;  %vm7541_vm10 = vmmov %vm7539_vm3 }
 0x41b   : > { %v1812_v32 = vpop.xlane.xlu1 %1811  ;;  %v3259_v20 = vsel %vm7541_vm10, %v3258_v33, %v3254_v30  ;;  %v3292_v13 = vrot.slane %v1791_v7, %v6088_v28  ;;  %v3385_v30 = vrot.slane %v6710_v43, %v6051_v63  ;;  %vm7548_vm10 = vmmov %vm7542_vm4 }
 0x41c   : > { %v3326_v36 = vrot.slane %v1812_v32, %v6079_v54  ;;  %v3356_v32 = vsel %vm2382_vm8, %v3355_v16, %v6706_v2 }
 0x41d   : > { %v3293_v44 = vsel %vm2403_vm6, %v3292_v13, %v3288_v58 }
 0x41e   : > { %v1833_v49 = vpop.xlane.xlu0 %1832  ;;  %v3327_v48 = vsel %vm2396_vm7, %v3326_v36, %v3322_v39 }
 0x41f   : > { %v6720_v38 = vpop.xlane.xlu1 %1853  ;;  %v3360_v35 = vrot.slane %v1833_v49, %v6072_v45 }
 0x420   : > { %v3394_v2 = vrot.slane %v6720_v38, %v6060_v50  ;;  %v3514_v38 = vmul.f32 %v6405_v23, %v6405_v23 }
 0x421   : > { %v3361_v37 = vsel %vm2389_vm9, %v3360_v35, %v3356_v32 }
 0x422   : > { %v6722_v4 = vpop.xlane.xlu0 %1871 }
 0x423   : > { %v6725_v11 = vpop.xlane.xlu1 %1874  ;;  %v3424_v43 = vrot.slane %v6722_v4, %v6051_v63 }
 0x426   : > { %v1773_v21 = vpop.xlane.xlu0 %1772 }
 0x427   : > { %v3263_v5 = vrot.slane %v1773_v21, %v6103_v3  ;;  %v1794_v26 = vpop.xlane.xlu1 %1793 }
 0x428   : > { %v3297_v41 = vrot.slane %v1794_v26, %v6095_v60 }
 0x429   : > { %v3264_v34 = vsel %vm7542_vm4, %v3263_v5, %v3259_v20  ;;  %v3389_v5 = vrot.slane %v6712_v46, %v6054_v29  ;;  %v3428_v46 = vrot.slane %v6725_v11, %v6054_v29  ;;  %v3477_v11 = vrot.slane %v6405_v23, 4 }
 0x42a   : > { %v3461_v12 = vsel %vm2288_vm11, %v3264_v34, %v3460_v15  ;;  %v1815_v18 = vpop.xlane.xlu0 %1814  ;;  %vm7543_vm11 = vmmov %vm7539_vm3 }
 0x42b   : > { %v1836_v22 = vpop.xlane.xlu1 %1835  ;;  %v3298_v40 = vsel %vm7543_vm11, %v3297_v41, %v3293_v44  ;;  %v3331_v42 = vrot.slane %v1815_v18, %v6088_v28  ;;  %v3390_v58 = vsel %vm2375_vm2, %v3389_v5, %v3385_v30 }
 0x42c   : > { %v3365_v24 = vrot.slane %v1836_v22, %v6079_v54  ;;  %v3395_v63 = vsel %vm2382_vm8, %v3394_v2, %v3390_v58  ;;  %v7554_v2 = vld [vmem:[#allocation41_spill] sm:$0xff] }
 0x42d   : > { %v3332_v10 = vsel %vm2403_vm6, %v3331_v42, %v3327_v48  ;;  %v3478_v42 = vadd.f32 %v3477_v11, %v6405_v23 }
 0x42e   : > { %v6734_v61 = vpop.xlane.xlu0 %1856  ;;  %v3366_v49 = vsel %vm2396_vm7, %v3365_v24, %v3361_v37 }
 0x42f   : > { %v6737_v19 = vpop.xlane.xlu1 %1877  ;;  %v3479_v16 = vrot.slane %v3478_v42, 2 }
 0x431   : > { %v3480_v24 = vadd.f32 %v3479_v16, %v3478_v42 }
 0x432   : > { %v1797_v8 = vpop.xlane.xlu0 %1796 }
 0x433   : > { %v3302_v6 = vrot.slane %v1797_v8, %v6103_v3  ;;  %v1818_v0 = vpop.xlane.xlu1 %1817 }
 0x434   : > { %v3336_v25 = vrot.slane %v1818_v0, %v6095_v60 }
 0x435   : > { %v3303_v9 = vsel %vm7544_vm5, %v3302_v6, %v3298_v40  ;;  %v3429_v40 = vsel %vm2375_vm2, %v3428_v46, %v3424_v43  ;;  %vm7550_vm2 = vmmov %vm7542_vm4  ;;  %vm7553_vm4 = vcmask 523264  }
 0x436   : > { %v3462_v52 = vsel %vm7545_vm0, %v3303_v9, %v3461_v12  ;;  %v1839_v55 = vpop.xlane.xlu0 %1838  ;;  %v3337_v31 = vsel %vm7539_vm3, %v3336_v25, %v3332_v10  ;;  %v3399_v12 = vrot.slane %v6734_v61, %v6072_v45  ;;  %v3433_v61 = vrot.slane %v6737_v19, %v6060_v50 }
 0x437   : > { %v1860_v14 = vpop.xlane.xlu1 %1859  ;;  %v3370_v7 = vrot.slane %v1839_v55, %v6088_v28 }
 0x438   : > { %v3404_v56 = vrot.slane %v1860_v14, %v6079_v54  ;;  %v3400_v44 = vsel %vm2389_vm9, %v3399_v12, %v3395_v63 }
 0x439   : > { %v3371_v26 = vsel %vm2403_vm6, %v3370_v7, %v3366_v49 }
 0x43a   : > { %v1881_v17 = vpop.xlane.xlu0 %1880  ;;  %v3405_v9 = vsel %vm2396_vm7, %v3404_v56, %v3400_v44 }
 0x43b   : > { %v1821_v53 = vpop.xlane.xlu1 %1820  ;;  %v3438_v4 = vrot.slane %v1881_v17, %v6072_v45  ;;  %v3434_v45 = vsel %vm2382_vm8, %v3433_v61, %v3429_v40  ;;  %vm7551_vm8 = vmmov %vm7539_vm3  ;;  %v7555_v61 = vlaneseq }
 0x43c   : > { %v3341_v57 = vrot.slane %v1821_v53, %v6103_v3 }
 0x43d   : > { %v3439_v14 = vsel %vm2389_vm9, %v3438_v4, %v3434_v45  ;;  %vm7552_vm9 = vmmov %vm7550_vm2 }
 0x43e   : > { %v3342_v51 = vsel %vm7546_vm12, %v3341_v57, %v3337_v31  ;;  %v1842_v1 = vpop.xlane.xlu0 %1841 }
 0x43f   : > { %v3463_v62 = vsel %vm2292_vm13, %v3342_v51, %v3462_v52  ;;  %v1863_v15 = vpop.xlane.xlu1 %1862  ;;  %v3375_v27 = vrot.slane %v1842_v1, %v6095_v60  ;;  %vm7547_vm13 = vmmov %vm7539_vm3  ;;  %v3516_v52 = vrot.slane %v3514_v38, 4 }
 0x440   : > { %v3409_v8 = vrot.slane %v1863_v15, %v6088_v28 }
 0x441   : > { %v3376_v34 = vsel %vm7547_vm13, %v3375_v27, %v3371_v26  ;;  %v3517_v53 = vadd.f32 %v3516_v52, %v3514_v38 }
 0x442   : > { %v1884_v33 = vpop.xlane.xlu0 %1883  ;;  %v3410_v55 = vsel %vm2403_vm6, %v3409_v8, %v3405_v9  ;;  %v3513_v8 = vld [vmem:[#allocation4] sm:$0x3] }
 0x443   : > { %v1845_v21 = vpop.xlane.xlu1 %1844  ;;  %v3443_v6 = vrot.slane %v1884_v33, %v6079_v54  ;;  %v3518_v35 = vrot.slane %v3517_v53, 2  ;;  %v3481_v33 = vrot.slane %v3480_v24, 1 }
 0x444   : > { %v3380_v20 = vrot.slane %v1845_v21, %v6103_v3 }
 0x445   : > { %v3444_v25 = vsel %vm2396_vm7, %v3443_v6, %v3439_v14  ;;  %v3519_v32 = vadd.f32 %v3518_v35, %v3517_v53 }
 0x446   : > { %v3381_v18 = vsel %vm7548_vm10, %v3380_v20, %v3376_v34  ;;  %v1866_v22 = vpop.xlane.xlu0 %1865 }
 0x447   : > { %v3464_v13 = vsel %vm2294_vm14, %v3381_v18, %v3463_v62  ;;  %v1887_v41 = vpop.xlane.xlu1 %1886  ;;  %v3414_v29 = vrot.slane %v1866_v22, %v6095_v60  ;;  %vm7549_vm14 = vmmov %vm7539_vm3  ;;  %v4238_v62 = vmov 1966171168   ;;  %v3520_v5 = vrot.slane %v3519_v32, 1 }
 0x448   : > { %v3448_v50 = vrot.slane %v1887_v41, %v6088_v28  ;;  %v3476_v41 = vld [vmem:[#allocation3] sm:$0x3] }
 0x449   : > { %v3415_v54 = vsel %vm7549_vm14, %v3414_v29, %v3410_v55  ;;  %v3521_v22 = vadd.f32 %v3520_v5, %v3519_v32 }
 0x44a   : > { %v1869_v0 = vpop.xlane.xlu0 %1868  ;;  %v3449_v17 = vsel %vm2403_vm6, %v3448_v50, %v3444_v25  ;;  %vm3510_vm6 = vcmp.lt.s32.totalorder %v7555_v61, 256 }
 0x44b   : > { %v3419_v19 = vrot.slane %v1869_v0, %v6103_v3  ;;  %v1890_v59 = vpop.xlane.xlu1 %1889 }
 0x44c   : > { %v3453_v36 = vrot.slane %v1890_v59, %v6095_v60 }
 0x44d   : > { %v3420_v28 = vsel %vm7550_vm2, %v3419_v19, %v3415_v54 }
 0x44e   : > { %v1893_v39 = vpop.xlane.xlu0 %1892  ;;  %v3454_v10 = vsel %vm7551_vm8, %v3453_v36, %v3449_v17  ;;  %v3465_v60 = vsel %vm2296_vm15, %v3420_v28, %v3464_v13 }
 0x44f   : > { %v3458_v48 = vrot.slane %v1893_v39, %v6103_v3  ;;  %v3493_v3 = vunpack.c.l.s4 %v4238_v62 }
 0x451   : > { %v3459_v57 = vsel %vm7552_vm9, %v3458_v48, %v3454_v10  ;;  %v3494_v49 = vunpack.c.0.s8 %v3493_v3 }
 0x452   : > { %v3466_v31 = vsel %vm2298_vm1, %v3459_v57, %v3465_v60 }
 0x453   : > { %v3470_v23 = vsel %vm7553_vm4, %v6652_v47, %v3466_v31  ;;  %v3482_v47 = vadd.f32 %v3481_v33, %v3480_v24  ;;  %v3497_v34 = vsub.s32 %v3494_v49, %v7554_v2 }
 0x454   : > { %3475 = vst [vmem:[%s6412_s7 + $0x8] sm:$0xff] %v3470_v23  ;;  %v3483_v51 = vrot.slane %v3470_v23, 4  ;;  %v3515_v1 = vmul.f32 %v3470_v23, %v3470_v23 }
 0x456   : > { %v3484_v15 = vadd.f32 %v3483_v51, %v3470_v23  ;;  %v3522_v7 = vrot.slane %v3515_v1, 4 }
 0x458   : > { %v3485_v27 = vrot.slane %v3484_v15, 2  ;;  %v3523_v37 = vadd.f32 %v3522_v7, %v3515_v1 }
 0x45a   : > { %v3486_v21 = vadd.f32 %v3485_v27, %v3484_v15  ;;  %v3524_v30 = vrot.slane %v3523_v37, 2 }
 0x45c   : > { %v3487_v26 = vrot.slane %v3486_v21, 1  ;;  %v3525_v20 = vadd.f32 %v3524_v30, %v3523_v37 }
 0x45e   : > { %v3488_v12 = vadd.f32 %v3487_v26, %v3486_v21  ;;  %v3526_v18 = vrot.slane %v3525_v20, 1 }
 0x460   : > { %v3491_v43 = vcombine.low %v3482_v47, %v3488_v12  ;;  %v3527_v46 = vadd.f32 %v3526_v18, %v3525_v20 }
 0x462   : > { %v3498_v56 = vrot.slane %v3491_v43, %v3497_v34  ;;  %v3530_v13 = vcombine.low %v3521_v22, %v3527_v46 }
 0x464   : > { %v3505_v38 = vrot.slane %v3498_v56, %v3497_v34  ;;  %v3537_v58 = vrot.slane %v3530_v13, %v3497_v34 }
 0x466   : > { %v3507_v63 = vadd.f32 %v3505_v38, %v3476_v41  ;;  %v3544_v4 = vrot.slane %v3537_v58, %v3497_v34 }
 0x468   : > { %3512 = vst.msk [vmem:[#allocation3] sm:$0x3] %vm3510_vm6, %v3507_v63  ;;  %v3546_v29 = vadd.f32 %v3544_v4, %v3513_v8 }
 0x46a   : > { %3547 = vst.msk [vmem:[#allocation4] sm:$0x3] %vm3510_vm6, %v3546_v29 }
 0x46b PF: > { %p3548_p3 = scmp.eq.s32.totalorder %s4220_s16, 1 }
 0x46d   : > { %p3549_p4 = pnand %p3548_p3, %p212_p13 }
 0x46e   : > { %s4239_s8 = smov (!%p3549_p4), 64  }
 0x46f   : > { %3552 = sbr.rel (%p3549_p4) target bundleno = 1413 (0x585), region = 44 }
 0x474   : > { %v3553_v11 = vld [vmem:[#allocation3] sm:$0x1]  ;;  %v3565_v44 = vld [vmem:[#allocation3 + $0x1] sm:$0x1]  ;;  %v3554_v6 = vld [vmem:[#allocation4] sm:$0x1]  ;;  %v3587_v40 = vlaneseq }
 0x475   : > { %3556 = vrot.lane.b32.xlu0 %v3553_v11, %s4239_s8  ;;  %3570 = vrot.lane.b32.xlu1 %v3565_v44, %s4239_s8  ;;  %v3567_v0 = vld [vmem:[#allocation4 + $0x1] sm:$0x1]  ;;  %v4240_v31 = vmov 1966171168   ;;  %vm3594_vm7 = vcmask 523264  }
 0x476   : > { %v3588_v59 = vshrl.u32 %v3587_v40, 7  ;;  %v3599_v23 = vunpack.c.l.s4 %v4240_v31  ;;  %vm3615_vm15 = vcmp.lt.s32.totalorder %v3587_v40, 256 }
 0x478   : > { %v3589_v14 = vsub.s32 0, %v3588_v59  ;;  %v3600_v35 = vunpack.c.0.s8 %v3599_v23 }
 0x479   : > { %3561 = vrot.lane.b32.xlu0 %v3554_v6, %s4239_s8  ;;  %3575 = vrot.lane.b32.xlu1 %v3567_v0, %s4239_s8 }
 0x47a   : > { %v3603_v51 = vsub.s32 %v3600_v35, %v3588_v59 }
 0x4e7   : > { %v3557_v9 = vpop.permute.xlu0 %3556  ;;  %v3571_v50 = vpop.permute.xlu1 %3570 }
 0x4e8   : > { %v3559_v19 = vadd.f32 %v3557_v9, %v3553_v11 }
 0x4ea   : > { %v3566_v52 = vadd.f32 %v3565_v44, %v3559_v19 }
 0x4eb   : > { %v3562_v45 = vpop.permute.xlu0 %3561  ;;  %v3576_v54 = vpop.permute.xlu1 %3575 }
 0x4ec   : > { %v3573_v55 = vadd.f32 %v3571_v50, %v3566_v52  ;;  %v3564_v36 = vadd.f32 %v3562_v45, %v3554_v6 }
 0x4ee   : > { %v3579_v42 = vmul.f32 0.015625, %v3573_v55  ;;  %v3568_v25 = vadd.f32 %v3567_v0, %v3564_v36 }
 0x4f0   : > { %v3578_v28 = vadd.f32 %v3576_v54, %v3568_v25  ;;  %v3590_v39 = vrot.slane %v3579_v42, %v3589_v14  ;;  %v3581_v48 = vmul.f32 %v3579_v42, %v3579_v42 }
 0x4f2   : > { %v3580_v17 = vmul.f32 0.015625, %v3578_v28  ;;  %3591 = vrot.lane.b32.xlu0 %v3590_v39, %s4239_s8 }
 0x4f4   : > { %v3582_v53 = vsub.f32 %v3580_v17, %v3581_v48 }
 0x4f6   : > { %v3583_v10 = vmax.f32 %v3582_v53, 0.0 }
 0x4f8   : > { %v3584_v60 = vadd.f32 1e-05, %v3583_v10 }
 0x4fa   : > { %4122 = vrsqrt.f32 %v3584_v60 }
 0x507   : > { %v4123_v57 = vpop.eup %4122 }
 0x508   : > { %v3622_v16 = vrot.slane %v4123_v57, %v3589_v14 }
 0x50a   : > { %3623 = vrot.lane.b32.xlu1 %v3622_v16, %s4239_s8 }
 0x564   : > { %v3592_v1 = vpop.permute.xlu0 %3591 }
 0x565   : > { %v3595_v24 = vsel %vm3594_vm7, %v3579_v42, %v3592_v1 }
 0x566   : > { %v3597_v62 = vcombine.low %v3595_v24, %v3595_v24 }
 0x568   : > { %v3604_v3 = vrot.slane %v3597_v62, %v3603_v51 }
 0x56a   : > { %v3611_v15 = vrot.slane %v3604_v3, %v3603_v51 }
 0x56c   : > { %3617 = vst.msk [vmem:[#allocation5] ss:$2 sm:$0x3] %vm3615_vm15, %v3611_v15 }
 0x57c   : > { %v3624_v7 = vpop.permute.xlu1 %3623 }
 0x57d   : > { %v3626_v32 = vsel %vm3594_vm7, %v4123_v57, %v3624_v7 }
 0x57e   : > { %v3628_v27 = vcombine.low %v3626_v32, %v3626_v32 }
 0x580   : > { %v3635_v37 = vrot.slane %v3628_v27, %v3603_v51 }
 0x582   : > { %v3642_v33 = vrot.slane %v3635_v37, %v3603_v51 }
 0x584   : > { %3645 = vst.msk [vmem:[#allocation5 + $0x1] ss:$2 sm:$0x3] %vm3615_vm15, %v3642_v33 }
 0x585 PF: > { %p3962_p5 = scmp.ne.s32.totalorder %s4220_s16, 1 }
 0x586   : > { %s3988_s20 = sshll.u32 (!%p3962_p5), %s4216_s15, 4 }
 0x587   : > { %3648 = sbr.rel (%p3962_p5) target bundleno = 1653 (0x675), region = 48  ;;  %s3651_s10 = scalar_lea.vmem (!%p3962_p5), [#allocation2], %s3988_s20 }
 0x58c   : > { %v4124_v49 = vld [vmem:[%s6934_s1 + $0x78] sm:$0xff]   ;;  %v4126_v30 = vld [vmem:[%s6934_s1 + $0x70] sm:$0xff]   ;;  %v4128_v26 = vld [vmem:[%s6934_s1 + $0x68] sm:$0xff]   ;;  %v3656_v20 = vlaneseq }
 0x58d   : > { %v4125_v21 = vld [vmem:[%s6934_s1 + $0x38] sm:$0xff]   ;;  %3989 = vmatprep.subr.bf16.mxu0 %v4124_v49  ;;  %v4127_v5 = vld [vmem:[%s6934_s1 + $0x30] sm:$0xff]   ;;  %v4129_v47 = vld [vmem:[%s6934_s1 + $0x28] sm:$0xff]  }
 0x58e   : > { %3990 = vmatpush3.bf16.msra.mxu0 %v4125_v21  ;;  %v4130_v2 = vld [vmem:[%s6934_s1 + $0x60] sm:$0xff]   ;;  %v3657_v34 = vshrl.u32 %v3656_v20, 7  ;;  %v4132_v18 = vld [vmem:[%s6934_s1 + $0x58] sm:$0xff]   ;;  %v4134_v56 = vld [vmem:[%s6934_s1 + $0x50] sm:$0xff]  }
 0x58f   : > { %3991 = vmatprep.subr.bf16.mxu0 %v4126_v30  ;;  %v4131_v12 = vld [vmem:[%s6934_s1 + $0x20] sm:$0xff]   ;;  %v4133_v46 = vld [vmem:[%s6934_s1 + $0x18] sm:$0xff]   ;;  %v3653_v13 = vld [vmem:[%s3651_s10 + $0x8] sm:$0xff] }
 0x590   : > { %v3662_v22 = vsub.s32 1, %v3657_v34  ;;  %v3658_v43 = vsub.s32 0, %v3657_v34  ;;  %v3654_v41 = vld [vmem:[#allocation5] ss:$2 sm:$0x3]  ;;  %v4135_v63 = vld [vmem:[%s6934_s1 + $0x10] sm:$0xff]  }
 0x591   : > { %v3669_v58 = vld [vmem:[#allocation5 + $0x1] ss:$2 sm:$0x3]  ;;  %v4136_v11 = vld [vmem:[%s6934_s1 + $0x48] sm:$0xff]   ;;  %v3965_v55 = vld [vmem:[%s6935_s2] ss:$0 sm:$0xff] }
 0x592   : > { %3992 = vmatpush3.bf16.msra.mxu0 %v4127_v5  ;;  %v3663_v38 = vrot.slane %v3654_v41, %v3662_v22  ;;  %v3659_v61 = vrot.slane %v3654_v41, %v3658_v43  ;;  %v3678_v8 = vrot.slane %v3669_v58, %v3662_v22  ;;  %v3652_v4 = vld [vmem:[%s3651_s10] sm:$0xff]  ;;  %v3674_v6 = vrot.slane %v3669_v58, %v3658_v43  ;;  %v4137_v40 = vld [vmem:[%s6934_s1 + $0x8] sm:$0xff]  }
 0x593   : > { %3993 = vmatprep.subr.bf16.mxu0 %v4128_v26  ;;  %v4138_v50 = vld [vmem:[%s6934_s1 + $0x40] sm:$0xff]  }
 0x594   : > { %v3667_v29 = vsub.f32 %v3653_v13, %v3663_v38  ;;  %v3666_v0 = vsub.f32 %v3652_v4, %v3659_v61  ;;  %v4139_v59 = vld [vmem:[%s6934_s1] sm:$0xff]  }
 0x596   : > { %3994 = vmatpush3.bf16.msra.mxu0 %v4129_v47  ;;  %v3682_v44 = vmul.f32 %v3678_v8, %v3667_v29  ;;  %v3681_v19 = vmul.f32 %v3674_v6, %v3666_v0 }
 0x597   : > { %3995 = vmatprep.subr.bf16.mxu0 %v4130_v2 }
 0x598   : > { %v3684_v9 = vpack.c.bf16 %v3682_v44, %v3682_v44  ;;  %v3683_v52 = vpack.c.bf16 %v3681_v19, %v3681_v19 }
 0x59a   : > { %3996 = vmatpush3.bf16.msra.mxu0 %v4131_v12  ;;  %3852 = vmatprep.mubr.bf16.mxu0 %v3684_v9 }
 0x59b   : > { %3997 = vmatprep.subr.bf16.mxu0 %v4132_v18 }
 0x59e   : > { %3998 = vmatpush3.bf16.msra.mxu0 %v4133_v46 }
 0x59f   : > { %3999 = vmatprep.subr.bf16.mxu0 %v4134_v56 }
 0x5a2   : > { %4000 = vmatpush3.bf16.msra.mxu0 %v4135_v63 }
 0x5a3   : > { %4001 = vmatprep.subr.bf16.mxu0 %v4136_v11 }
 0x5a6   : > { %4002 = vmatpush3.bf16.msra.mxu0 %v4137_v40 }
 0x5a7   : > { %4003 = vmatprep.subr.bf16.mxu0 %v4138_v50 }
 0x5aa   : > { %4004 = vmatpush3.bf16.msra.mxu0 %v4139_v59 }
 0x5ad   : > { %3853 = vmatmul.mubr.bf16.vlgmr.msra.gmra.mxu0 %v3683_v52 }
 0x66d   : > { %v4005_v45 = vpop.f32.mrf.mxu0 }
 0x66f   : > { %v4006_v36 = vpop.f32.mrf.mxu0 }
 0x670   : > { %v4007_v14 = vadd.f32 %v4006_v36, %v4005_v45 }
 0x671   : > { %v4008_v54 = vpop.f32.mrf.mxu0 }
 0x672   : > { %v3855_v42 = vadd.f32 %v4007_v14, %v3965_v55 }
 0x673   : > { %v4009_v25 = vpop.f32.mrf.mxu0 }
 0x674   : > { %3860 = vst [vmem:[%s195_s24] sm:$0xff] %v3855_v42 }
 0x675 PF: > { %s3869_s21 = smul.u32 %s4216_s15, %s4220_s16  ;;  %s3876_s27 = sshll.u32 %s195_s24, 4  ;;  %s3877_s27 = int_to_ptr.vmem [resolvable:$true] %s3876_s27 }
 0x676   : > { %s3862_s7 = scalar_lea.sflag [#allocation7], %s193_s4  ;;  %s4140_s8 = scalar_lea.vmem %s3877_s27, 128 }
 0x677   : > { %s3983_s28 = sshll.u32 %s3869_s21, 7  ;;  %p4141_p7 = scmp.ne.s32.totalorder %s3877_s27, %s4140_s8 }
 0x678   : > { %s3874_s5 = scalar_lea.hbm %s6936_s3, %s3983_s28  ;;  %s4241_s9 = smov [#allocation6]  }
 0x679   : > { %p4142_p9 = pnand %p4141_p7, %p4315_p6  ;;  %s4144_s10 = sshll.u32 %s4241_s9, 4  ;;  %s4145_s10 = int_to_ptr.vmem [resolvable:$false] %s4144_s10 }
 0x67a   : > { %s4146_s11 = scalar_lea.vmem %s4145_s10, 256  ;;  %p4147_p11 = scmp.lt.s32.totalorder %s3877_s27, %s4145_s10 }
 0x67b   : > { %p4143_p10 = pneg %p4142_p9  ;;  %p4148_p12 = scmp.lt.s32.totalorder %s4146_s11, %s4140_s8 }
 0x67d   : > { %p4149_p13 = por %p4148_p12, %p4147_p11 }
 0x67f   : > { %p4150_p0 = pnand %p4149_p13, %p4143_p10 }
 0x681   : > { %4153 = shalt.err (!%p4150_p0)
}
 0x682   : > { %s4154_s15 = scalar_lea.hbm %s3874_s5, 128  ;;  %s4158_s6 = scalar_lea.hbm %s6936_s3, 256 }
 0x683   : > { %p4155_p1 = scmp.ne.s32.totalorder %s3874_s5, %s4154_s15  ;;  %p4159_p4 = scmp.lt.s32.totalorder %s3874_s5, %s6936_s3 }
 0x684   : > { %p4160_p5 = scmp.lt.s32.totalorder %s4158_s6, %s4154_s15 }
 0x685   : > { %p4156_p2 = pnand %p4155_p1, %p4315_p6 }
 0x686   : > { %p4161_p7 = por %p4160_p5, %p4159_p4 }
 0x687   : > { %p4157_p3 = pneg %p4156_p2 }
 0x689   : > { %p4162_p9 = pnand %p4161_p7, %p4157_p3 }
 0x68b   : > { %4165 = shalt.err (!%p4162_p9)
}
 0x68c   : > { %4011 = dma.vmem_to_hbm [thread:$0]  (%p4315_p6), %s3877_s27, 128, %s3874_s5, %s3862_s7  }
 0x68d PF: > { %p4017_p10 = scmp.ge.s32.totalorder %s4232_s19, 2  ;;  %s3888_s28 = sand.u32 1, %s4204_s12  }
 0x68e   : > { %s3889_s20 = scalar_lea.sflag [#allocation7], %s3888_s28 }
 0x68f   : > { %p4014_p11 = pnand %p4017_p10, %p4322_p8 }
 0x691   : > { %p4015_p12 = pneg %p4014_p11 }
 0x693   : > { %4199 = dma.done.wait (%p4015_p12), %s3889_s20, 128  }
 0x694   : > { %4201 = vsyncadd (%p4015_p12), %s3889_s20, 4294967168  ;;  %s16_s19 = sadd.s32 1, %s4232_s19   ;;  %s7556_s12 = smov %s4208_s13 }
 0x695   : > { %p13_p13 = scmp.ge.s32.totalorder %s16_s19, 6   ;;  %s7557_s13 = smov %s4212_s14 }
 0x696   : > { %s7558_s14 = smov %s4331_s30  ;;  %s7559_s15 = smov %s4224_s17 }
 0x697   : > { %s7560_s16 = smov %s4228_s18  ;;  %s7561_s17 = smov %s7564_s22 }
 0x698   : > { %s7562_s18 = smov %s7568_s23  ;;  %15 = sbr.rel (!%p13_p13) target bundleno = 5 (0x5), region = 87 }
 0x69d   :  { %3894 = vsyncpa [#allocation7], 1 }
 0x69e   :  { %3896 = vsyncpa [#allocation7 + $0x1], 1 }

</bundles_post_ra>
